<compile_context>
chip_gen: v7x
topology: tpu7x:2x2x1
jax: 0.10.0
libtpu: 0.0.40
codegen_flags: <defaults>
</compile_context>

<pallas_src>
import functools

import jax
import jax.numpy as jnp
from jax.experimental import pallas as pl
from jax.experimental.pallas import tpu as pltpu


def _round_up(x, m):
    return ((x + m - 1) // m) * m


def _pad2(a, rows, cols):
    return jnp.pad(a, ((0, rows - a.shape[0]), (0, cols - a.shape[1])))


# --------------------------------------------------------------------------
# Kernel: out[i] = epilogue( sum_k adj[i, k] @ feat[k] )
#   adj tile (tm, tk) streamed from HBM; feat (N, C) VMEM-resident; f32 acc.
#   epilogue on last K tile: (+ bias) [relu] [@ W2].
# --------------------------------------------------------------------------
def _adj_spmm_kernel(adj_ref, feat_ref, b_ref, *rest, tk, fuse_w2, apply_relu):
    if fuse_w2:
        w2_ref, out_ref, acc_ref = rest
    else:
        out_ref, acc_ref = rest

    k = pl.program_id(1)

    @pl.when(k == 0)
    def _():
        acc_ref[...] = jnp.zeros_like(acc_ref)

    off = pl.multiple_of(k * tk, tk)
    acc_ref[...] += jnp.dot(adj_ref[...], feat_ref[pl.ds(off, tk), :],
                            preferred_element_type=jnp.float32)

    @pl.when(k == pl.num_programs(1) - 1)
    def _():
        r = acc_ref[...] + b_ref[...]
        if apply_relu:
            r = jnp.maximum(r, 0.0)
        if fuse_w2:
            r = jnp.dot(r.astype(w2_ref.dtype), w2_ref[...],
                        preferred_element_type=jnp.float32)
        out_ref[...] = r.astype(out_ref.dtype)


def _adj_spmm(adj, feat, b, *, w2, apply_relu, out_dtype, tm, tk):
    """One GCN aggregation pass: epilogue(Ahat @ feat)."""
    n = adj.shape[0]
    c = feat.shape[1]
    oc = w2.shape[1] if w2 is not None else c
    grid = (n // tm, n // tk)

    in_specs = [
        pl.BlockSpec((tm, tk), lambda i, k: (i, k)),   # adj tile, streamed
        pl.BlockSpec((n, c), lambda i, k: (0, 0)),     # feat, VMEM-resident
        pl.BlockSpec((1, c), lambda i, k: (0, 0)),     # bias, resident
    ]
    args = [adj, feat, b]
    if w2 is not None:
        in_specs.append(pl.BlockSpec(w2.shape, lambda i, k: (0, 0)))
        args.append(w2)

    # Explicit VMEM budget (double-buffered inputs/output + scratch) so the
    # limit is v7x-safe (64 MiB physical / TC) while leaving Mosaic headroom.
    # (On v5e/v6e this could be raised toward ~100 MiB for very large N.)
    out_itemsize = jnp.dtype(out_dtype).itemsize
    footprint = (2 * tm * tk * adj.dtype.itemsize          # adj double-buffer
                 + 2 * n * c * feat.dtype.itemsize         # resident features
                 + 2 * c * 4                               # bias
                 + (2 * w2.size * w2.dtype.itemsize if w2 is not None else 0)
                 + 2 * tm * oc * out_itemsize              # out double-buffer
                 + tm * c * 4)                             # f32 accumulator
    vmem_limit = int(min(max(footprint + (8 << 20), 32 << 20), 64 << 20))

    flops = 2 * n * n * c + (2 * n * c * oc if w2 is not None else 0)
    bytes_accessed = (n * n * adj.dtype.itemsize
                      + n * c * feat.dtype.itemsize
                      + n * oc * out_itemsize)

    kernel = functools.partial(_adj_spmm_kernel, tk=tk,
                               fuse_w2=w2 is not None, apply_relu=apply_relu)

    return pl.pallas_call(
        kernel,
        out_shape=jax.ShapeDtypeStruct((n, oc), out_dtype),
        grid_spec=pltpu.PrefetchScalarGridSpec(
            num_scalar_prefetch=0,
            grid=grid,
            in_specs=in_specs,
            out_specs=pl.BlockSpec((tm, oc), lambda i, k: (i, 0)),
            scratch_shapes=[pltpu.VMEM((tm, c), jnp.float32)],
        ),
        compiler_params=pltpu.CompilerParams(
            dimension_semantics=("parallel", "arbitrary"),
            vmem_limit_bytes=vmem_limit,
        ),
        cost_estimate=pl.CostEstimate(flops=flops, transcendentals=0,
                                      bytes_accessed=bytes_accessed),
    )(*args)


# --------------------------------------------------------------------------
# Wrapper: padding / dtype plumbing + the two layer passes.
# --------------------------------------------------------------------------
_TM = 512     # adj row tile; np_ always gives >=2 row tiles (v7x megacore)
_TK = 1024    # adj reduction tile; bf16 tile = 1 MiB (near HBM roofline)


def gcn_encoder(x, edge_index, w1, b1, w2, b2):
    n, _ = x.shape
    hidden = w1.shape[1]
    out_c = w2.shape[1]

    # Node dim padded to a multiple of tk (tk % tm == 0) and >= 2 row tiles.
    np_ = _round_up(max(n, 2 * _TM), _TK)
    hp = _round_up(hidden, 128)
    op = _round_up(out_c, 128)

    # Padded bf16 normalized adjacency, built directly at (np_, np_).
    # TODO(synk): on v7x an fp8 (e4m3) adj stream would halve HBM traffic;
    # kept bf16 since v5e/v6e have no fp8 MXU path.
    adj_p = gcn_norm_dense(edge_index, n, padded_nodes=np_, dtype=jnp.bfloat16)

    # Hoisted feature transform: one small XLA dot, not per grid step.
    xw1_p = _pad2(x @ w1, np_, hp).astype(jnp.bfloat16)
    b1_p = _pad2(b1, 1, hp).astype(jnp.float32)
    w2_p = _pad2(w2, hp, op).astype(jnp.bfloat16)
    b2_p = _pad2(b2, 1, op).astype(jnp.float32)

    # Layer 1 (+ fused epilogue): HW2 = relu(Ahat @ XW1 + b1) @ W2   (bf16)
    hw2 = _adj_spmm(adj_p, xw1_p, b1_p, w2=w2_p, apply_relu=True,
                    out_dtype=jnp.bfloat16, tm=_TM, tk=_TK)
    # Layer 2: out = Ahat @ HW2 + b2
    out = _adj_spmm(adj_p, hw2, b2_p, w2=None, apply_relu=False,
                    out_dtype=jnp.float32, tm=_TM, tk=_TK)
    return out[:n, :out_c]


# --------------------------------------------------------------------------
# Glue: dense gcn_norm (sparse edge_index -> normalized dense adjacency).
# --------------------------------------------------------------------------
def gcn_norm_dense(edge_index, num_nodes, padded_nodes=None, dtype=jnp.float32):
    """Dense PyG gcn_norm: Ahat = D^{-1/2} (A + I_remaining) D^{-1/2}.

    A[target, source] = 1 (aggregation at the target node). Self loops are
    added only for real nodes that lack one (add_remaining_self_loops).
    Built directly at the padded size: padded rows/cols stay exactly zero
    (deg 0 -> dinv 0), so padded feature rows can never leak into outputs.
    Note: duplicate edges accumulate as weight > 1 (matches a reference that
    sees the same duplicated edge_index).
    """
    n_alloc = padded_nodes if padded_nodes is not None else num_nodes
    row, col = edge_index[0], edge_index[1]
    a = jnp.zeros((n_alloc, n_alloc), jnp.float32)
    a = a.at[col, row].add(1.0)
    is_real = jnp.arange(n_alloc) < num_nodes
    diag = jnp.diagonal(a)
    a = a + jnp.diag(jnp.where((diag > 0) | (~is_real), 0.0, 1.0))
    deg = a.sum(axis=1)
    dinv = jnp.where(deg > 0, 1.0 / jnp.sqrt(deg), 0.0)
    return (dinv[:, None] * a * dinv[None, :]).astype(dtype)


def glorot(key, fan_in, fan_out):
    a = jnp.sqrt(6.0 / (fan_in + fan_out))
    return jax.random.uniform(key, (fan_in, fan_out), jnp.float32, -a, a)


if __name__ == "__main__":
    # Small, TPU-friendly shapes consistent with the module.
    num_nodes = 64
    in_channels = 16
    out_channels = 8
    hidden = 2 * out_channels  # GCNEncoder: conv1 -> 2*out_channels

    key = jax.random.PRNGKey(0)
    k_x, k_w1, k_w2, k_b1, k_b2 = jax.random.split(key, 5)

    # Node features.
    x = jax.random.normal(k_x, (num_nodes, in_channels), jnp.float32)

    # Deterministic bidirectional ring graph (no self loops, no duplicates).
    src = jnp.arange(num_nodes, dtype=jnp.int32)
    dst = (src + 1) % num_nodes
    edge_index = jnp.concatenate(
        [jnp.stack([src, dst], axis=0), jnp.stack([dst, src], axis=0)], axis=1
    )  # [2, 2*N]

    # Parameters (glorot weights; small nonzero biases to exercise epilogue).
    w1 = glorot(k_w1, in_channels, hidden)
    b1 = 0.1 * jax.random.normal(k_b1, (1, hidden), jnp.float32)
    w2 = glorot(k_w2, hidden, out_channels)
    b2 = 0.1 * jax.random.normal(k_b2, (1, out_channels), jnp.float32)

    out = gcn_encoder(x, edge_index, w1, b1, w2, b2)
    out = jax.block_until_ready(out)

    # Pure-JAX f32 reference (kernel streams bf16 -> loose tolerance).
    adj_ref = gcn_norm_dense(edge_index, num_nodes)          # f32, unpadded
    h_ref = jnp.maximum(adj_ref @ (x @ w1) + b1, 0.0)
    out_ref = adj_ref @ (h_ref @ w2) + b2
    assert out.shape == (num_nodes, out_channels)
    assert jnp.allclose(out, out_ref, atol=5e-2, rtol=5e-2), (
        float(jnp.abs(out - out_ref).max())
    )

    print("KERNEL_OK")
</pallas_src>

<mosaic_0001>
module attributes {stable_mosaic.version = 11 : i64} {
  func.func @_adj_spmm_kernel(%arg0: i32, %arg1: i32, %arg2: memref<512x1024xbf16, #tpu.memory_space<vmem>>, %arg3: memref<1024x128xbf16, #tpu.memory_space<vmem>>, %arg4: memref<1x128xf32, #tpu.memory_space<vmem>>, %arg5: memref<128x128xbf16, #tpu.memory_space<vmem>>, %arg6: memref<512x128xbf16, #tpu.memory_space<vmem>>, %arg7: memref<512x128xf32, #tpu.memory_space<vmem>>) attributes {dimension_semantics = [#tpu.dimension_semantics<parallel>, #tpu.dimension_semantics<arbitrary>], iteration_bounds = array<i64: 2, 1>, scalar_prefetch = 0 : i64, scratch_operands = 1 : i64, tpu.core_type = #tpu.core_type<tc>, window_params = [{transform_indices = @transform_0, window_bounds = array<i64: 512, 1024>}, {pipeline_mode = #tpu.pipeline_mode<synchronous>, transform_indices = @transform_1, window_bounds = array<i64: 1024, 128>}, {pipeline_mode = #tpu.pipeline_mode<synchronous>, transform_indices = @transform_2, window_bounds = array<i64: 1, 128>}, {pipeline_mode = #tpu.pipeline_mode<synchronous>, transform_indices = @transform_3, window_bounds = array<i64: 128, 128>}, {transform_indices = @transform_4, window_bounds = array<i64: 512, 128>}]} {
    %c0_i32 = arith.constant 0 : i32
    %0 = arith.cmpi eq, %arg1, %c0_i32 : i32
    %1 = arith.extui %0 : i1 to i32
    %c0_i32_0 = arith.constant 0 : i32
    %2 = arith.cmpi ne, %1, %c0_i32_0 : i32
    scf.if %2 {
      %cst_9 = arith.constant 0.000000e+00 : f32
      %15 = vector.broadcast %cst_9 : f32 to vector<512x128xf32>
      %c0_10 = arith.constant 0 : index
      %c0_11 = arith.constant 0 : index
      %16 = vector.load %arg7[%c0_10, %c0_11] : memref<512x128xf32, #tpu.memory_space<vmem>>, vector<512x128xf32>
      tpu.vector_store %arg7[%c0_10, %c0_11], %15 {strides = array<i32>} : memref<512x128xf32, #tpu.memory_space<vmem>>, vector<512x128xf32>,
    } else {
    }
    %c1024_i32 = arith.constant 1024 : i32
    %3 = arith.muli %arg1, %c1024_i32 : i32
    %4 = tpu.assume_multiple %3, 1024 : i32
    %c0 = arith.constant 0 : index
    %c0_1 = arith.constant 0 : index
    %5 = vector.load %arg7[%c0, %c0_1] : memref<512x128xf32, #tpu.memory_space<vmem>>, vector<512x128xf32>
    %c0_2 = arith.constant 0 : index
    %c0_3 = arith.constant 0 : index
    %6 = vector.load %arg2[%c0_2, %c0_3] : memref<512x1024xbf16, #tpu.memory_space<vmem>>, vector<512x1024xbf16>
    %7 = arith.index_cast %4 : i32 to index
    %c0_4 = arith.constant 0 : index
    %8 = vector.load %arg3[%7, %c0_4] : memref<1024x128xbf16, #tpu.memory_space<vmem>>, vector<1024x128xbf16>
    %cst = arith.constant dense<0.000000e+00> : vector<512x128xf32>
    %9 = tpu.matmul %6, %8, %cst {dimension_numbers = #tpu.dot_dimension_numbers<[1], [0], [0], [1], [0, 0, 1, 1], [], []>} : vector<512x1024xbf16>, vector<1024x128xbf16>, vector<512x128xf32> -> vector<512x128xf32>
    %10 = arith.addf %5, %9 : vector<512x128xf32>
    %c0_5 = arith.constant 0 : index
    %c0_6 = arith.constant 0 : index
    %11 = vector.load %arg7[%c0_5, %c0_6] : memref<512x128xf32, #tpu.memory_space<vmem>>, vector<512x128xf32>
    tpu.vector_store %arg7[%c0_5, %c0_6], %10 {strides = array<i32>} : memref<512x128xf32, #tpu.memory_space<vmem>>, vector<512x128xf32>,
    %c0_i32_7 = arith.constant 0 : i32
    %12 = arith.cmpi eq, %arg1, %c0_i32_7 : i32
    %13 = arith.extui %12 : i1 to i32
    %c0_i32_8 = arith.constant 0 : i32
    %14 = arith.cmpi ne, %13, %c0_i32_8 : i32
    scf.if %14 {
      %c0_9 = arith.constant 0 : index
      %c0_10 = arith.constant 0 : index
      %15 = vector.load %arg7[%c0_9, %c0_10] : memref<512x128xf32, #tpu.memory_space<vmem>>, vector<512x128xf32>
      %c0_11 = arith.constant 0 : index
      %c0_12 = arith.constant 0 : index
      %16 = vector.load %arg4[%c0_11, %c0_12] : memref<1x128xf32, #tpu.memory_space<vmem>>, vector<1x128xf32>
      %17 = vector.broadcast %16 : vector<1x128xf32> to vector<512x128xf32>
      %18 = arith.addf %15, %17 : vector<512x128xf32>
      %cst_13 = arith.constant 0.000000e+00 : f32
      %19 = vector.broadcast %cst_13 : f32 to vector<512x128xf32>
      %20 = arith.maximumf %18, %19 : vector<512x128xf32>
      %21 = arith.truncf %20 : vector<512x128xf32> to vector<512x128xbf16>
      %c0_14 = arith.constant 0 : index
      %c0_15 = arith.constant 0 : index
      %22 = vector.load %arg5[%c0_14, %c0_15] : memref<128x128xbf16, #tpu.memory_space<vmem>>, vector<128x128xbf16>
      %cst_16 = arith.constant dense<0.000000e+00> : vector<512x128xf32>
      %23 = tpu.matmul %21, %22, %cst_16 {dimension_numbers = #tpu.dot_dimension_numbers<[1], [0], [0], [1], [0, 0, 1, 1], [], []>} : vector<512x128xbf16>, vector<128x128xbf16>, vector<512x128xf32> -> vector<512x128xf32>
      %24 = arith.truncf %23 : vector<512x128xf32> to vector<512x128xbf16>
      %c0_17 = arith.constant 0 : index
      %c0_18 = arith.constant 0 : index
      %25 = vector.load %arg6[%c0_17, %c0_18] : memref<512x128xbf16, #tpu.memory_space<vmem>>, vector<512x128xbf16>
      tpu.vector_store %arg6[%c0_17, %c0_18], %24 {strides = array<i32>} : memref<512x128xbf16, #tpu.memory_space<vmem>>, vector<512x128xbf16>,
    } else {
    }
    return
  }
  func.func @transform_0(%arg0: i32, %arg1: i32) -> (i32, i32) {
    %c0_i32 = arith.constant 0 : i32
    return %arg0, %arg1 : i32, i32
  }
  func.func @transform_1(%arg0: i32, %arg1: i32) -> (i32, i32) {
    %c0_i32 = arith.constant 0 : i32
    %c0_i32_0 = arith.constant 0 : i32
    %c0_i32_1 = arith.constant 0 : i32
    return %c0_i32, %c0_i32_0 : i32, i32
  }
  func.func @transform_2(%arg0: i32, %arg1: i32) -> (i32, i32) {
    %c0_i32 = arith.constant 0 : i32
    %c0_i32_0 = arith.constant 0 : i32
    %c0_i32_1 = arith.constant 0 : i32
    return %c0_i32, %c0_i32_0 : i32, i32
  }
  func.func @transform_3(%arg0: i32, %arg1: i32) -> (i32, i32) {
    %c0_i32 = arith.constant 0 : i32
    %c0_i32_0 = arith.constant 0 : i32
    %c0_i32_1 = arith.constant 0 : i32
    return %c0_i32, %c0_i32_0 : i32, i32
  }
  func.func @transform_4(%arg0: i32, %arg1: i32) -> (i32, i32) {
    %c0_i32 = arith.constant 0 : i32
    %c0_i32_0 = arith.constant 0 : i32
    return %arg0, %c0_i32 : i32, i32
  }
}

</mosaic_0001>

<bundles_post_ra>
// kernel: tpu_custom_call.1
= control target key start
LH: loop header
LB: loop body
LE: loop exit
PB: predicated region body
PF: predicated region fallthrough
CT: control target
= control target key end

     0   :  { %9 = vsyncpa [#allocation4], 0  ;;  %s7343_s0 = inlined_call_operand.hbm [shape: bf16[1024,1024], index: 0, kind: input, shape index: {}]   ;;  %s7344_s1 = inlined_call_operand.hbm [shape: bf16[1024,128], index: 1, kind: input, shape index: {}]   ;;  %s7345_s2 = inlined_call_operand.hbm [shape: f32[1,128], index: 2, kind: input, shape index: {}]   ;;  %s7346_s3 = inlined_call_operand.hbm [shape: bf16[128,128], index: 3, kind: input, shape index: {}]   ;;  %s7347_s4 = inlined_call_operand.hbm [shape: bf16[1024,128], index: 4, kind: output, shape index: {}]  }
   0x1   :  { %11 = vsyncpa [#allocation4 + $0x1], 0 }
   0x2   :  { %12 = vsyncpa [#allocation7], 0 }
   0x3   :  { %13 = vsyncpa [#allocation10], 0 }
   0x4   :  { %14 = vsyncpa [#allocation5], 0 }
   0x5   :  { %16 = vsyncpa [#allocation5 + $0x1], 0  ;;  %s6025_s15 = smov 0   ;;  %s6027_s16 = smov 0  }
   0x6   :  { %s6029_s17 = smov 0   ;;  %s6031_s18 = smov 0  }
   0x7   :  { %s6033_s19 = smov 0   ;;  %s6035_s20 = smov 0  }
   0x8 LB: > { %s4784_s21 = sadd.s32 4294967295, %s5986_s20   ;;  %s4785_s22 = sadd.s32 4294967294, %s5986_s20   ;;  %s5986_s20 = sphi %s6035_s20, %s22_s20   ;;  %s5982_s19 = sphi %s6033_s19, %s7458_s19   ;;  %s5978_s18 = sphi %s6031_s18, %s7457_s18   ;;  %s5974_s17 = sphi %s6029_s17, %s7456_s17   ;;  %s5970_s16 = sphi %s6027_s16, %s7455_s16   ;;  %s5966_s15 = sphi %s6025_s15, %s7454_s15  }
   0x9   : > { %p56_p0 = scmp.ne.s32.totalorder %s5970_s16, %s5966_s15  ;;  %p6059_p1 = scmp.eq.s32.totalorder %s4784_s21, 0 }
   0xa   : > { %p6063_p2 = scmp.eq.s32.totalorder %s4784_s21, 1  ;;  %p149_p3 = scmp.eq.s32.totalorder %s4785_s22, 1 }
   0xb   : > { %s7353_s23 = scalar_select %p6059_p1, 1, 0 }
   0xc   : > { %s7354_s24 = scalar_select %p6063_p2, 1, 0 }
   0xd   : > { %p6069_p4 = por %p6059_p1, %p56_p0  ;;  %p4786_p5 = scmp.ge.s32.totalorder %s5986_s20, 1 }
   0xe   : > { %p6074_p6 = por %p149_p3, %p56_p0  ;;  %p156_p7 = scmp.lt.s32.totalorder %s5986_s20, 3 }
   0xf   : > { %s7355_s25 = scalar_select %p6069_p4, 1, 0 }
  0x10   : > { %s7356_s26 = scalar_select %p6074_p6, 1, 0 }
  0x11   : > { %p6079_p8 = pnand %p4786_p5, %p156_p7  ;;  %s5988_s28 = smov [#allocation6]  }
  0x12   : > { %7357 = sst [smem:[#allocation16_spill]] %s7356_s26  ;;  %s168_s29 = sshll.u32 %s5988_s28, 4  ;;  %s6083_s29 = int_to_ptr.vmem [resolvable:$true] %s168_s29 }
  0x13   : > { %s7358_s27 = scalar_select %p6079_p8, 1, 0 }
  0x14   : > { %p5625_p9 = pneg %p6079_p8  ;;  %s5989_s5 = smov [#allocation8]  }
  0x15   : > { %s182_s6 = sshll.u32 %s5989_s5, 4  ;;  %s5990_s7 = smov [#allocation9]   ;;  %s6094_s6 = int_to_ptr.vmem [resolvable:$true] %s182_s6 }
  0x16   : > { %p6090_p11 = pnand %p5625_p9, %p6059_p1  ;;  %s6096_s8 = sshll.u32 %s5990_s7, 4  ;;  %s193_s8 = int_to_ptr.vmem [resolvable:$true] %s6096_s8 }
  0x17   : > { %s5782_s11 = scalar_lea.hbm %s7344_s1, 8192 }
  0x18   : > { %p5783_p12 = scmp.ne.s32.totalorder %s7344_s1, %s5782_s11  ;;  %p6106_p13 = pneg %p6090_p11 }
  0x19   : > { %p5789_p5 = scmp.lt.u32.totalorder %s5782_s11, %s7344_s1 }
  0x1a   : > { %p5785_p0 = pnand %p6106_p13, %p5783_p12 }
  0x1c   : > { %p5786_p3 = pneg %p5785_p0 }
  0x1e   : > { %p5791_p7 = pnand %p5789_p5, %p5786_p3 }
  0x20   : > { %5794 = shalt.err (!%p5791_p7)
}
  0x21   : > { %s5795_s28 = scalar_lea.vmem %s6083_s29, 8192  ;;  %p5803_p1 = scmp.lt.s32.totalorder %s6083_s29, %s6083_s29 }
  0x22   : > { %p5796_p9 = scmp.ne.s32.totalorder %s6083_s29, %s5795_s28  ;;  %p5804_p4 = scmp.lt.s32.totalorder %s5795_s28, %s5795_s28 }
  0x24   : > { %p5798_p10 = pnand %p5796_p9, %p6106_p13  ;;  %p5805_p12 = por %p5804_p4, %p5803_p1 }
  0x26   : > { %p5799_p6 = pneg %p5798_p10 }
  0x28   : > { %p5806_p0 = pnand %p5805_p12, %p5799_p6 }
  0x2a   : > { %5809 = shalt.err (!%p5806_p0)
}
  0x2b   : > { %s5991_s5 = smov 64   ;;  %s5992_s7 = smov 4  }
  0x2c   : > { %5628 = dma.hbm_to_vmem [thread:$0]  (!%p6090_p11), %s7344_s1, 8192, %s6083_s29, [#allocation7], %s5991_s5, %s5991_s5, %s5992_s7  }
  0x2d   : > { %s5810_s13 = scalar_lea.hbm %s7345_s2, 16 }
  0x2e   : > { %p5811_p1 = scmp.ne.s32.totalorder %s7345_s2, %s5810_s13  ;;  %p5817_p10 = scmp.lt.u32.totalorder %s5810_s13, %s7345_s2 }
  0x30   : > { %p5813_p4 = pnand %p5811_p1, %p6106_p13 }
  0x32   : > { %p5814_p6 = pneg %p5813_p4 }
  0x34   : > { %p5819_p3 = pnand %p5817_p10, %p5814_p6 }
  0x36   : > { %5822 = shalt.err (!%p5819_p3)
}
  0x37   : > { %s5823_s29 = scalar_lea.vmem %s6094_s6, 16  ;;  %s5830_s9 = scalar_lea.vmem %s6094_s6, 32 }
  0x38   : > { %p5824_p5 = scmp.ne.s32.totalorder %s6094_s6, %s5823_s29  ;;  %p5831_p12 = scmp.lt.s32.totalorder %s6094_s6, %s6094_s6 }
  0x39   : > { %p5832_p0 = scmp.lt.s32.totalorder %s5830_s9, %s5823_s29 }
  0x3a   : > { %p5826_p7 = pnand %p5824_p5, %p6106_p13 }
  0x3b   : > { %p5833_p1 = por %p5832_p0, %p5831_p12 }
  0x3c   : > { %p5827_p9 = pneg %p5826_p7 }
  0x3e   : > { %p5834_p4 = pnand %p5833_p1, %p5827_p9 }
  0x40   : > { %5837 = shalt.err (!%p5834_p4)
}
  0x41   : > { %5631 = dma.hbm_to_vmem [thread:$0]  (!%p6090_p11), %s7345_s2, 16, %s6094_s6, [#allocation7]  }
  0x42   : > { %s5838_s13 = scalar_lea.hbm %s7346_s3, 1024 }
  0x43   : > { %p5839_p6 = scmp.ne.s32.totalorder %s7346_s3, %s5838_s13  ;;  %p5845_p5 = scmp.lt.u32.totalorder %s5838_s13, %s7346_s3 }
  0x45   : > { %p5841_p10 = pnand %p5839_p6, %p6106_p13 }
  0x47   : > { %p5842_p3 = pneg %p5841_p10 }
  0x49   : > { %p5847_p7 = pnand %p5845_p5, %p5842_p3 }
  0x4b   : > { %5850 = shalt.err (!%p5847_p7)
}
  0x4c   : > { %s5851_s9 = scalar_lea.vmem %s193_s8, 1024  ;;  %p5859_p1 = scmp.lt.s32.totalorder %s193_s8, %s193_s8 }
  0x4d   : > { %p5852_p9 = scmp.ne.s32.totalorder %s193_s8, %s5851_s9  ;;  %p5860_p4 = scmp.lt.s32.totalorder %s5851_s9, %s5851_s9 }
  0x4f   : > { %p5854_p12 = pnand %p5852_p9, %p6106_p13  ;;  %p5861_p8 = por %p5860_p4, %p5859_p1 }
  0x51   : > { %p5855_p0 = pneg %p5854_p12 }
  0x53   : > { %p5862_p2 = pnand %p5861_p8, %p5855_p0 }
  0x55   : > { %5865 = shalt.err (!%p5862_p2)
}
  0x56   : > { %5634 = dma.hbm_to_vmem [thread:$0]  (!%p6090_p11), %s7346_s3, 1024, %s193_s8, [#allocation10], %s5991_s5, %s5991_s5, %s5992_s7  }
  0x57   : > { %s43_s14 = sadd.s32 1, %s5974_s17  ;;  %s34_s30 = sadd.s32 1, %s5982_s19 }
  0x58   : > { %p50_p2 = scmp.ne.s32.totalorder %s5974_s17, %s5970_s16  ;;  %p36_p8 = scmp.ge.s32.totalorder %s34_s30, 2 }
  0x59   : > { %p51_p13 = scmp.eq.s32.totalorder %s5986_s20, 0  ;;  %p7361_p6 = scmp.ne.s32.totalorder %s7354_s24, 0 }
  0x5a   : > { %p5646_p3 = scmp.lt.s32.totalorder %s5986_s20, 2  ;;  %s7460_s30 = smov (%p36_p8, %s34_s30), 0 }
  0x5b   : > { %p6183_p10 = por %p7361_p6, %p50_p2  ;;  %p52_p5 = por %p51_p13, %p50_p2 }
  0x5c   : > { %s206_s11 = sand.u32 1, %s5974_s17   ;;  %s38_s12 = ssub.s32 %s5982_s19, %s7460_s30 }
  0x5d   : > { %p41_p7 = scmp.eq.s32.totalorder %s38_s12, 0  ;;  %s4791_s8 = sshll.u32 %s206_s11, 11 }
  0x5e   : > { %s5200_s5 = sshll.u32 %s5982_s19, 15  ;;  %s210_s22 = scalar_lea.vmem [#allocation3], %s4791_s8 }
  0x5f   : > { %s6195_s7 = scalar_select %p41_p7, %s5974_s17, %s43_s14  }
  0x60   : > { %s6200_s24 = scalar_lea.hbm %s7343_s0, %s5200_s5  ;;  %s220_s28 = sshll.u32 %s210_s22, 4  ;;  %s6202_s28 = int_to_ptr.vmem [resolvable:$true] %s220_s28 }
  0x61   : > { %p6206_p11 = pnand %p5646_p3, %p52_p5  ;;  %s6210_s9 = scalar_lea.sflag [#allocation4], %s206_s11 }
  0x62   : > { %s5866_s6 = scalar_lea.hbm %s6200_s24, 32768  ;;  %s5871_s12 = scalar_lea.hbm %s7343_s0, 65536 }
  0x63   : > { %p5867_p9 = scmp.ne.s32.totalorder %s6200_s24, %s5866_s6  ;;  %p5868_p12 = pneg %p6206_p11 }
  0x64   : > { %p5872_p4 = scmp.lt.u32.totalorder %s6200_s24, %s7343_s0  ;;  %p5873_p2 = scmp.lt.u32.totalorder %s5871_s12, %s5866_s6 }
  0x65   : > { %p5869_p0 = pnand %p5868_p12, %p5867_p9  ;;  %p5875_p13 = scmp.lt.u32.totalorder %s5866_s6, %s6200_s24 }
  0x66   : > { %p5874_p8 = por %p5873_p2, %p5872_p4 }
  0x67   : > { %p5870_p1 = pneg %p5869_p0 }
  0x68   : > { %p5876_p6 = por %p5875_p13, %p5874_p8 }
  0x6a   : > { %p5877_p3 = pnand %p5876_p6, %p5870_p1 }
  0x6c   : > { %5880 = shalt.err (!%p5877_p3)
}
  0x6d   : > { %s5881_s11 = scalar_lea.vmem %s6202_s28, 32768  ;;  %s5993_s13 = smov [#allocation3]  }
  0x6e   : > { %p5882_p5 = scmp.ne.s32.totalorder %s6202_s28, %s5881_s11  ;;  %s5886_s21 = sshll.u32 %s5993_s13, 4  ;;  %s5887_s21 = int_to_ptr.vmem [resolvable:$false] %s5886_s21 }
  0x6f   : > { %s5888_s22 = scalar_lea.vmem %s5887_s21, 65536  ;;  %p5889_p0 = scmp.lt.s32.totalorder %s6202_s28, %s5887_s21 }
  0x70   : > { %p5884_p7 = pnand %p5882_p5, %p5868_p12  ;;  %p5890_p4 = scmp.lt.s32.totalorder %s5888_s22, %s5881_s11 }
  0x72   : > { %p5885_p9 = pneg %p5884_p7  ;;  %p5891_p2 = por %p5890_p4, %p5889_p0 }
  0x74   : > { %p5892_p8 = pnand %p5891_p2, %p5885_p9 }
  0x76   : > { %5895 = shalt.err (!%p5892_p8)
}
  0x77   : > { %s5994_s6 = smov 512   ;;  %s5995_s26 = smov 32  }
  0x78   : > { %5638 = dma.hbm_to_vmem [thread:$0]  (!%p6206_p11), %s6200_s24, 32768, %s6202_s28, %s6210_s9, %s5994_s6, %s5994_s6, %s5995_s26  }
  0x79   : > { %p7364_p12 = scmp.ne.s32.totalorder %s7358_s27, 0 }
  0x7b   : > { %232 = sbr.rel (%p7364_p12) target bundleno = 1226 (0x4ca), region = 36 }
  0x82   : > { %s6241_s14 = sand.u32 1, %s5970_s16   ;;  %p7365_p1 = scmp.ne.s32.totalorder %s7355_s25, 0 }
  0x83   : > { %s4796_s12 = sshll.u32 %s6241_s14, 11  ;;  %s235_s8 = scalar_lea.sflag [#allocation4], %s6241_s14 }
  0x84   : > { %s6245_s5 = scalar_lea.vmem [#allocation3], %s4796_s12 }
  0x85   : > { %5949 = dma.done.wait (%p7365_p1), %s235_s8, 32768  }
  0x86   : > { %5951 = vsyncadd (%p7365_p1), %s235_s8, 4294934528  ;;  %p7366_p11 = scmp.ne.s32.totalorder %s7353_s23, 0 }
  0x88   : > { %5953 = dma.done.wait (%p7366_p11), [#allocation7], 8208  }
  0x89   : > { %5955 = vsyncadd (%p7366_p11), [#allocation7], 4294959088 }
  0x8a   : > { %5957 = dma.done.wait (%p7366_p11), [#allocation10], 1024  }
  0x8b   : > { %5959 = vsyncadd (%p7366_p11), [#allocation10], 4294966272  ;;  %v5996_v0 = vmov 0   ;;  %v5709_v1 = vld [vmem:[#allocation6] sm:$0xff]   ;;  %v5710_v2 = vld [vmem:[#allocation6 + $0x8] sm:$0xff]   ;;  %s4800_s23 = sshll.u32 %s6241_s14, 8 }
  0x8c   : > { %2464 = vmatprep.subr.bf16.mxu0 %v5996_v0  ;;  %5577 = vmatprep.subr.bf16.mxu1 %v5996_v0  ;;  %v5711_v3 = vld [vmem:[#allocation6 + $0x10] sm:$0xff]   ;;  %v5712_v4 = vld [vmem:[#allocation6 + $0x18] sm:$0xff]   ;;  %v5713_v5 = vld [vmem:[#allocation6 + $0x20] sm:$0xff]   ;;  %s7244_s25 = scalar_lea.vmem [#allocation11], %s4800_s23  ;;  %s5265_s27 = sshll.u32 %s5978_s18, 12 }
  0x8d   : > { %2465 = vmatpush1.bf16.msra.mxu0 %v5709_v1  ;;  %5593 = vmatpush1.bf16.msra.mxu1 %v5709_v1  ;;  %v6270_v6 = vld [vmem:[%s6245_s5] sm:$0xff]  ;;  %v5714_v11 = vld [vmem:[#allocation6 + $0x28] sm:$0xff]   ;;  %v5715_v13 = vld [vmem:[#allocation6 + $0x30] sm:$0xff]   ;;  %s4669_s24 = sshll.u32 %s7244_s25, 4  ;;  %s7290_s9 = scalar_lea.hbm %s7347_s4, %s5265_s27  ;;  %s7292_s24 = int_to_ptr.vmem [resolvable:$true] %s4669_s24 }
  0x8e   : > { %2466 = vmatprep.subr.bf16.mxu0 %v5996_v0  ;;  %5578 = vmatprep.subr.bf16.mxu1 %v5996_v0  ;;  %v6273_v7 = vld [vmem:[%s6245_s5 + $0x20] sm:$0xff]  ;;  %v5716_v14 = vld [vmem:[#allocation6 + $0x38] sm:$0xff]   ;;  %v5718_v16 = vld [vmem:[#allocation6 + $0x48] sm:$0xff]   ;;  %s4656_s11 = scalar_lea.sflag [#allocation5], %s6241_s14  ;;  %s5896_s18 = scalar_lea.vmem %s7292_s24, 4096 }
  0x8f   : > { %v6276_v8 = vld [vmem:[%s6245_s5 + $0x600] sm:$0xff]  ;;  %v4802_v9 = vcombine.high %v6270_v6, %v6273_v7  ;;  %v5719_v17 = vld [vmem:[#allocation6 + $0x50] sm:$0xff]   ;;  %v5720_v18 = vld [vmem:[#allocation6 + $0x58] sm:$0xff]   ;;  %v4801_v28 = vcombine.low %v6270_v6, %v6273_v7  ;;  %p5897_p13 = scmp.ne.s32.totalorder %s7292_s24, %s5896_s18  ;;  %s5997_s13 = smov [#allocation11]  }
  0x90   : > { %v6281_v10 = vld [vmem:[%s6245_s5 + $0x620] sm:$0xff]  ;;  %v5722_v20 = vld [vmem:[#allocation6 + $0x68] sm:$0xff]   ;;  %v5723_v21 = vld [vmem:[#allocation6 + $0x70] sm:$0xff]   ;;  %s5900_s21 = sshll.u32 %s5997_s13, 4  ;;  %s5901_s21 = int_to_ptr.vmem [resolvable:$false] %s5900_s21 }
  0x91   : > { %2467 = vmatpush1.bf16.msra.mxu0 %v5710_v2  ;;  %5594 = vmatpush1.bf16.msra.mxu1 %v5710_v2  ;;  %v4994_v12 = vcombine.high %v6276_v8, %v6281_v10  ;;  %v5717_v15 = vld [vmem:[#allocation6 + $0x40] sm:$0xff]   ;;  %v5724_v22 = vld [vmem:[#allocation6 + $0x78] sm:$0xff]   ;;  %v4993_v29 = vcombine.low %v6276_v8, %v6281_v10  ;;  %v5726_v33 = vld [vmem:[#allocation6 + $0x88] sm:$0xff]   ;;  %p5898_p6 = pnand %p5897_p13, %p6183_p10  ;;  %s5902_s22 = scalar_lea.vmem %s5901_s21, 8192 }
  0x92   : > { %2468 = vmatprep.subr.bf16.mxu0 %v5996_v0  ;;  %5579 = vmatprep.subr.bf16.mxu1 %v5996_v0  ;;  %v5721_v19 = vld [vmem:[#allocation6 + $0x60] sm:$0xff]   ;;  %v5747_v38 = vld [vmem:[#allocation6 + $0x108] sm:$0xff]   ;;  %v5727_v39 = vld [vmem:[#allocation6 + $0x90] sm:$0xff]   ;;  %p5903_p5 = scmp.lt.s32.totalorder %s7292_s24, %s5901_s21  ;;  %p5904_p7 = scmp.lt.s32.totalorder %s5902_s22, %s5896_s18 }
  0x93   : > { %2496 = vmatprep.mubr.bf16.mxu0 %v4802_v9  ;;  %2688 = vmatprep.mubr.bf16.mxu1 %v4994_v12  ;;  %v420_v23 = vld [vmem:[%s6245_s5 + $0x40] sm:$0xff]  ;;  %v5728_v44 = vld [vmem:[#allocation6 + $0x98] sm:$0xff]   ;;  %v5748_v47 = vld [vmem:[#allocation6 + $0x110] sm:$0xff]   ;;  %p5899_p3 = pneg %p5898_p6 }
  0x94   : > { %v424_v24 = vld [vmem:[%s6245_s5 + $0x60] sm:$0xff]  ;;  %v5749_v55 = vld [vmem:[#allocation6 + $0x118] sm:$0xff]   ;;  %v5730_v56 = vld [vmem:[#allocation6 + $0xa8] sm:$0xff]   ;;  %p5905_p9 = por %p5904_p7, %p5903_p5 }
  0x95   : > { %2469 = vmatpush1.bf16.msra.mxu0 %v5711_v3  ;;  %5595 = vmatpush1.bf16.msra.mxu1 %v5711_v3  ;;  %v612_v25 = vld [vmem:[%s6245_s5 + $0x640] sm:$0xff]  ;;  %v4810_v30 = vcombine.high %v420_v23, %v424_v24  ;;  %v4809_v40 = vcombine.low %v420_v23, %v424_v24  ;;  %v5731_v62 = vld [vmem:[#allocation6 + $0xb0] sm:$0xff]  }
  0x96   : > { %2470 = vmatprep.subr.bf16.mxu0 %v5996_v0  ;;  %5580 = vmatprep.subr.bf16.mxu1 %v5996_v0  ;;  %v616_v26 = vld [vmem:[%s6245_s5 + $0x660] sm:$0xff]  ;;  %v5735_v24 = vld [vmem:[#allocation6 + $0xd0] sm:$0xff]   ;;  %p5906_p0 = pnand %p5905_p9, %p5899_p3 }
  0x97   : > { %v5725_v27 = vld [vmem:[#allocation6 + $0x80] sm:$0xff]   ;;  %v5002_v32 = vcombine.high %v612_v25, %v616_v26  ;;  %v5001_v41 = vcombine.low %v612_v25, %v616_v26 }
  0x98   : > { %v5745_v31 = vld [vmem:[#allocation6 + $0x100] sm:$0xff]  }
  0x99   : > { %2471 = vmatpush1.bf16.msra.mxu0 %v5712_v4  ;;  %5596 = vmatpush1.bf16.msra.mxu1 %v5712_v4  ;;  %v428_v34 = vld [vmem:[%s6245_s5 + $0x80] sm:$0xff]  ;;  %v5752_v4 = vld [vmem:[#allocation6 + $0x128] sm:$0xff]  }
  0x9a   : > { %2472 = vmatprep.subr.bf16.mxu0 %v5996_v0  ;;  %5581 = vmatprep.subr.bf16.mxu1 %v5996_v0  ;;  %v432_v35 = vld [vmem:[%s6245_s5 + $0xa0] sm:$0xff] }
  0x9b   : > { %v620_v36 = vld [vmem:[%s6245_s5 + $0x680] sm:$0xff]  ;;  %v4818_v42 = vcombine.high %v428_v34, %v432_v35  ;;  %v4817_v51 = vcombine.low %v428_v34, %v432_v35 }
  0x9c   : > { %v624_v37 = vld [vmem:[%s6245_s5 + $0x6a0] sm:$0xff] }
  0x9d   : > { %2473 = vmatpush1.bf16.msra.mxu0 %v5713_v5  ;;  %5597 = vmatpush1.bf16.msra.mxu1 %v5713_v5  ;;  %v5010_v43 = vcombine.high %v620_v36, %v624_v37  ;;  %v436_v45 = vld [vmem:[%s6245_s5 + $0xc0] sm:$0xff]  ;;  %v5009_v52 = vcombine.low %v620_v36, %v624_v37  ;;  %v5732_v5 = vld [vmem:[#allocation6 + $0xb8] sm:$0xff]  }
  0x9e   : > { %2474 = vmatprep.subr.bf16.mxu0 %v5996_v0  ;;  %5582 = vmatprep.subr.bf16.mxu1 %v5996_v0  ;;  %v440_v46 = vld [vmem:[%s6245_s5 + $0xe0] sm:$0xff] }
  0x9f   : > { %v628_v48 = vld [vmem:[%s6245_s5 + $0x6c0] sm:$0xff]  ;;  %v4826_v53 = vcombine.high %v436_v45, %v440_v46  ;;  %v4825_v63 = vcombine.low %v436_v45, %v440_v46 }
  0xa0   : > { %v632_v49 = vld [vmem:[%s6245_s5 + $0x6e0] sm:$0xff] }
  0xa1   : > { %2475 = vmatpush1.bf16.msra.mxu0 %v5714_v11  ;;  %5598 = vmatpush1.bf16.msra.mxu1 %v5714_v11  ;;  %v5729_v50 = vld [vmem:[#allocation6 + $0xa0] sm:$0xff]   ;;  %v5018_v54 = vcombine.high %v628_v48, %v632_v49  ;;  %v5017_v1 = vcombine.low %v628_v48, %v632_v49 }
  0xa2   : > { %2476 = vmatprep.subr.bf16.mxu0 %v5996_v0  ;;  %5583 = vmatprep.subr.bf16.mxu1 %v5996_v0  ;;  %v444_v57 = vld [vmem:[%s6245_s5 + $0x100] sm:$0xff] }
  0xa3   : > { %v448_v58 = vld [vmem:[%s6245_s5 + $0x120] sm:$0xff] }
  0xa4   : > { %v636_v59 = vld [vmem:[%s6245_s5 + $0x700] sm:$0xff]  ;;  %v4834_v2 = vcombine.high %v444_v57, %v448_v58  ;;  %v4833_v10 = vcombine.low %v444_v57, %v448_v58 }
  0xa5   : > { %2477 = vmatpush1.bf16.msra.mxu0 %v5715_v13  ;;  %5599 = vmatpush1.bf16.msra.mxu1 %v5715_v13  ;;  %v640_v60 = vld [vmem:[%s6245_s5 + $0x720] sm:$0xff] }
  0xa6   : > { %2478 = vmatprep.subr.bf16.mxu0 %v5996_v0  ;;  %5584 = vmatprep.subr.bf16.mxu1 %v5996_v0  ;;  %v5750_v61 = vld [vmem:[#allocation6 + $0x120] sm:$0xff]   ;;  %v5026_v3 = vcombine.high %v636_v59, %v640_v60  ;;  %v5025_v11 = vcombine.low %v636_v59, %v640_v60 }
  0xa7   : > { %v452_v6 = vld [vmem:[%s6245_s5 + $0x140] sm:$0xff] }
  0xa8   : > { %v456_v7 = vld [vmem:[%s6245_s5 + $0x160] sm:$0xff] }
  0xa9   : > { %2479 = vmatpush1.bf16.msra.mxu0 %v5716_v14  ;;  %5600 = vmatpush1.bf16.msra.mxu1 %v5716_v14  ;;  %v644_v8 = vld [vmem:[%s6245_s5 + $0x740] sm:$0xff]  ;;  %v4842_v13 = vcombine.high %v452_v6, %v456_v7 }
  0xaa   : > { %2480 = vmatprep.subr.bf16.mxu0 %v5996_v0  ;;  %5585 = vmatprep.subr.bf16.mxu1 %v5996_v0  ;;  %v648_v9 = vld [vmem:[%s6245_s5 + $0x760] sm:$0xff] }
  0xab   : > { %v5733_v12 = vld [vmem:[#allocation6 + $0xc0] sm:$0xff]   ;;  %v5034_v14 = vcombine.high %v644_v8, %v648_v9  ;;  %v5033_v23 = vcombine.low %v644_v8, %v648_v9  ;;  %v5743_v9 = vld [vmem:[#allocation6 + $0x190] sm:$0xff]  }
  0xac   : > { %v5737_v35 = vld [vmem:[#allocation6 + $0xe0] sm:$0xff]  }
  0xad   : > { %2481 = vmatpush1.bf16.msra.mxu0 %v5717_v15  ;;  %5601 = vmatpush1.bf16.msra.mxu1 %v5717_v15  ;;  %v5753_v15 = vld [vmem:[#allocation6 + $0x130] sm:$0xff]   ;;  %v5741_v58 = vld [vmem:[#allocation6 + $0x180] sm:$0xff]  }
  0xae   : > { %2482 = vmatprep.subr.bf16.mxu0 %v5996_v0  ;;  %5586 = vmatprep.subr.bf16.mxu1 %v5996_v0 }
  0xb1   : > { %2483 = vmatpush1.bf16.msra.mxu0 %v5718_v16  ;;  %5602 = vmatpush1.bf16.msra.mxu1 %v5718_v16  ;;  %v5734_v16 = vld [vmem:[#allocation6 + $0xc8] sm:$0xff]  }
  0xb2   : > { %2484 = vmatprep.subr.bf16.mxu0 %v5996_v0  ;;  %5587 = vmatprep.subr.bf16.mxu1 %v5996_v0 }
  0xb5   : > { %2485 = vmatpush1.bf16.msra.mxu0 %v5719_v17  ;;  %5603 = vmatpush1.bf16.msra.mxu1 %v5719_v17  ;;  %v460_v17 = vld [vmem:[%s6245_s5 + $0x180] sm:$0xff] }
  0xb6   : > { %2486 = vmatprep.subr.bf16.mxu0 %v5996_v0  ;;  %5588 = vmatprep.subr.bf16.mxu1 %v5996_v0 }
  0xb9   : > { %2487 = vmatpush1.bf16.msra.mxu0 %v5720_v18  ;;  %5604 = vmatpush1.bf16.msra.mxu1 %v5720_v18  ;;  %v464_v18 = vld [vmem:[%s6245_s5 + $0x1a0] sm:$0xff] }
  0xba   : > { %2488 = vmatprep.subr.bf16.mxu0 %v5996_v0  ;;  %5589 = vmatprep.subr.bf16.mxu1 %v5996_v0  ;;  %v4850_v25 = vcombine.high %v460_v17, %v464_v18 }
  0xbd   : > { %2489 = vmatpush1.bf16.msra.mxu0 %v5721_v19  ;;  %5605 = vmatpush1.bf16.msra.mxu1 %v5721_v19  ;;  %v652_v19 = vld [vmem:[%s6245_s5 + $0x780] sm:$0xff] }
  0xbe   : > { %2490 = vmatprep.subr.bf16.mxu0 %v5996_v0  ;;  %5590 = vmatprep.subr.bf16.mxu1 %v5996_v0 }
  0xc1   : > { %2491 = vmatpush1.bf16.msra.mxu0 %v5722_v20  ;;  %5606 = vmatpush1.bf16.msra.mxu1 %v5722_v20  ;;  %v656_v20 = vld [vmem:[%s6245_s5 + $0x7a0] sm:$0xff] }
  0xc2   : > { %2492 = vmatprep.subr.bf16.mxu0 %v5996_v0  ;;  %5591 = vmatprep.subr.bf16.mxu1 %v5996_v0  ;;  %v5042_v26 = vcombine.high %v652_v19, %v656_v20  ;;  %v5041_v34 = vcombine.low %v652_v19, %v656_v20 }
  0xc5   : > { %2493 = vmatpush1.bf16.msra.mxu0 %v5723_v21  ;;  %5607 = vmatpush1.bf16.msra.mxu1 %v5723_v21  ;;  %v5754_v21 = vld [vmem:[#allocation6 + $0x138] sm:$0xff]  }
  0xc6   : > { %2494 = vmatprep.subr.bf16.mxu0 %v5996_v0  ;;  %5592 = vmatprep.subr.bf16.mxu1 %v5996_v0 }
  0xc9   : > { %2495 = vmatpush1.bf16.msra.mxu0 %v5724_v22  ;;  %5608 = vmatpush1.bf16.msra.mxu1 %v5724_v22  ;;  %v4841_v22 = vcombine.low %v452_v6, %v456_v7 }
  0xca   : > { %2753 = vmatprep.subr.bf16.mxu1 %v5996_v0  ;;  %3042 = vmatprep.subr.bf16.mxu0 %v5996_v0 }
  0xcc   : > { %2497 = vmatmul.mubr.bf16.vlgmr.msra.gmra.mrb[0].mxu0 %v4801_v28  ;;  %2689 = vmatmul.mubr.bf16.vlgmr.msra.gmra.mrb[0].mxu1 %v4993_v29  ;;  %v5736_v28 = vld [vmem:[#allocation6 + $0xd8] sm:$0xff]   ;;  %v468_v29 = vld [vmem:[%s6245_s5 + $0x1c0] sm:$0xff] }
  0xcd   : > { %2754 = vmatpush1.bf16.msra.mxu1 %v5725_v27  ;;  %2504 = vmatprep.mubr.bf16.mxu0 %v4810_v30  ;;  %v5755_v27 = vld [vmem:[#allocation6 + $0x140] sm:$0xff]  }
  0xce   : > { %2755 = vmatprep.subr.bf16.mxu1 %v5996_v0  ;;  %2696 = vmatprep.mubr.bf16.mxu1 %v5002_v32  ;;  %v472_v30 = vld [vmem:[%s6245_s5 + $0x1e0] sm:$0xff] }
  0xcf   : > { %3043 = vmatpush1.bf16.msra.mxu0 %v5745_v31  ;;  %v660_v31 = vld [vmem:[%s6245_s5 + $0x7c0] sm:$0xff]  ;;  %v4858_v36 = vcombine.high %v468_v29, %v472_v30  ;;  %v4857_v45 = vcombine.low %v468_v29, %v472_v30 }
  0xd0   : > { %3044 = vmatprep.subr.bf16.mxu0 %v5996_v0  ;;  %v664_v32 = vld [vmem:[%s6245_s5 + $0x7e0] sm:$0xff] }
  0xd1   : > { %2756 = vmatpush1.bf16.msra.mxu1 %v5726_v33  ;;  %v4849_v33 = vcombine.low %v460_v17, %v464_v18  ;;  %v5050_v37 = vcombine.high %v660_v31, %v664_v32  ;;  %v5049_v46 = vcombine.low %v660_v31, %v664_v32  ;;  %v5756_v31 = vld [vmem:[#allocation6 + $0x1b0] sm:$0xff]   ;;  %v516_v32 = vld [vmem:[%s6245_s5 + $0x340] sm:$0xff] }
  0xd2   : > { %2757 = vmatprep.subr.bf16.mxu1 %v5996_v0 }
  0xd3   : > { %3045 = vmatpush1.bf16.msra.mxu0 %v5747_v38  ;;  %v5757_v38 = vld [vmem:[#allocation6 + $0x148] sm:$0xff]  }
  0xd4   : > { %2505 = vmatmul.mubr.bf16.gmra.mrb[4].mxu0 %v4809_v40  ;;  %2697 = vmatmul.mubr.bf16.gmra.mrb[4].mxu1 %v5001_v41  ;;  %v476_v40 = vld [vmem:[%s6245_s5 + $0x200] sm:$0xff] }
  0xd5   : > { %2758 = vmatpush1.bf16.msra.mxu1 %v5727_v39  ;;  %2512 = vmatprep.mubr.bf16.mxu0 %v4818_v42  ;;  %v5738_v39 = vld [vmem:[#allocation6 + $0xe8] sm:$0xff]   ;;  %v480_v41 = vld [vmem:[%s6245_s5 + $0x220] sm:$0xff] }
  0xd6   : > { %2759 = vmatprep.subr.bf16.mxu1 %v5996_v0  ;;  %2704 = vmatprep.mubr.bf16.mxu1 %v5010_v43  ;;  %v413_v42 = vld [vmem:[%s6245_s5 + $0x8] sm:$0xff]  ;;  %v4866_v48 = vcombine.high %v476_v40, %v480_v41  ;;  %v4865_v57 = vcombine.low %v476_v40, %v480_v41  ;;  %v5765_v41 = vld [vmem:[#allocation6 + $0x1c0] sm:$0xff]  }
  0xd7   : > { %3046 = vmatprep.subr.bf16.mxu0 %v5996_v0  ;;  %v417_v43 = vld [vmem:[%s6245_s5 + $0x28] sm:$0xff] }
  0xd8   : > { %3047 = vmatpush1.bf16.msra.mxu0 %v5748_v47  ;;  %v5739_v47 = vld [vmem:[#allocation6 + $0xf0] sm:$0xff]   ;;  %v4804_v49 = vcombine.high %v413_v42, %v417_v43 }
  0xd9   : > { %2760 = vmatpush1.bf16.msra.mxu1 %v5728_v44  ;;  %3048 = vmatprep.subr.bf16.mxu0 %v5996_v0  ;;  %v5758_v44 = vld [vmem:[#allocation6 + $0x150] sm:$0xff]  }
  0xda   : > { %2761 = vmatprep.subr.bf16.mxu1 %v5996_v0 }
  0xdc   : > { %2513 = vmatmul.mubr.bf16.gmra.mrb[8].mxu0 %v4817_v51  ;;  %2705 = vmatmul.mubr.bf16.gmra.mrb[8].mxu1 %v5009_v52  ;;  %v5740_v51 = vld [vmem:[#allocation6 + $0xf8] sm:$0xff]   ;;  %v484_v52 = vld [vmem:[%s6245_s5 + $0x240] sm:$0xff] }
  0xdd   : > { %2762 = vmatpush1.bf16.msra.mxu1 %v5729_v50  ;;  %2520 = vmatprep.mubr.bf16.mxu0 %v4826_v53  ;;  %v5759_v50 = vld [vmem:[#allocation6 + $0x158] sm:$0xff]   ;;  %v488_v53 = vld [vmem:[%s6245_s5 + $0x260] sm:$0xff] }
  0xde   : > { %2763 = vmatprep.subr.bf16.mxu1 %v5996_v0  ;;  %2712 = vmatprep.mubr.bf16.mxu1 %v5018_v54  ;;  %v421_v54 = vld [vmem:[%s6245_s5 + $0x48] sm:$0xff]  ;;  %v4874_v59 = vcombine.high %v484_v52, %v488_v53 }
  0xdf   : > { %3049 = vmatpush1.bf16.msra.mxu0 %v5749_v55  ;;  %v425_v55 = vld [vmem:[%s6245_s5 + $0x68] sm:$0xff] }
  0xe0   : > { %3050 = vmatprep.subr.bf16.mxu0 %v5996_v0  ;;  %v4812_v60 = vcombine.high %v421_v54, %v425_v55  ;;  %v4811_v6 = vcombine.low %v421_v54, %v425_v55  ;;  %v469_v54 = vld [vmem:[%s6245_s5 + $0x1c8] sm:$0xff] }
  0xe1   : > { %2764 = vmatpush1.bf16.msra.mxu1 %v5730_v56  ;;  %v4803_v56 = vcombine.low %v413_v42, %v417_v43  ;;  %v524_v42 = vld [vmem:[%s6245_s5 + $0x380] sm:$0xff]  ;;  %v473_v55 = vld [vmem:[%s6245_s5 + $0x1e8] sm:$0xff] }
  0xe2   : > { %2765 = vmatprep.subr.bf16.mxu1 %v5996_v0  ;;  %v528_v43 = vld [vmem:[%s6245_s5 + $0x3a0] sm:$0xff] }
  0xe3   : > { %3051 = vmatpush1.bf16.msra.mxu0 %v5750_v61  ;;  %v5760_v61 = vld [vmem:[#allocation6 + $0x160] sm:$0xff]  }
  0xe4   : > { %2521 = vmatmul.mubr.bf16.gmra.mrb[12].mxu0 %v4825_v63  ;;  %2713 = vmatmul.mubr.bf16.gmra.mrb[12].mxu1 %v5017_v1  ;;  %v5742_v63 = vld [vmem:[#allocation6 + $0x188] sm:$0xff]   ;;  %v496_v1 = vld [vmem:[%s6245_s5 + $0x2a0] sm:$0xff] }
  0xe5   : > { %2766 = vmatpush1.bf16.msra.mxu1 %v5731_v62  ;;  %2528 = vmatprep.mubr.bf16.mxu0 %v4834_v2  ;;  %v492_v62 = vld [vmem:[%s6245_s5 + $0x280] sm:$0xff]  ;;  %v429_v2 = vld [vmem:[%s6245_s5 + $0x88] sm:$0xff] }
  0xe6   : > { %2767 = vmatprep.subr.bf16.mxu1 %v5996_v0  ;;  %2720 = vmatprep.mubr.bf16.mxu1 %v5026_v3  ;;  %v433_v3 = vld [vmem:[%s6245_s5 + $0xa8] sm:$0xff]  ;;  %v4882_v7 = vcombine.high %v492_v62, %v496_v1  ;;  %v4881_v17 = vcombine.low %v492_v62, %v496_v1  ;;  %v544_v62 = vld [vmem:[%s6245_s5 + $0x420] sm:$0xff] }
  0xe7   : > { %3052 = vmatprep.subr.bf16.mxu0 %v5996_v0  ;;  %v4820_v8 = vcombine.high %v429_v2, %v433_v3  ;;  %v4819_v18 = vcombine.low %v429_v2, %v433_v3  ;;  %v481_v1 = vld [vmem:[%s6245_s5 + $0x228] sm:$0xff]  ;;  %v4859_v3 = vcombine.low %v469_v54, %v473_v55 }
  0xe8   : > { %3053 = vmatpush1.bf16.msra.mxu0 %v5752_v4  ;;  %v5762_v4 = vld [vmem:[#allocation6 + $0x168] sm:$0xff]  }
  0xe9   : > { %2768 = vmatpush1.bf16.msra.mxu1 %v5732_v5  ;;  %3054 = vmatprep.subr.bf16.mxu0 %v5996_v0  ;;  %v4873_v5 = vcombine.low %v484_v52, %v488_v53  ;;  %v532_v52 = vld [vmem:[%s6245_s5 + $0x3c0] sm:$0xff] }
  0xea   : > { %2769 = vmatprep.subr.bf16.mxu1 %v5996_v0  ;;  %v536_v53 = vld [vmem:[%s6245_s5 + $0x3e0] sm:$0xff] }
  0xeb   : > { %v4921_v2 = vcombine.low %v532_v52, %v536_v53 }
  0xec   : > { %2529 = vmatmul.mubr.bf16.gmra.mrb[16].mxu0 %v4833_v10  ;;  %2721 = vmatmul.mubr.bf16.gmra.mrb[16].mxu1 %v5025_v11  ;;  %v5763_v10 = vld [vmem:[#allocation6 + $0x170] sm:$0xff]   ;;  %v500_v11 = vld [vmem:[%s6245_s5 + $0x2c0] sm:$0xff] }
  0xed   : > { %2770 = vmatpush1.bf16.msra.mxu1 %v5733_v12  ;;  %2536 = vmatprep.mubr.bf16.mxu0 %v4842_v13  ;;  %v504_v12 = vld [vmem:[%s6245_s5 + $0x2e0] sm:$0xff]  ;;  %v437_v13 = vld [vmem:[%s6245_s5 + $0xc8] sm:$0xff] }
  0xee   : > { %2771 = vmatprep.subr.bf16.mxu1 %v5996_v0  ;;  %2728 = vmatprep.mubr.bf16.mxu1 %v5034_v14  ;;  %v441_v14 = vld [vmem:[%s6245_s5 + $0xe8] sm:$0xff]  ;;  %v4890_v19 = vcombine.high %v500_v11, %v504_v12 }
  0xef   : > { %3055 = vmatpush1.bf16.msra.mxu0 %v5753_v15  ;;  %v5744_v15 = vld [vmem:[#allocation6 + $0x198] sm:$0xff]   ;;  %v4828_v20 = vcombine.high %v437_v13, %v441_v14 }
  0xf0   : > { %3056 = vmatprep.subr.bf16.mxu0 %v5996_v0 }
  0xf1   : > { %2772 = vmatpush1.bf16.msra.mxu1 %v5734_v16  ;;  %v5764_v16 = vld [vmem:[#allocation6 + $0x178] sm:$0xff]  }
  0xf2   : > { %2773 = vmatprep.subr.bf16.mxu1 %v5996_v0 }
  0xf3   : > { %3057 = vmatpush1.bf16.msra.mxu0 %v5754_v21  ;;  %v5746_v21 = vld [vmem:[#allocation6 + $0x1a0] sm:$0xff]  }
  0xf4   : > { %2537 = vmatmul.mubr.bf16.gmra.mrb[20].mxu0 %v4841_v22  ;;  %2729 = vmatmul.mubr.bf16.gmra.mrb[20].mxu1 %v5033_v23  ;;  %v508_v22 = vld [vmem:[%s6245_s5 + $0x300] sm:$0xff] }
  0xf5   : > { %2774 = vmatpush1.bf16.msra.mxu1 %v5735_v24  ;;  %2544 = vmatprep.mubr.bf16.mxu0 %v4850_v25  ;;  %v512_v23 = vld [vmem:[%s6245_s5 + $0x320] sm:$0xff]  ;;  %v445_v24 = vld [vmem:[%s6245_s5 + $0x108] sm:$0xff] }
  0xf6   : > { %2775 = vmatprep.subr.bf16.mxu1 %v5996_v0  ;;  %2736 = vmatprep.mubr.bf16.mxu1 %v5042_v26  ;;  %v449_v25 = vld [vmem:[%s6245_s5 + $0x128] sm:$0xff]  ;;  %v4898_v29 = vcombine.high %v508_v22, %v512_v23 }
  0xf7   : > { %3058 = vmatprep.subr.bf16.mxu0 %v5996_v0  ;;  %v5751_v26 = vld [vmem:[#allocation6 + $0x1a8] sm:$0xff]   ;;  %v4836_v30 = vcombine.high %v445_v24, %v449_v25 }
  0xf8   : > { %3059 = vmatpush1.bf16.msra.mxu0 %v5755_v27  ;;  %v4889_v27 = vcombine.low %v500_v11, %v504_v12 }
  0xf9   : > { %2776 = vmatpush1.bf16.msra.mxu1 %v5736_v28  ;;  %3060 = vmatprep.subr.bf16.mxu0 %v5996_v0  ;;  %v4827_v28 = vcombine.low %v437_v13, %v441_v14  ;;  %v5769_v14 = vld [vmem:[#allocation6 + $0x1e0] sm:$0xff]  }
  0xfa   : > { %2777 = vmatprep.subr.bf16.mxu1 %v5996_v0 }
  0xfc   : > { %2545 = vmatmul.mubr.bf16.gmra.mrb[24].mxu0 %v4849_v33  ;;  %2737 = vmatmul.mubr.bf16.gmra.mrb[24].mxu1 %v5041_v34  ;;  %v520_v33 = vld [vmem:[%s6245_s5 + $0x360] sm:$0xff]  ;;  %v453_v34 = vld [vmem:[%s6245_s5 + $0x148] sm:$0xff] }
  0xfd   : > { %2778 = vmatpush1.bf16.msra.mxu1 %v5737_v35  ;;  %2552 = vmatprep.mubr.bf16.mxu0 %v4858_v36  ;;  %v457_v35 = vld [vmem:[%s6245_s5 + $0x168] sm:$0xff]  ;;  %v5761_v36 = vld [vmem:[#allocation6 + $0x1b8] sm:$0xff]  }
  0xfe   : > { %2779 = vmatprep.subr.bf16.mxu1 %v5996_v0  ;;  %2744 = vmatprep.mubr.bf16.mxu1 %v5050_v37  ;;  %v4897_v37 = vcombine.low %v508_v22, %v512_v23  ;;  %v4844_v40 = vcombine.high %v453_v34, %v457_v35  ;;  %v564_v23 = vld [vmem:[%s6245_s5 + $0x4c0] sm:$0xff] }
  0xff   : > { %3061 = vmatpush1.bf16.msra.mxu0 %v5757_v38  ;;  %v4835_v38 = vcombine.low %v445_v24, %v449_v25  ;;  %v568_v24 = vld [vmem:[%s6245_s5 + $0x4e0] sm:$0xff]  ;;  %v501_v25 = vld [vmem:[%s6245_s5 + $0x2c8] sm:$0xff] }
 0x100   : > { %3062 = vmatprep.subr.bf16.mxu0 %v5996_v0 }
 0x101   : > { %2780 = vmatpush1.bf16.msra.mxu1 %v5738_v39  ;;  %v4906_v39 = vcombine.high %v516_v32, %v520_v33 }
 0x102   : > { %2781 = vmatprep.subr.bf16.mxu1 %v5996_v0 }
 0x103   : > { %3063 = vmatpush1.bf16.msra.mxu0 %v5758_v44  ;;  %v461_v44 = vld [vmem:[%s6245_s5 + $0x188] sm:$0xff] }
 0x104   : > { %2553 = vmatmul.mubr.bf16.gmra.mrb[28].mxu0 %v4857_v45  ;;  %2745 = vmatmul.mubr.bf16.gmra.mrb[28].mxu1 %v5049_v46  ;;  %v465_v45 = vld [vmem:[%s6245_s5 + $0x1a8] sm:$0xff] }
 0x105   : > { %2782 = vmatpush1.bf16.msra.mxu1 %v5739_v47  ;;  %2560 = vmatprep.mubr.bf16.mxu0 %v4866_v48  ;;  %v5766_v46 = vld [vmem:[#allocation6 + $0x1c8] sm:$0xff]   ;;  %v4905_v47 = vcombine.low %v516_v32, %v520_v33  ;;  %v4843_v48 = vcombine.low %v453_v34, %v457_v35  ;;  %v572_v32 = vld [vmem:[%s6245_s5 + $0x500] sm:$0xff] }
 0x106   : > { %2783 = vmatprep.subr.bf16.mxu1 %v5996_v0  ;;  %2785 = vmatprep.mubr.bf16.mxu1 %v4804_v49  ;;  %v4914_v49 = vcombine.high %v524_v42, %v528_v43  ;;  %v576_v33 = vld [vmem:[%s6245_s5 + $0x520] sm:$0xff]  ;;  %v509_v34 = vld [vmem:[%s6245_s5 + $0x308] sm:$0xff] }
 0x107   : > { %3064 = vmatprep.subr.bf16.mxu0 %v5996_v0  ;;  %v513_v35 = vld [vmem:[%s6245_s5 + $0x328] sm:$0xff] }
 0x108   : > { %3065 = vmatpush1.bf16.msra.mxu0 %v5759_v50  ;;  %v4852_v50 = vcombine.high %v461_v44, %v465_v45 }
 0x109   : > { %2784 = vmatpush1.bf16.msra.mxu1 %v5740_v51  ;;  %3066 = vmatprep.subr.bf16.mxu0 %v5996_v0  ;;  %v5767_v51 = vld [vmem:[#allocation6 + $0x1d0] sm:$0xff]  }
 0x10a   : > { %3331 = vmatprep.subr.bf16.mxu1 %v5996_v0 }
 0x10c   : > { %2561 = vmatmul.mubr.bf16.gmra.mrb[32].mxu0 %v4865_v57  ;;  %2786 = vmatmul.mubr.bf16.vlgmr.msra.gmra.mrb[32].mxu1 %v4803_v56  ;;  %v4913_v56 = vcombine.low %v524_v42, %v528_v43  ;;  %v4851_v57 = vcombine.low %v461_v44, %v465_v45  ;;  %v517_v42 = vld [vmem:[%s6245_s5 + $0x348] sm:$0xff]  ;;  %v4961_v44 = vcombine.low %v572_v32, %v576_v33 }
 0x10d   : > { %3332 = vmatpush1.bf16.msra.mxu1 %v5741_v58  ;;  %2568 = vmatprep.mubr.bf16.mxu0 %v4874_v59  ;;  %v4922_v58 = vcombine.high %v532_v52, %v536_v53  ;;  %v4860_v59 = vcombine.high %v469_v54, %v473_v55  ;;  %v521_v43 = vld [vmem:[%s6245_s5 + $0x368] sm:$0xff]  ;;  %v4899_v45 = vcombine.low %v509_v34, %v513_v35 }
 0x10e   : > { %2793 = vmatprep.mubr.bf16.mxu1 %v4812_v60  ;;  %3333 = vmatprep.subr.bf16.mxu1 %v5996_v0  ;;  %v5768_v60 = vld [vmem:[#allocation6 + $0x1d8] sm:$0xff]   ;;  %v529_v52 = vld [vmem:[%s6245_s5 + $0x3a8] sm:$0xff]  ;;  %v4907_v54 = vcombine.low %v517_v42, %v521_v43 }
 0x10f   : > { %3067 = vmatpush1.bf16.msra.mxu0 %v5760_v61  ;;  %v540_v61 = vld [vmem:[%s6245_s5 + $0x400] sm:$0xff] }
 0x110   : > { %3068 = vmatprep.subr.bf16.mxu0 %v5996_v0 }
 0x111   : > { %3334 = vmatpush1.bf16.msra.mxu1 %v5742_v63  ;;  %v477_v63 = vld [vmem:[%s6245_s5 + $0x208] sm:$0xff] }
 0x112   : > { %3335 = vmatprep.subr.bf16.mxu1 %v5996_v0  ;;  %v4867_v11 = vcombine.low %v477_v63, %v481_v1 }
 0x113   : > { %3069 = vmatpush1.bf16.msra.mxu0 %v5762_v4  ;;  %v4930_v4 = vcombine.high %v540_v61, %v544_v62 }
 0x114   : > { %2569 = vmatmul.mubr.bf16.gmra.mrb[36].mxu0 %v4873_v5  ;;  %2794 = vmatmul.mubr.bf16.gmra.mrb[36].mxu1 %v4811_v6  ;;  %v4868_v5 = vcombine.high %v477_v63, %v481_v1  ;;  %v548_v6 = vld [vmem:[%s6245_s5 + $0x440] sm:$0xff]  ;;  %v5772_v1 = vld [vmem:[#allocation6 + $0x1f8] sm:$0xff]  }
 0x115   : > { %2576 = vmatprep.mubr.bf16.mxu0 %v4882_v7  ;;  %2801 = vmatprep.mubr.bf16.mxu1 %v4820_v8  ;;  %v552_v7 = vld [vmem:[%s6245_s5 + $0x460] sm:$0xff]  ;;  %v485_v8 = vld [vmem:[%s6245_s5 + $0x248] sm:$0xff] }
 0x116   : > { %3336 = vmatpush1.bf16.msra.mxu1 %v5743_v9  ;;  %3070 = vmatprep.subr.bf16.mxu0 %v5996_v0  ;;  %v489_v9 = vld [vmem:[%s6245_s5 + $0x268] sm:$0xff]  ;;  %v4938_v12 = vcombine.high %v548_v6, %v552_v7 }
 0x117   : > { %3337 = vmatprep.subr.bf16.mxu1 %v5996_v0  ;;  %3071 = vmatpush1.bf16.msra.mxu0 %v5763_v10  ;;  %v4929_v10 = vcombine.low %v540_v61, %v544_v62  ;;  %v4876_v13 = vcombine.high %v485_v8, %v489_v9 }
 0x118   : > { %3072 = vmatprep.subr.bf16.mxu0 %v5996_v0 }
 0x11a   : > { %3338 = vmatpush1.bf16.msra.mxu1 %v5744_v15  ;;  %v556_v15 = vld [vmem:[%s6245_s5 + $0x480] sm:$0xff] }
 0x11b   : > { %3339 = vmatprep.subr.bf16.mxu1 %v5996_v0  ;;  %3073 = vmatpush1.bf16.msra.mxu0 %v5764_v16  ;;  %v560_v16 = vld [vmem:[%s6245_s5 + $0x4a0] sm:$0xff] }
 0x11c   : > { %2577 = vmatmul.mubr.bf16.gmra.mrb[40].mxu0 %v4881_v17  ;;  %2802 = vmatmul.mubr.bf16.gmra.mrb[40].mxu1 %v4819_v18  ;;  %v493_v17 = vld [vmem:[%s6245_s5 + $0x288] sm:$0xff] }
 0x11d   : > { %2584 = vmatprep.mubr.bf16.mxu0 %v4890_v19  ;;  %2809 = vmatprep.mubr.bf16.mxu1 %v4828_v20  ;;  %v497_v18 = vld [vmem:[%s6245_s5 + $0x2a8] sm:$0xff]  ;;  %v4937_v19 = vcombine.low %v548_v6, %v552_v7  ;;  %v4875_v20 = vcombine.low %v485_v8, %v489_v9 }
 0x11e   : > { %3340 = vmatpush1.bf16.msra.mxu1 %v5746_v21  ;;  %v4946_v21 = vcombine.high %v556_v15, %v560_v16  ;;  %v4884_v22 = vcombine.high %v493_v17, %v497_v18 }
 0x11f   : > { %3341 = vmatprep.subr.bf16.mxu1 %v5996_v0 }
 0x122   : > { %3342 = vmatpush1.bf16.msra.mxu1 %v5751_v26  ;;  %v505_v26 = vld [vmem:[%s6245_s5 + $0x2e8] sm:$0xff] }
 0x123   : > { %3343 = vmatprep.subr.bf16.mxu1 %v5996_v0 }
 0x124   : > { %2585 = vmatmul.mubr.bf16.gmra.mrb[44].mxu0 %v4889_v27  ;;  %2810 = vmatmul.mubr.bf16.gmra.mrb[44].mxu1 %v4827_v28  ;;  %v4945_v27 = vcombine.low %v556_v15, %v560_v16  ;;  %v4883_v28 = vcombine.low %v493_v17, %v497_v18  ;;  %v557_v18 = vld [vmem:[%s6245_s5 + $0x488] sm:$0xff] }
 0x125   : > { %2592 = vmatprep.mubr.bf16.mxu0 %v4898_v29  ;;  %2817 = vmatprep.mubr.bf16.mxu1 %v4836_v30  ;;  %v4954_v29 = vcombine.high %v564_v23, %v568_v24  ;;  %v4892_v30 = vcombine.high %v501_v25, %v505_v26 }
 0x126   : > { %3344 = vmatpush1.bf16.msra.mxu1 %v5756_v31  ;;  %v5770_v31 = vld [vmem:[#allocation6 + $0x1e8] sm:$0xff]  }
 0x127   : > { %3345 = vmatprep.subr.bf16.mxu1 %v5996_v0 }
 0x12a   : > { %3346 = vmatpush1.bf16.msra.mxu1 %v5761_v36  ;;  %v4953_v36 = vcombine.low %v564_v23, %v568_v24 }
 0x12b   : > { %3347 = vmatprep.subr.bf16.mxu1 %v5996_v0 }
 0x12c   : > { %2593 = vmatmul.mubr.bf16.gmra.mrb[48].mxu0 %v4897_v37  ;;  %2818 = vmatmul.mubr.bf16.gmra.mrb[48].mxu1 %v4835_v38  ;;  %v4891_v37 = vcombine.low %v501_v25, %v505_v26  ;;  %v4962_v38 = vcombine.high %v572_v32, %v576_v33  ;;  %v565_v26 = vld [vmem:[%s6245_s5 + $0x4c8] sm:$0xff] }
 0x12d   : > { %2600 = vmatprep.mubr.bf16.mxu0 %v4906_v39  ;;  %2825 = vmatprep.mubr.bf16.mxu1 %v4844_v40  ;;  %v4900_v39 = vcombine.high %v509_v34, %v513_v35  ;;  %v580_v40 = vld [vmem:[%s6245_s5 + $0x540] sm:$0xff]  ;;  %v573_v34 = vld [vmem:[%s6245_s5 + $0x508] sm:$0xff] }
 0x12e   : > { %3348 = vmatpush1.bf16.msra.mxu1 %v5765_v41  ;;  %v584_v41 = vld [vmem:[%s6245_s5 + $0x560] sm:$0xff]  ;;  %v577_v35 = vld [vmem:[%s6245_s5 + $0x528] sm:$0xff] }
 0x12f   : > { %3349 = vmatprep.subr.bf16.mxu1 %v5996_v0  ;;  %v4969_v53 = vcombine.low %v580_v40, %v584_v41 }
 0x132   : > { %3350 = vmatpush1.bf16.msra.mxu1 %v5766_v46  ;;  %v4970_v46 = vcombine.high %v580_v40, %v584_v41 }
 0x133   : > { %3351 = vmatprep.subr.bf16.mxu1 %v5996_v0 }
 0x134   : > { %2601 = vmatmul.mubr.bf16.gmra.mrb[52].mxu0 %v4905_v47  ;;  %2826 = vmatmul.mubr.bf16.gmra.mrb[52].mxu1 %v4843_v48  ;;  %v4908_v47 = vcombine.high %v517_v42, %v521_v43  ;;  %v5771_v48 = vld [vmem:[#allocation6 + $0x1f0] sm:$0xff]  }
 0x135   : > { %2608 = vmatprep.mubr.bf16.mxu0 %v4914_v49  ;;  %2833 = vmatprep.mubr.bf16.mxu1 %v4852_v50  ;;  %v588_v49 = vld [vmem:[%s6245_s5 + $0x580] sm:$0xff] }
 0x136   : > { %3352 = vmatpush1.bf16.msra.mxu1 %v5767_v51  ;;  %v592_v50 = vld [vmem:[%s6245_s5 + $0x5a0] sm:$0xff]  ;;  %v525_v51 = vld [vmem:[%s6245_s5 + $0x388] sm:$0xff] }
 0x137   : > { %3353 = vmatprep.subr.bf16.mxu1 %v5996_v0  ;;  %v4978_v55 = vcombine.high %v588_v49, %v592_v50  ;;  %v4977_v61 = vcombine.low %v588_v49, %v592_v50  ;;  %v4915_v62 = vcombine.low %v525_v51, %v529_v52  ;;  %v581_v50 = vld [vmem:[%s6245_s5 + $0x548] sm:$0xff] }
 0x13a   : > { %3354 = vmatpush1.bf16.msra.mxu1 %v5768_v60  ;;  %v537_v60 = vld [vmem:[%s6245_s5 + $0x3e8] sm:$0xff] }
 0x13b   : > { %3355 = vmatprep.subr.bf16.mxu1 %v5996_v0 }
 0x13c   : > { %2609 = vmatmul.mubr.bf16.gmra.mrb[56].mxu0 %v4913_v56  ;;  %2834 = vmatmul.mubr.bf16.gmra.mrb[56].mxu1 %v4851_v57  ;;  %v4916_v56 = vcombine.high %v525_v51, %v529_v52  ;;  %v596_v57 = vld [vmem:[%s6245_s5 + $0x5c0] sm:$0xff]  ;;  %v585_v51 = vld [vmem:[%s6245_s5 + $0x568] sm:$0xff]  ;;  %v454_v52 = vld [vmem:[%s6245_s5 + $0x150] sm:$0xff] }
 0x13d   : > { %2616 = vmatprep.mubr.bf16.mxu0 %v4922_v58  ;;  %2841 = vmatprep.mubr.bf16.mxu1 %v4860_v59  ;;  %v600_v58 = vld [vmem:[%s6245_s5 + $0x5e0] sm:$0xff]  ;;  %v533_v59 = vld [vmem:[%s6245_s5 + $0x3c8] sm:$0xff] }
 0x13e   : > { %3356 = vmatpush1.bf16.msra.mxu1 %v5769_v14  ;;  %v4986_v63 = vcombine.high %v596_v57, %v600_v58  ;;  %v4985_v6 = vcombine.low %v596_v57, %v600_v58  ;;  %v4923_v7 = vcombine.low %v533_v59, %v537_v60  ;;  %v4963_v57 = vcombine.low %v573_v34, %v577_v35 }
 0x13f   : > { %3357 = vmatprep.subr.bf16.mxu1 %v5996_v0 }
 0x142   : > { %3358 = vmatpush1.bf16.msra.mxu1 %v5770_v31 }
 0x143   : > { %3359 = vmatprep.subr.bf16.mxu1 %v5996_v0 }
 0x144   : > { %2617 = vmatmul.mubr.bf16.gmra.mrb[60].mxu0 %v4921_v2  ;;  %2842 = vmatmul.mubr.bf16.gmra.mrb[60].mxu1 %v4859_v3  ;;  %v541_v2 = vld [vmem:[%s6245_s5 + $0x408] sm:$0xff] }
 0x145   : > { %2624 = vmatprep.mubr.bf16.mxu0 %v4930_v4  ;;  %2849 = vmatprep.mubr.bf16.mxu1 %v4868_v5  ;;  %v545_v3 = vld [vmem:[%s6245_s5 + $0x428] sm:$0xff]  ;;  %v414_v4 = vld [vmem:[%s6245_s5 + $0x10] sm:$0xff] }
 0x146   : > { %3360 = vmatpush1.bf16.msra.mxu1 %v5771_v48  ;;  %v418_v5 = vld [vmem:[%s6245_s5 + $0x30] sm:$0xff]  ;;  %v4932_v8 = vcombine.high %v541_v2, %v545_v3  ;;  %v4931_v15 = vcombine.low %v541_v2, %v545_v3  ;;  %v589_v2 = vld [vmem:[%s6245_s5 + $0x588] sm:$0xff] }
 0x147   : > { %3361 = vmatprep.subr.bf16.mxu1 %v5996_v0  ;;  %v4924_v0 = vcombine.high %v533_v59, %v537_v60  ;;  %v4806_v9 = vcombine.high %v414_v4, %v418_v5  ;;  %v4805_v14 = vcombine.low %v414_v4, %v418_v5  ;;  %v593_v3 = vld [vmem:[%s6245_s5 + $0x5a8] sm:$0xff]  ;;  %v462_v4 = vld [vmem:[%s6245_s5 + $0x190] sm:$0xff] }
 0x148   : > { %v466_v5 = vld [vmem:[%s6245_s5 + $0x1b0] sm:$0xff] }
 0x14a   : > { %3362 = vmatpush1.bf16.msra.mxu1 %v5772_v1 }
 0x14c   : > { %2625 = vmatmul.mubr.bf16.gmra.mrb[64].mxu0 %v4929_v10  ;;  %2850 = vmatmul.mubr.bf16.gmra.mrb[64].mxu1 %v4867_v11  ;;  %v549_v10 = vld [vmem:[%s6245_s5 + $0x448] sm:$0xff] }
 0x14d   : > { %2632 = vmatprep.mubr.bf16.mxu0 %v4938_v12  ;;  %2857 = vmatprep.mubr.bf16.mxu1 %v4876_v13  ;;  %v553_v11 = vld [vmem:[%s6245_s5 + $0x468] sm:$0xff]  ;;  %v422_v12 = vld [vmem:[%s6245_s5 + $0x50] sm:$0xff] }
 0x14e   : > { %v426_v13 = vld [vmem:[%s6245_s5 + $0x70] sm:$0xff]  ;;  %v4940_v16 = vcombine.high %v549_v10, %v553_v11 }
 0x14f   : > { %v4814_v17 = vcombine.high %v422_v12, %v426_v13  ;;  %v4813_v23 = vcombine.low %v422_v12, %v426_v13  ;;  %v4980_v13 = vcombine.high %v589_v2, %v593_v3 }
 0x154   : > { %2633 = vmatmul.mubr.bf16.gmra.mrb[68].mxu0 %v4937_v19  ;;  %2858 = vmatmul.mubr.bf16.gmra.mrb[68].mxu1 %v4875_v20  ;;  %v561_v19 = vld [vmem:[%s6245_s5 + $0x4a8] sm:$0xff]  ;;  %v430_v20 = vld [vmem:[%s6245_s5 + $0x90] sm:$0xff] }
 0x155   : > { %2640 = vmatprep.mubr.bf16.mxu0 %v4946_v21  ;;  %2865 = vmatprep.mubr.bf16.mxu1 %v4884_v22  ;;  %v434_v21 = vld [vmem:[%s6245_s5 + $0xb0] sm:$0xff]  ;;  %v4939_v22 = vcombine.low %v549_v10, %v553_v11  ;;  %v4948_v24 = vcombine.high %v557_v18, %v561_v19 }
 0x156   : > { %v4822_v25 = vcombine.high %v430_v20, %v434_v21  ;;  %v4821_v31 = vcombine.low %v430_v20, %v434_v21  ;;  %v470_v20 = vld [vmem:[%s6245_s5 + $0x1d0] sm:$0xff] }
 0x157   : > { %v474_v21 = vld [vmem:[%s6245_s5 + $0x1f0] sm:$0xff] }
 0x15c   : > { %2641 = vmatmul.mubr.bf16.gmra.mrb[72].mxu0 %v4945_v27  ;;  %2866 = vmatmul.mubr.bf16.gmra.mrb[72].mxu1 %v4883_v28  ;;  %v569_v27 = vld [vmem:[%s6245_s5 + $0x4e8] sm:$0xff]  ;;  %v438_v28 = vld [vmem:[%s6245_s5 + $0xd0] sm:$0xff] }
 0x15d   : > { %2648 = vmatprep.mubr.bf16.mxu0 %v4954_v29  ;;  %2873 = vmatprep.mubr.bf16.mxu1 %v4892_v30  ;;  %v442_v29 = vld [vmem:[%s6245_s5 + $0xf0] sm:$0xff]  ;;  %v4947_v30 = vcombine.low %v557_v18, %v561_v19  ;;  %v4956_v32 = vcombine.high %v565_v26, %v569_v27  ;;  %v4955_v41 = vcombine.low %v565_v26, %v569_v27  ;;  %v597_v18 = vld [vmem:[%s6245_s5 + $0x5c8] sm:$0xff] }
 0x15e   : > { %v4830_v33 = vcombine.high %v438_v28, %v442_v29  ;;  %v4829_v42 = vcombine.low %v438_v28, %v442_v29  ;;  %v601_v19 = vld [vmem:[%s6245_s5 + $0x5e8] sm:$0xff]  ;;  %v4853_v26 = vcombine.low %v462_v4, %v466_v5 }
 0x15f   : > { %v4988_v29 = vcombine.high %v597_v18, %v601_v19 }
 0x164   : > { %2649 = vmatmul.mubr.bf16.gmra.mrb[76].mxu0 %v4953_v36  ;;  %2874 = vmatmul.mubr.bf16.gmra.mrb[76].mxu1 %v4891_v37  ;;  %v446_v36 = vld [vmem:[%s6245_s5 + $0x110] sm:$0xff] }
 0x165   : > { %2656 = vmatprep.mubr.bf16.mxu0 %v4962_v38  ;;  %2881 = vmatprep.mubr.bf16.mxu1 %v4900_v39  ;;  %v450_v37 = vld [vmem:[%s6245_s5 + $0x130] sm:$0xff] }
 0x166   : > { %v4837_v58 = vcombine.low %v446_v36, %v450_v37 }
 0x16c   : > { %2657 = vmatmul.mubr.bf16.gmra.mrb[80].mxu0 %v4961_v44  ;;  %2882 = vmatmul.mubr.bf16.gmra.mrb[80].mxu1 %v4899_v45  ;;  %v4964_v45 = vcombine.high %v573_v34, %v577_v35  ;;  %v605_v34 = vld [vmem:[%s6245_s5 + $0x608] sm:$0xff] }
 0x16d   : > { %2664 = vmatprep.mubr.bf16.mxu0 %v4970_v46  ;;  %2889 = vmatprep.mubr.bf16.mxu1 %v4908_v47  ;;  %v4838_v46 = vcombine.high %v446_v36, %v450_v37  ;;  %v609_v35 = vld [vmem:[%s6245_s5 + $0x628] sm:$0xff]  ;;  %v478_v36 = vld [vmem:[%s6245_s5 + $0x210] sm:$0xff] }
 0x16e   : > { %v482_v37 = vld [vmem:[%s6245_s5 + $0x230] sm:$0xff] }
 0x174   : > { %2665 = vmatmul.mubr.bf16.gmra.mrb[84].mxu0 %v4969_v53  ;;  %2890 = vmatmul.mubr.bf16.gmra.mrb[84].mxu1 %v4907_v54  ;;  %v458_v53 = vld [vmem:[%s6245_s5 + $0x170] sm:$0xff] }
 0x175   : > { %2672 = vmatprep.mubr.bf16.mxu0 %v4978_v55  ;;  %2897 = vmatprep.mubr.bf16.mxu1 %v4916_v56  ;;  %v4845_v10 = vcombine.low %v454_v52, %v458_v53 }
 0x17c   : > { %2673 = vmatmul.mubr.bf16.gmra.mrb[88].mxu0 %v4977_v61  ;;  %2898 = vmatmul.mubr.bf16.gmra.mrb[88].mxu1 %v4915_v62  ;;  %v4972_v61 = vcombine.high %v581_v50, %v585_v51  ;;  %v4846_v62 = vcombine.high %v454_v52, %v458_v53 }
 0x17d   : > { %2680 = vmatprep.mubr.bf16.mxu0 %v4986_v63  ;;  %2905 = vmatprep.mubr.bf16.mxu1 %v4924_v0 }
 0x184   : > { %2681 = vmatmul.mubr.bf16.gmra.mrb[92].mxu0 %v4985_v6  ;;  %2906 = vmatmul.mubr.bf16.gmra.mrb[92].mxu1 %v4923_v7 }
 0x185   : > { %2913 = vmatprep.mubr.bf16.mxu1 %v4932_v8  ;;  %3074 = vmatprep.mubr.bf16.mxu0 %v4806_v9  ;;  %v4971_v9 = vcombine.low %v581_v50, %v585_v51  ;;  %v4870_v50 = vcombine.high %v478_v36, %v482_v37 }
 0x18c   : > { %2914 = vmatmul.mubr.bf16.gmra.mrb[96].mxu1 %v4931_v15  ;;  %3075 = vmatmul.mubr.bf16.vlgmr.msra.gmra.mrb[96].mxu0 %v4805_v14  ;;  %v4854_v14 = vcombine.high %v462_v4, %v466_v5 }
 0x18d   : > { %2921 = vmatprep.mubr.bf16.mxu1 %v4940_v16  ;;  %3082 = vmatprep.mubr.bf16.mxu0 %v4814_v17 }
 0x194   : > { %2922 = vmatmul.mubr.bf16.gmra.mrb[100].mxu1 %v4939_v22  ;;  %3083 = vmatmul.mubr.bf16.gmra.mrb[100].mxu0 %v4813_v23 }
 0x195   : > { %2929 = vmatprep.mubr.bf16.mxu1 %v4948_v24  ;;  %3090 = vmatprep.mubr.bf16.mxu0 %v4822_v25  ;;  %v4979_v25 = vcombine.low %v589_v2, %v593_v3  ;;  %v4869_v2 = vcombine.low %v478_v36, %v482_v37  ;;  %v502_v36 = vld [vmem:[%s6245_s5 + $0x2d0] sm:$0xff] }
 0x196   : > { %v506_v37 = vld [vmem:[%s6245_s5 + $0x2f0] sm:$0xff] }
 0x19c   : > { %2930 = vmatmul.mubr.bf16.gmra.mrb[104].mxu1 %v4947_v30  ;;  %3091 = vmatmul.mubr.bf16.gmra.mrb[104].mxu0 %v4821_v31  ;;  %v4862_v30 = vcombine.high %v470_v20, %v474_v21 }
 0x19d   : > { %2937 = vmatprep.mubr.bf16.mxu1 %v4956_v32  ;;  %3098 = vmatprep.mubr.bf16.mxu0 %v4830_v33 }
 0x19f   : > { %v6471_v38 = vpop.f32.mrb[0].mxu1  ;;  %v6473_v39 = vpop.f32.mrb[0].mxu0 }
 0x1a0   : > { %v2692_v40 = vpop.f32.mrb[1].mxu1  ;;  %v2500_v43 = vpop.f32.mrb[1].mxu0 }
 0x1a1   : > { %v6475_v44 = vpop.f32.mrb[2].mxu1  ;;  %v6477_v47 = vpop.f32.mrb[2].mxu0  ;;  %v4987_v43 = vcombine.low %v597_v18, %v601_v19 }
 0x1a2   : > { %v2695_v48 = vpop.f32.mrb[3].mxu1  ;;  %v2503_v49 = vpop.f32.mrb[3].mxu0 }
 0x1a3   : > { %v4996_v49 = vcombine.high %v605_v34, %v609_v35 }
 0x1a4   : > { %2938 = vmatmul.mubr.bf16.gmra.mrb[108].mxu1 %v4955_v41  ;;  %3099 = vmatmul.mubr.bf16.gmra.mrb[108].mxu0 %v4829_v42 }
 0x1a5   : > { %2945 = vmatprep.mubr.bf16.mxu1 %v4964_v45  ;;  %3106 = vmatprep.mubr.bf16.mxu0 %v4838_v46  ;;  %v4861_v45 = vcombine.low %v470_v20, %v474_v21 }
 0x1a7   : > { %v6483_v54 = vpop.f32.mrb[4].mxu1  ;;  %v6485_v55 = vpop.f32.mrb[4].mxu0 }
 0x1a8   : > { %v2700_v56 = vpop.f32.mrb[5].mxu1  ;;  %v2508_v59 = vpop.f32.mrb[5].mxu0 }
 0x1a9   : > { %v6487_v60 = vpop.f32.mrb[6].mxu1  ;;  %v6489_v63 = vpop.f32.mrb[6].mxu0  ;;  %v613_v56 = vld [vmem:[%s6245_s5 + $0x648] sm:$0xff]  ;;  %v490_v59 = vld [vmem:[%s6245_s5 + $0x270] sm:$0xff] }
 0x1aa   : > { %v2703_v0 = vpop.f32.mrb[7].mxu1  ;;  %v2511_v1 = vpop.f32.mrb[7].mxu0 }
 0x1ab   : > { %v4995_v1 = vcombine.low %v605_v34, %v609_v35  ;;  %v629_v34 = vld [vmem:[%s6245_s5 + $0x6c8] sm:$0xff] }
 0x1ac   : > { %2946 = vmatmul.mubr.bf16.gmra.mrb[112].mxu1 %v4963_v57  ;;  %3107 = vmatmul.mubr.bf16.gmra.mrb[112].mxu0 %v4837_v58  ;;  %v617_v57 = vld [vmem:[%s6245_s5 + $0x668] sm:$0xff]  ;;  %v486_v58 = vld [vmem:[%s6245_s5 + $0x250] sm:$0xff] }
 0x1ad   : > { %2953 = vmatprep.mubr.bf16.mxu1 %v4972_v61  ;;  %3114 = vmatprep.mubr.bf16.mxu0 %v4846_v62  ;;  %v5004_v5 = vcombine.high %v613_v56, %v617_v57  ;;  %v5003_v21 = vcombine.low %v613_v56, %v617_v57  ;;  %v633_v35 = vld [vmem:[%s6245_s5 + $0x6e8] sm:$0xff]  ;;  %v4894_v56 = vcombine.high %v502_v36, %v506_v37 }
 0x1af   : > { %v6495_v6 = vpop.f32.mrb[8].mxu1  ;;  %v6497_v7 = vpop.f32.mrb[8].mxu0 }
 0x1b0   : > { %v2708_v8 = vpop.f32.mrb[9].mxu1  ;;  %v2516_v11 = vpop.f32.mrb[9].mxu0 }
 0x1b1   : > { %v6499_v12 = vpop.f32.mrb[10].mxu1  ;;  %v6501_v15 = vpop.f32.mrb[10].mxu0  ;;  %v4878_v8 = vcombine.high %v486_v58, %v490_v59 }
 0x1b2   : > { %7367 = vst [vmem:[#allocation17_spill] sm:$0xff] %v6499_v12  ;;  %v2711_v16 = vpop.f32.mrb[11].mxu1  ;;  %v2519_v17 = vpop.f32.mrb[11].mxu0 }
 0x1b3   : > { %v494_v16 = vld [vmem:[%s6245_s5 + $0x290] sm:$0xff] }
 0x1b4   : > { %2954 = vmatmul.mubr.bf16.gmra.mrb[116].mxu1 %v4971_v9  ;;  %3115 = vmatmul.mubr.bf16.gmra.mrb[116].mxu0 %v4845_v10  ;;  %v498_v17 = vld [vmem:[%s6245_s5 + $0x2b0] sm:$0xff] }
 0x1b5   : > { %2961 = vmatprep.mubr.bf16.mxu1 %v4980_v13  ;;  %3122 = vmatprep.mubr.bf16.mxu0 %v4854_v14  ;;  %v621_v13 = vld [vmem:[%s6245_s5 + $0x688] sm:$0xff] }
 0x1b6   : > { %v625_v14 = vld [vmem:[%s6245_s5 + $0x6a8] sm:$0xff] }
 0x1b7   : > { %v6507_v22 = vpop.f32.mrb[12].mxu1  ;;  %v6509_v23 = vpop.f32.mrb[12].mxu0 }
 0x1b8   : > { %7368 = vst [vmem:[#allocation18_spill] sm:$0xff] %v6507_v22  ;;  %v2716_v24 = vpop.f32.mrb[13].mxu1  ;;  %v2524_v27 = vpop.f32.mrb[13].mxu0 }
 0x1b9   : > { %v6511_v28 = vpop.f32.mrb[14].mxu1  ;;  %v6513_v31 = vpop.f32.mrb[14].mxu0  ;;  %v4877_v24 = vcombine.low %v486_v58, %v490_v59  ;;  %v5012_v27 = vcombine.high %v621_v13, %v625_v14 }
 0x1ba   : > { %7369 = vst [vmem:[#allocation19_spill] sm:$0xff] %v6511_v28  ;;  %v2719_v32 = vpop.f32.mrb[15].mxu1  ;;  %v2527_v33 = vpop.f32.mrb[15].mxu0 }
 0x1bc   : > { %2962 = vmatmul.mubr.bf16.gmra.mrb[120].mxu1 %v4979_v25  ;;  %3123 = vmatmul.mubr.bf16.gmra.mrb[120].mxu0 %v4853_v26 }
 0x1bd   : > { %2969 = vmatprep.mubr.bf16.mxu1 %v4988_v29  ;;  %3130 = vmatprep.mubr.bf16.mxu0 %v4862_v30  ;;  %v4886_v29 = vcombine.high %v494_v16, %v498_v17 }
 0x1bf   : > { %v6519_v40 = vpop.f32.mrb[16].mxu1  ;;  %v6521_v41 = vpop.f32.mrb[16].mxu0 }
 0x1c0   : > { %7370 = vst [vmem:[#allocation20_spill] sm:$0xff] %v6519_v40  ;;  %v2724_v42 = vpop.f32.mrb[17].mxu1  ;;  %v2532_v46 = vpop.f32.mrb[17].mxu0 }
 0x1c1   : > { %v6523_v48 = vpop.f32.mrb[18].mxu1  ;;  %v6525_v51 = vpop.f32.mrb[18].mxu0  ;;  %v5011_v46 = vcombine.low %v621_v13, %v625_v14  ;;  %v5019_v13 = vcombine.low %v629_v34, %v633_v35  ;;  %v4893_v14 = vcombine.low %v502_v36, %v506_v37 }
 0x1c2   : > { %7371 = vst [vmem:[#allocation21_spill] sm:$0xff] %v6523_v48  ;;  %v2727_v52 = vpop.f32.mrb[19].mxu1  ;;  %v2535_v53 = vpop.f32.mrb[19].mxu0 }
 0x1c3   : > { %v5020_v53 = vcombine.high %v629_v34, %v633_v35  ;;  %v522_v34 = vld [vmem:[%s6245_s5 + $0x370] sm:$0xff] }
 0x1c4   : > { %2970 = vmatmul.mubr.bf16.gmra.mrb[124].mxu1 %v4987_v43  ;;  %3131 = vmatmul.mubr.bf16.gmra.mrb[124].mxu0 %v4861_v45 }
 0x1c5   : > { %2977 = vmatprep.mubr.bf16.mxu1 %v4996_v49  ;;  %3138 = vmatprep.mubr.bf16.mxu0 %v4870_v50  ;;  %v4885_v49 = vcombine.low %v494_v16, %v498_v17 }
 0x1c7   : > { %v6531_v61 = vpop.f32.mrb[20].mxu1  ;;  %v6533_v62 = vpop.f32.mrb[20].mxu0 }
 0x1c8   : > { %7372 = vst [vmem:[#allocation22_spill] sm:$0xff] %v6531_v61  ;;  %v2732_v0 = vpop.f32.mrb[21].mxu1  ;;  %v2540_v3 = vpop.f32.mrb[21].mxu0 }
 0x1c9   : > { %v6535_v4 = vpop.f32.mrb[22].mxu1  ;;  %v6537_v9 = vpop.f32.mrb[22].mxu0  ;;  %v637_v0 = vld [vmem:[%s6245_s5 + $0x708] sm:$0xff]  ;;  %v514_v3 = vld [vmem:[%s6245_s5 + $0x330] sm:$0xff] }
 0x1ca   : > { %7373 = vst [vmem:[#allocation23_spill] sm:$0xff] %v6535_v4  ;;  %v2735_v10 = vpop.f32.mrb[23].mxu1  ;;  %v2543_v11 = vpop.f32.mrb[23].mxu0 }
 0x1cc   : > { %2978 = vmatmul.mubr.bf16.gmra.mrb[128].mxu1 %v4995_v1  ;;  %3139 = vmatmul.mubr.bf16.gmra.mrb[128].mxu0 %v4869_v2  ;;  %v641_v1 = vld [vmem:[%s6245_s5 + $0x728] sm:$0xff]  ;;  %v510_v2 = vld [vmem:[%s6245_s5 + $0x310] sm:$0xff] }
 0x1cd   : > { %2985 = vmatprep.mubr.bf16.mxu1 %v5004_v5  ;;  %3146 = vmatprep.mubr.bf16.mxu0 %v4878_v8 }
 0x1cf   : > { %v6543_v18 = vpop.f32.mrb[24].mxu1  ;;  %v6545_v19 = vpop.f32.mrb[24].mxu0 }
 0x1d0   : > { %7374 = vst [vmem:[#allocation24_spill] sm:$0xff] %v6543_v18  ;;  %v2740_v20 = vpop.f32.mrb[25].mxu1  ;;  %v2548_v25 = vpop.f32.mrb[25].mxu0 }
 0x1d1   : > { %v6547_v26 = vpop.f32.mrb[26].mxu1  ;;  %v6549_v30 = vpop.f32.mrb[26].mxu0  ;;  %v5028_v20 = vcombine.high %v637_v0, %v641_v1 }
 0x1d2   : > { %7375 = vst [vmem:[#allocation25_spill] sm:$0xff] %v6547_v26  ;;  %v2743_v32 = vpop.f32.mrb[27].mxu1  ;;  %v2551_v33 = vpop.f32.mrb[27].mxu0 }
 0x1d3   : > { %v649_v32 = vld [vmem:[%s6245_s5 + $0x768] sm:$0xff]  ;;  %v518_v33 = vld [vmem:[%s6245_s5 + $0x350] sm:$0xff] }
 0x1d4   : > { %2986 = vmatmul.mubr.bf16.gmra.mrb[132].mxu1 %v5003_v21  ;;  %3147 = vmatmul.mubr.bf16.gmra.mrb[132].mxu0 %v4877_v24  ;;  %v4902_v21 = vcombine.high %v510_v2, %v514_v3 }
 0x1d5   : > { %2993 = vmatprep.mubr.bf16.mxu1 %v5012_v27  ;;  %3154 = vmatprep.mubr.bf16.mxu0 %v4886_v29 }
 0x1d7   : > { %v6555_v42 = vpop.f32.mrb[28].mxu1  ;;  %v6557_v43 = vpop.f32.mrb[28].mxu0 }
 0x1d8   : > { %7376 = vst [vmem:[#allocation26_spill] sm:$0xff] %v6555_v42  ;;  %v2748_v45 = vpop.f32.mrb[29].mxu1  ;;  %v2556_v50 = vpop.f32.mrb[29].mxu0 }
 0x1d9   : > { %v6559_v52 = vpop.f32.mrb[30].mxu1  ;;  %v6561_v57 = vpop.f32.mrb[30].mxu0 }
 0x1da   : > { %7377 = vst [vmem:[#allocation27_spill] sm:$0xff] %v6559_v52  ;;  %v2751_v58 = vpop.f32.mrb[31].mxu1  ;;  %v2559_v59 = vpop.f32.mrb[31].mxu0 }
 0x1dc   : > { %2994 = vmatmul.mubr.bf16.gmra.mrb[136].mxu1 %v5011_v46  ;;  %3155 = vmatmul.mubr.bf16.gmra.mrb[136].mxu0 %v4885_v49  ;;  %v4901_v46 = vcombine.low %v510_v2, %v514_v3  ;;  %v526_v2 = vld [vmem:[%s6245_s5 + $0x390] sm:$0xff] }
 0x1dd   : > { %3001 = vmatprep.mubr.bf16.mxu1 %v5020_v53  ;;  %3162 = vmatprep.mubr.bf16.mxu0 %v4894_v56  ;;  %v4910_v56 = vcombine.high %v518_v33, %v522_v34  ;;  %v530_v3 = vld [vmem:[%s6245_s5 + $0x3b0] sm:$0xff] }
 0x1df   : > { %v2787_v5 = vpop.f32.mrb[32].mxu1  ;;  %v6567_v8 = vpop.f32.mrb[32].mxu0 }
 0x1e0   : > { %v6570_v10 = vadd.f32 %v2787_v5, %v6473_v39  ;;  %v2789_v11 = vpop.f32.mrb[33].mxu1  ;;  %v2564_v16 = vpop.f32.mrb[33].mxu0  ;;  %v645_v39 = vld [vmem:[%s6245_s5 + $0x748] sm:$0xff] }
 0x1e1   : > { %v2790_v17 = vpop.f32.mrb[34].mxu1  ;;  %v6572_v24 = vpop.f32.mrb[34].mxu0  ;;  %v5036_v53 = vcombine.high %v645_v39, %v649_v32 }
 0x1e2   : > { %v6575_v25 = vadd.f32 %v2790_v17, %v6477_v47  ;;  %v2792_v27 = vpop.f32.mrb[35].mxu1  ;;  %v2567_v29 = vpop.f32.mrb[35].mxu0  ;;  %v5027_v47 = vcombine.low %v637_v0, %v641_v1  ;;  %v653_v0 = vld [vmem:[%s6245_s5 + $0x788] sm:$0xff]  ;;  %v5035_v17 = vcombine.low %v645_v39, %v649_v32  ;;  %v534_v32 = vld [vmem:[%s6245_s5 + $0x3d0] sm:$0xff] }
 0x1e3   : > { %v657_v1 = vld [vmem:[%s6245_s5 + $0x7a8] sm:$0xff] }
 0x1e4   : > { %3002 = vmatmul.mubr.bf16.gmra.mrb[140].mxu1 %v5019_v13  ;;  %3163 = vmatmul.mubr.bf16.gmra.mrb[140].mxu0 %v4893_v14  ;;  %v5044_v29 = vcombine.high %v653_v0, %v657_v1  ;;  %v665_v39 = vld [vmem:[%s6245_s5 + $0x7e8] sm:$0xff] }
 0x1e5   : > { %3009 = vmatprep.mubr.bf16.mxu1 %v5028_v20  ;;  %3170 = vmatprep.mubr.bf16.mxu0 %v4902_v21  ;;  %v4909_v20 = vcombine.low %v518_v33, %v522_v34  ;;  %v538_v33 = vld [vmem:[%s6245_s5 + $0x3f0] sm:$0xff] }
 0x1e7   : > { %v2795_v35 = vpop.f32.mrb[36].mxu1  ;;  %v6581_v36 = vpop.f32.mrb[36].mxu0 }
 0x1e8   : > { %v6584_v37 = vadd.f32 %v2795_v35, %v6485_v55  ;;  %v2797_v45 = vpop.f32.mrb[37].mxu1  ;;  %v2572_v49 = vpop.f32.mrb[37].mxu0  ;;  %v5773_v55 = vld [vmem:[#allocation9] sm:$0xff]   ;;  %v4918_v35 = vcombine.high %v526_v2, %v530_v3 }
 0x1e9   : > { %v2798_v50 = vpop.f32.mrb[38].mxu1  ;;  %v6586_v58 = vpop.f32.mrb[38].mxu0  ;;  %5497 = vmatprep.subr.bf16.mxu0 %v5773_v55 }
 0x1ea   : > { %v6589_v59 = vadd.f32 %v2798_v50, %v6489_v63  ;;  %v2800_v5 = vpop.f32.mrb[39].mxu1  ;;  %v2575_v11 = vpop.f32.mrb[39].mxu0  ;;  %5498 = vmatpush3.bf16.msra.mxu0 %v5773_v55 }
 0x1eb   : > { %v4917_v5 = vcombine.low %v526_v2, %v530_v3  ;;  %v419_v2 = vld [vmem:[%s6245_s5 + $0x38] sm:$0xff] }
 0x1ec   : > { %3010 = vmatmul.mubr.bf16.gmra.mrb[144].mxu1 %v5027_v47  ;;  %3171 = vmatmul.mubr.bf16.gmra.mrb[144].mxu0 %v4901_v46 }
 0x1ed   : > { %3017 = vmatprep.mubr.bf16.mxu1 %v5036_v53  ;;  %3178 = vmatprep.mubr.bf16.mxu0 %v4910_v56 }
 0x1ef   : > { %v2803_v13 = vpop.f32.mrb[40].mxu1  ;;  %v6595_v14 = vpop.f32.mrb[40].mxu0 }
 0x1f0   : > { %v6598_v16 = vadd.f32 %v2803_v13, %v6497_v7  ;;  %v2805_v63 = vpop.f32.mrb[41].mxu1  ;;  %v2580_v21 = vpop.f32.mrb[41].mxu0  ;;  %v661_v7 = vld [vmem:[%s6245_s5 + $0x7c8] sm:$0xff] }
 0x1f1   : > { %v2806_v27 = vpop.f32.mrb[42].mxu1  ;;  %v6600_v45 = vpop.f32.mrb[42].mxu0  ;;  %v5052_v13 = vcombine.high %v661_v7, %v665_v39  ;;  %v4926_v63 = vcombine.high %v534_v32, %v538_v33 }
 0x1f2   : > { %v6603_v47 = vadd.f32 %v2806_v27, %v6501_v15  ;;  %v2808_v46 = vpop.f32.mrb[43].mxu1  ;;  %v2583_v49 = vpop.f32.mrb[43].mxu0  ;;  %v5043_v15 = vcombine.low %v653_v0, %v657_v1  ;;  %v546_v0 = vld [vmem:[%s6245_s5 + $0x430] sm:$0xff]  ;;  %v415_v1 = vld [vmem:[%s6245_s5 + $0x18] sm:$0xff] }
 0x1f3   : > { %v4925_v49 = vcombine.low %v534_v32, %v538_v33  ;;  %v427_v32 = vld [vmem:[%s6245_s5 + $0x78] sm:$0xff] }
 0x1f4   : > { %3018 = vmatmul.mubr.bf16.gmra.mrb[148].mxu1 %v5035_v17  ;;  %3179 = vmatmul.mubr.bf16.gmra.mrb[148].mxu0 %v4909_v20 }
 0x1f5   : > { %3025 = vmatprep.mubr.bf16.mxu1 %v5044_v29  ;;  %3186 = vmatprep.mubr.bf16.mxu0 %v4918_v35 }
 0x1f7   : > { %v2811_v34 = vpop.f32.mrb[44].mxu1  ;;  %v6609_v50 = vpop.f32.mrb[44].mxu0 }
 0x1f8   : > { %v6612_v53 = vadd.f32 %v2811_v34, %v6509_v23  ;;  %v2813_v56 = vpop.f32.mrb[45].mxu1  ;;  %v2588_v11 = vpop.f32.mrb[45].mxu0  ;;  %v542_v23 = vld [vmem:[%s6245_s5 + $0x410] sm:$0xff] }
 0x1f9   : > { %v2814_v55 = vpop.f32.mrb[46].mxu1  ;;  %v6614_v17 = vpop.f32.mrb[46].mxu0 }
 0x1fa   : > { %v6617_v20 = vadd.f32 %v2814_v55, %v6513_v31  ;;  %v2816_v21 = vpop.f32.mrb[47].mxu1  ;;  %v2591_v27 = vpop.f32.mrb[47].mxu0  ;;  %v5051_v31 = vcombine.low %v661_v7, %v665_v39  ;;  %v554_v7 = vld [vmem:[%s6245_s5 + $0x470] sm:$0xff]  ;;  %v423_v39 = vld [vmem:[%s6245_s5 + $0x58] sm:$0xff] }
 0x1fc   : > { %3026 = vmatmul.mubr.bf16.gmra.mrb[152].mxu1 %v5043_v15  ;;  %3187 = vmatmul.mubr.bf16.gmra.mrb[152].mxu0 %v4917_v5  ;;  %v4934_v15 = vcombine.high %v542_v23, %v546_v0  ;;  %v4808_v5 = vcombine.high %v415_v1, %v419_v2 }
 0x1fd   : > { %3033 = vmatprep.mubr.bf16.mxu1 %v5052_v13  ;;  %3194 = vmatprep.mubr.bf16.mxu0 %v4926_v63 }
 0x1ff   : > { %v2819_v3 = vpop.f32.mrb[48].mxu1  ;;  %v6623_v29 = vpop.f32.mrb[48].mxu0 }
 0x200   : > { %v6626_v35 = vadd.f32 %v2819_v3, %v6521_v41  ;;  %v2821_v46 = vpop.f32.mrb[49].mxu1  ;;  %v2596_v34 = vpop.f32.mrb[49].mxu0  ;;  %v550_v41 = vld [vmem:[%s6245_s5 + $0x450] sm:$0xff] }
 0x201   : > { %v2822_v56 = vpop.f32.mrb[50].mxu1  ;;  %v6628_v11 = vpop.f32.mrb[50].mxu0  ;;  %v4933_v46 = vcombine.low %v542_v23, %v546_v0  ;;  %v4942_v34 = vcombine.high %v550_v41, %v554_v7  ;;  %v562_v23 = vld [vmem:[%s6245_s5 + $0x4b0] sm:$0xff]  ;;  %v431_v0 = vld [vmem:[%s6245_s5 + $0x98] sm:$0xff] }
 0x202   : > { %v6631_v55 = vadd.f32 %v2822_v56, %v6525_v51  ;;  %v2824_v13 = vpop.f32.mrb[51].mxu1  ;;  %v2599_v63 = vpop.f32.mrb[51].mxu0  ;;  %v4807_v51 = vcombine.low %v415_v1, %v419_v2  ;;  %v4816_v56 = vcombine.high %v423_v39, %v427_v32  ;;  %v558_v1 = vld [vmem:[%s6245_s5 + $0x490] sm:$0xff]  ;;  %v435_v2 = vld [vmem:[%s6245_s5 + $0xb8] sm:$0xff] }
 0x204   : > { %3034 = vmatmul.mubr.bf16.gmra.mrb[156].mxu1 %v5051_v31  ;;  %3195 = vmatmul.mubr.bf16.gmra.mrb[156].mxu0 %v4925_v49 }
 0x205   : > { %3202 = vmatprep.mubr.bf16.mxu0 %v4934_v15  ;;  %3363 = vmatprep.mubr.bf16.mxu1 %v4808_v5 }
 0x207   : > { %v2827_v33 = vpop.f32.mrb[52].mxu1  ;;  %v6637_v21 = vpop.f32.mrb[52].mxu0 }
 0x208   : > { %v6640_v27 = vadd.f32 %v2827_v33, %v6533_v62  ;;  %v2829_v3 = vpop.f32.mrb[53].mxu1  ;;  %v2604_v31 = vpop.f32.mrb[53].mxu0  ;;  %v5774_v62 = vld [vmem:[#allocation9 + $0x8] sm:$0xff]  }
 0x209   : > { %v2830_v49 = vpop.f32.mrb[54].mxu1  ;;  %v6642_v15 = vpop.f32.mrb[54].mxu0  ;;  %5499 = vmatprep.subr.bf16.mxu0 %v5774_v62 }
 0x20a   : > { %v6645_v5 = vadd.f32 %v2830_v49, %v6537_v9  ;;  %v2832_v13 = vpop.f32.mrb[55].mxu1  ;;  %v2607_v63 = vpop.f32.mrb[55].mxu0  ;;  %5500 = vmatpush3.bf16.msra.mxu0 %v5774_v62  ;;  %v4941_v49 = vcombine.low %v550_v41, %v554_v7  ;;  %v570_v41 = vld [vmem:[%s6245_s5 + $0x4f0] sm:$0xff]  ;;  %v439_v7 = vld [vmem:[%s6245_s5 + $0xd8] sm:$0xff] }
 0x20b   : > { %v4824_v13 = vcombine.high %v431_v0, %v435_v2 }
 0x20c   : > { %3203 = vmatmul.mubr.bf16.gmra.mrb[160].mxu0 %v4933_v46  ;;  %3364 = vmatmul.mubr.bf16.vlgmr.msra.gmra.mrb[160].mxu1 %v4807_v51  ;;  %v4815_v51 = vcombine.low %v423_v39, %v427_v32  ;;  %v443_v39 = vld [vmem:[%s6245_s5 + $0xf8] sm:$0xff] }
 0x20d   : > { %3210 = vmatprep.mubr.bf16.mxu0 %v4942_v34  ;;  %3371 = vmatprep.mubr.bf16.mxu1 %v4816_v56  ;;  %v4950_v56 = vcombine.high %v558_v1, %v562_v23 }
 0x20f   : > { %v2835_v33 = vpop.f32.mrb[56].mxu1  ;;  %v6651_v3 = vpop.f32.mrb[56].mxu0 }
 0x210   : > { %v6654_v31 = vadd.f32 %v2835_v33, %v6545_v19  ;;  %v2837_v9 = vpop.f32.mrb[57].mxu1  ;;  %v2612_v46 = vpop.f32.mrb[57].mxu0  ;;  %v566_v19 = vld [vmem:[%s6245_s5 + $0x4d0] sm:$0xff] }
 0x211   : > { %v2838_v34 = vpop.f32.mrb[58].mxu1  ;;  %v6656_v63 = vpop.f32.mrb[58].mxu0 }
 0x212   : > { %v6659_v52 = vadd.f32 %v2838_v34, %v6549_v30  ;;  %v2840_v62 = vpop.f32.mrb[59].mxu1  ;;  %v2615_v42 = vpop.f32.mrb[59].mxu0  ;;  %v4949_v30 = vcombine.low %v558_v1, %v562_v23  ;;  %v4958_v34 = vcombine.high %v566_v19, %v570_v41  ;;  %v578_v1 = vld [vmem:[%s6245_s5 + $0x530] sm:$0xff]  ;;  %v447_v23 = vld [vmem:[%s6245_s5 + $0x118] sm:$0xff] }
 0x213   : > { %v4823_v42 = vcombine.low %v431_v0, %v435_v2  ;;  %v451_v0 = vld [vmem:[%s6245_s5 + $0x138] sm:$0xff] }
 0x214   : > { %3211 = vmatmul.mubr.bf16.gmra.mrb[164].mxu0 %v4941_v49  ;;  %3372 = vmatmul.mubr.bf16.gmra.mrb[164].mxu1 %v4815_v51 }
 0x215   : > { %3218 = vmatprep.mubr.bf16.mxu0 %v4950_v56  ;;  %3379 = vmatprep.mubr.bf16.mxu1 %v4824_v13  ;;  %v4832_v56 = vcombine.high %v439_v7, %v443_v39 }
 0x217   : > { %v2843_v32 = vpop.f32.mrb[60].mxu1  ;;  %v6665_v33 = vpop.f32.mrb[60].mxu0 }
 0x218   : > { %v6668_v9 = vadd.f32 %v2843_v32, %v6557_v43  ;;  %v2845_v46 = vpop.f32.mrb[61].mxu1  ;;  %v2620_v49 = vpop.f32.mrb[61].mxu0  ;;  %v574_v43 = vld [vmem:[%s6245_s5 + $0x510] sm:$0xff] }
 0x219   : > { %v2846_v51 = vpop.f32.mrb[62].mxu1  ;;  %v6670_v13 = vpop.f32.mrb[62].mxu0 }
 0x21a   : > { %v6673_v62 = vadd.f32 %v2846_v51, %v6561_v57  ;;  %v2848_v26 = vpop.f32.mrb[63].mxu1  ;;  %v2623_v18 = vpop.f32.mrb[63].mxu0  ;;  %v4957_v57 = vcombine.low %v566_v19, %v570_v41  ;;  %v4840_v51 = vcombine.high %v447_v23, %v451_v0  ;;  %v586_v19 = vld [vmem:[%s6245_s5 + $0x570] sm:$0xff]  ;;  %v455_v41 = vld [vmem:[%s6245_s5 + $0x158] sm:$0xff] }
 0x21b   : > { %v4831_v18 = vcombine.low %v439_v7, %v443_v39  ;;  %v459_v7 = vld [vmem:[%s6245_s5 + $0x178] sm:$0xff] }
 0x21c   : > { %3219 = vmatmul.mubr.bf16.gmra.mrb[168].mxu0 %v4949_v30  ;;  %3380 = vmatmul.mubr.bf16.gmra.mrb[168].mxu1 %v4823_v42  ;;  %v4966_v42 = vcombine.high %v574_v43, %v578_v1 }
 0x21d   : > { %3226 = vmatprep.mubr.bf16.mxu0 %v4958_v34  ;;  %3387 = vmatprep.mubr.bf16.mxu1 %v4832_v56 }
 0x21f   : > { %v2851_v2 = vpop.f32.mrb[64].mxu1  ;;  %v6679_v32 = vpop.f32.mrb[64].mxu0 }
 0x220   : > { %v6682_v46 = vadd.f32 %v2851_v2, %v6567_v8  ;;  %v2853_v49 = vpop.f32.mrb[65].mxu1  ;;  %v2628_v26 = vpop.f32.mrb[65].mxu0  ;;  %v582_v8 = vld [vmem:[%s6245_s5 + $0x550] sm:$0xff] }
 0x221   : > { %v2854_v30 = vpop.f32.mrb[66].mxu1  ;;  %v6684_v34 = vpop.f32.mrb[66].mxu0 }
 0x222   : > { %v6687_v56 = vadd.f32 %v2854_v30, %v6572_v24  ;;  %v2856_v4 = vpop.f32.mrb[67].mxu1  ;;  %v2631_v61 = vpop.f32.mrb[67].mxu0  ;;  %v4965_v24 = vcombine.low %v574_v43, %v578_v1  ;;  %v4848_v30 = vcombine.high %v455_v41, %v459_v7  ;;  %v590_v43 = vld [vmem:[%s6245_s5 + $0x590] sm:$0xff] }
 0x223   : > { %v4839_v4 = vcombine.low %v447_v23, %v451_v0  ;;  %v594_v1 = vld [vmem:[%s6245_s5 + $0x5b0] sm:$0xff]  ;;  %v463_v23 = vld [vmem:[%s6245_s5 + $0x198] sm:$0xff] }
 0x224   : > { %3227 = vmatmul.mubr.bf16.gmra.mrb[172].mxu0 %v4957_v57  ;;  %3388 = vmatmul.mubr.bf16.gmra.mrb[172].mxu1 %v4831_v18  ;;  %v4974_v18 = vcombine.high %v582_v8, %v586_v19  ;;  %v467_v0 = vld [vmem:[%s6245_s5 + $0x1b8] sm:$0xff] }
 0x225   : > { %3234 = vmatprep.mubr.bf16.mxu0 %v4966_v42  ;;  %3395 = vmatprep.mubr.bf16.mxu1 %v4840_v51 }
 0x227   : > { %v2859_v39 = vpop.f32.mrb[68].mxu1  ;;  %v6693_v2 = vpop.f32.mrb[68].mxu0 }
 0x228   : > { %v6696_v49 = vadd.f32 %v2859_v39, %v6581_v36  ;;  %v2861_v26 = vpop.f32.mrb[69].mxu1  ;;  %v2636_v61 = vpop.f32.mrb[69].mxu0  ;;  %v5775_v36 = vld [vmem:[#allocation9 + $0x10] sm:$0xff]  }
 0x229   : > { %v2862_v57 = vpop.f32.mrb[70].mxu1  ;;  %v6698_v42 = vpop.f32.mrb[70].mxu0  ;;  %5501 = vmatprep.subr.bf16.mxu0 %v5775_v36 }
 0x22a   : > { %v6701_v51 = vadd.f32 %v2862_v57, %v6586_v58  ;;  %v2864_v48 = vpop.f32.mrb[71].mxu1  ;;  %v2639_v40 = vpop.f32.mrb[71].mxu0  ;;  %5502 = vmatpush3.bf16.msra.mxu0 %v5775_v36  ;;  %v4847_v58 = vcombine.low %v455_v41, %v459_v7  ;;  %v4982_v57 = vcombine.high %v590_v43, %v594_v1  ;;  %v475_v41 = vld [vmem:[%s6245_s5 + $0x1f8] sm:$0xff] }
 0x22b   : > { %v4973_v40 = vcombine.low %v582_v8, %v586_v19  ;;  %v602_v8 = vld [vmem:[%s6245_s5 + $0x5f0] sm:$0xff]  ;;  %v471_v19 = vld [vmem:[%s6245_s5 + $0x1d8] sm:$0xff] }
 0x22c   : > { %3235 = vmatmul.mubr.bf16.gmra.mrb[176].mxu0 %v4965_v24  ;;  %3396 = vmatmul.mubr.bf16.gmra.mrb[176].mxu1 %v4839_v4 }
 0x22d   : > { %3242 = vmatprep.mubr.bf16.mxu0 %v4974_v18  ;;  %3403 = vmatprep.mubr.bf16.mxu1 %v4848_v30  ;;  %v4856_v18 = vcombine.high %v463_v23, %v467_v0 }
 0x22f   : > { %v2867_v39 = vpop.f32.mrb[72].mxu1  ;;  %v6707_v26 = vpop.f32.mrb[72].mxu0 }
 0x230   : > { %v6710_v61 = vadd.f32 %v2867_v39, %v6595_v14  ;;  %v2869_v48 = vpop.f32.mrb[73].mxu1  ;;  %v2644_v24 = vpop.f32.mrb[73].mxu0  ;;  %v598_v14 = vld [vmem:[%s6245_s5 + $0x5d0] sm:$0xff] }
 0x231   : > { %v2870_v4 = vpop.f32.mrb[74].mxu1  ;;  %v6712_v30 = vpop.f32.mrb[74].mxu0 }
 0x232   : > { %v6715_v28 = vadd.f32 %v2870_v4, %v6600_v45  ;;  %v2872_v36 = vpop.f32.mrb[75].mxu1  ;;  %v2647_v22 = vpop.f32.mrb[75].mxu0  ;;  %v4981_v45 = vcombine.low %v590_v43, %v594_v1  ;;  %v4990_v4 = vcombine.high %v598_v14, %v602_v8  ;;  %v610_v43 = vld [vmem:[%s6245_s5 + $0x630] sm:$0xff]  ;;  %v479_v1 = vld [vmem:[%s6245_s5 + $0x218] sm:$0xff] }
 0x233   : > { %v4855_v22 = vcombine.low %v463_v23, %v467_v0  ;;  %v483_v23 = vld [vmem:[%s6245_s5 + $0x238] sm:$0xff] }
 0x234   : > { %7378 = vst [vmem:[#allocation28_spill] sm:$0xff] %v6715_v28  ;;  %3243 = vmatmul.mubr.bf16.gmra.mrb[180].mxu0 %v4973_v40  ;;  %3404 = vmatmul.mubr.bf16.gmra.mrb[180].mxu1 %v4847_v58 }
 0x235   : > { %3250 = vmatprep.mubr.bf16.mxu0 %v4982_v57  ;;  %3411 = vmatprep.mubr.bf16.mxu1 %v4856_v18  ;;  %v4864_v57 = vcombine.high %v471_v19, %v475_v41 }
 0x237   : > { %v2875_v7 = vpop.f32.mrb[76].mxu1  ;;  %v6721_v39 = vpop.f32.mrb[76].mxu0 }
 0x238   : > { %v6724_v48 = vadd.f32 %v2875_v7, %v6609_v50  ;;  %v2877_v24 = vpop.f32.mrb[77].mxu1  ;;  %v2652_v40 = vpop.f32.mrb[77].mxu0  ;;  %v606_v50 = vld [vmem:[%s6245_s5 + $0x610] sm:$0xff] }
 0x239   : > { %v2878_v58 = vpop.f32.mrb[78].mxu1  ;;  %v6726_v18 = vpop.f32.mrb[78].mxu0 }
 0x23a   : > { %7379 = vst [vmem:[#allocation29_spill] sm:$0xff] %v6724_v48  ;;  %v6729_v36 = vadd.f32 %v2878_v58, %v6614_v17  ;;  %v2880_v28 = vpop.f32.mrb[79].mxu1  ;;  %v2655_v12 = vpop.f32.mrb[79].mxu0  ;;  %v4989_v17 = vcombine.low %v598_v14, %v602_v8  ;;  %v4872_v58 = vcombine.high %v479_v1, %v483_v23  ;;  %v618_v14 = vld [vmem:[%s6245_s5 + $0x670] sm:$0xff]  ;;  %v487_v8 = vld [vmem:[%s6245_s5 + $0x258] sm:$0xff] }
 0x23b   : > { %v4863_v12 = vcombine.low %v471_v19, %v475_v41  ;;  %v491_v19 = vld [vmem:[%s6245_s5 + $0x278] sm:$0xff] }
 0x23c   : > { %7380 = vst [vmem:[#allocation30_spill] sm:$0xff] %v6729_v36  ;;  %3251 = vmatmul.mubr.bf16.gmra.mrb[184].mxu0 %v4981_v45  ;;  %3412 = vmatmul.mubr.bf16.gmra.mrb[184].mxu1 %v4855_v22  ;;  %v4998_v22 = vcombine.high %v606_v50, %v610_v43 }
 0x23d   : > { %3258 = vmatprep.mubr.bf16.mxu0 %v4990_v4  ;;  %3419 = vmatprep.mubr.bf16.mxu1 %v4864_v57 }
 0x23f   : > { %v2883_v0 = vpop.f32.mrb[80].mxu1  ;;  %v6735_v7 = vpop.f32.mrb[80].mxu0 }
 0x240   : > { %v6738_v24 = vadd.f32 %v2883_v0, %v6623_v29  ;;  %v2885_v40 = vpop.f32.mrb[81].mxu1  ;;  %v2660_v28 = vpop.f32.mrb[81].mxu0  ;;  %v614_v29 = vld [vmem:[%s6245_s5 + $0x650] sm:$0xff] }
 0x241   : > { %v2886_v45 = vpop.f32.mrb[82].mxu1  ;;  %v6740_v4 = vpop.f32.mrb[82].mxu0 }
 0x242   : > { %7381 = vst [vmem:[#allocation31_spill] sm:$0xff] %v6738_v24  ;;  %v6743_v57 = vadd.f32 %v2886_v45, %v6628_v11  ;;  %v2888_v36 = vpop.f32.mrb[83].mxu1  ;;  %v2663_v48 = vpop.f32.mrb[83].mxu0  ;;  %v4997_v11 = vcombine.low %v606_v50, %v610_v43  ;;  %v4880_v45 = vcombine.high %v487_v8, %v491_v19  ;;  %v622_v50 = vld [vmem:[%s6245_s5 + $0x690] sm:$0xff] }
 0x243   : > { %v4871_v36 = vcombine.low %v479_v1, %v483_v23  ;;  %v626_v43 = vld [vmem:[%s6245_s5 + $0x6b0] sm:$0xff]  ;;  %v495_v1 = vld [vmem:[%s6245_s5 + $0x298] sm:$0xff] }
 0x244   : > { %7382 = vst [vmem:[#allocation32_spill] sm:$0xff] %v6743_v57  ;;  %3259 = vmatmul.mubr.bf16.gmra.mrb[188].mxu0 %v4989_v17  ;;  %3420 = vmatmul.mubr.bf16.gmra.mrb[188].mxu1 %v4863_v12  ;;  %v5006_v12 = vcombine.high %v614_v29, %v618_v14  ;;  %v499_v23 = vld [vmem:[%s6245_s5 + $0x2b8] sm:$0xff] }
 0x245   : > { %3266 = vmatprep.mubr.bf16.mxu0 %v4998_v22  ;;  %3427 = vmatprep.mubr.bf16.mxu1 %v4872_v58 }
 0x247   : > { %v2891_v41 = vpop.f32.mrb[84].mxu1  ;;  %v6749_v0 = vpop.f32.mrb[84].mxu0 }
 0x248   : > { %v6752_v40 = vadd.f32 %v2891_v41, %v6637_v21  ;;  %v2893_v28 = vpop.f32.mrb[85].mxu1  ;;  %v2668_v48 = vpop.f32.mrb[85].mxu0  ;;  %v5776_v21 = vld [vmem:[#allocation9 + $0x18] sm:$0xff]  }
 0x249   : > { %v2894_v17 = vpop.f32.mrb[86].mxu1  ;;  %v6754_v22 = vpop.f32.mrb[86].mxu0  ;;  %5503 = vmatprep.subr.bf16.mxu0 %v5776_v21 }
 0x24a   : > { %7383 = vst [vmem:[#allocation33_spill] sm:$0xff] %v6752_v40  ;;  %v6757_v58 = vadd.f32 %v2894_v17, %v6642_v15  ;;  %v2896_v57 = vpop.f32.mrb[87].mxu1  ;;  %v2671_v24 = vpop.f32.mrb[87].mxu0  ;;  %5504 = vmatpush3.bf16.msra.mxu0 %v5776_v21 }
 0x24b   : > { %v5005_v24 = vcombine.low %v614_v29, %v618_v14  ;;  %v4879_v57 = vcombine.low %v487_v8, %v491_v19  ;;  %v634_v29 = vld [vmem:[%s6245_s5 + $0x6f0] sm:$0xff]  ;;  %v503_v14 = vld [vmem:[%s6245_s5 + $0x2d8] sm:$0xff] }
 0x24c   : > { %7384 = vst [vmem:[#allocation34_spill] sm:$0xff] %v6757_v58  ;;  %3267 = vmatmul.mubr.bf16.gmra.mrb[192].mxu0 %v4997_v11  ;;  %3428 = vmatmul.mubr.bf16.gmra.mrb[192].mxu1 %v4871_v36  ;;  %v507_v8 = vld [vmem:[%s6245_s5 + $0x2f8] sm:$0xff] }
 0x24d   : > { %3274 = vmatprep.mubr.bf16.mxu0 %v5006_v12  ;;  %3435 = vmatprep.mubr.bf16.mxu1 %v4880_v45  ;;  %v5014_v12 = vcombine.high %v622_v50, %v626_v43  ;;  %v4888_v45 = vcombine.high %v495_v1, %v499_v23 }
 0x24f   : > { %v2899_v41 = vpop.f32.mrb[88].mxu1  ;;  %v6763_v28 = vpop.f32.mrb[88].mxu0 }
 0x250   : > { %v6766_v48 = vadd.f32 %v2899_v41, %v6651_v3  ;;  %v2901_v15 = vpop.f32.mrb[89].mxu1  ;;  %v2676_v11 = vpop.f32.mrb[89].mxu0  ;;  %v630_v3 = vld [vmem:[%s6245_s5 + $0x6d0] sm:$0xff] }
 0x251   : > { %v2902_v36 = vpop.f32.mrb[90].mxu1  ;;  %v6768_v17 = vpop.f32.mrb[90].mxu0 }
 0x252   : > { %7385 = vst [vmem:[#allocation35_spill] sm:$0xff] %v6766_v48  ;;  %v6771_v58 = vadd.f32 %v2902_v36, %v6656_v63  ;;  %v2904_v21 = vpop.f32.mrb[91].mxu1  ;;  %v2679_v40 = vpop.f32.mrb[91].mxu0 }
 0x253   : > { %v5013_v40 = vcombine.low %v622_v50, %v626_v43  ;;  %v515_v50 = vld [vmem:[%s6245_s5 + $0x338] sm:$0xff] }
 0x254   : > { %7386 = vst [vmem:[#allocation36_spill] sm:$0xff] %v6771_v58  ;;  %3275 = vmatmul.mubr.bf16.gmra.mrb[196].mxu0 %v5005_v24  ;;  %3436 = vmatmul.mubr.bf16.gmra.mrb[196].mxu1 %v4879_v57  ;;  %v4887_v24 = vcombine.low %v495_v1, %v499_v23 }
 0x255   : > { %3282 = vmatprep.mubr.bf16.mxu0 %v5014_v12  ;;  %3443 = vmatprep.mubr.bf16.mxu1 %v4888_v45  ;;  %v5022_v12 = vcombine.high %v630_v3, %v634_v29  ;;  %v4896_v45 = vcombine.high %v503_v14, %v507_v8 }
 0x257   : > { %v2907_v19 = vpop.f32.mrb[92].mxu1  ;;  %v6777_v41 = vpop.f32.mrb[92].mxu0 }
 0x258   : > { %v6780_v15 = vadd.f32 %v2907_v19, %v6665_v33  ;;  %v2909_v11 = vpop.f32.mrb[93].mxu1  ;;  %v2684_v63 = vpop.f32.mrb[93].mxu0  ;;  %v638_v33 = vld [vmem:[%s6245_s5 + $0x710] sm:$0xff] }
 0x259   : > { %v2910_v57 = vpop.f32.mrb[94].mxu1  ;;  %v6782_v36 = vpop.f32.mrb[94].mxu0  ;;  %v642_v19 = vld [vmem:[%s6245_s5 + $0x730] sm:$0xff]  ;;  %v511_v11 = vld [vmem:[%s6245_s5 + $0x318] sm:$0xff] }
 0x25a   : > { %7387 = vst [vmem:[#allocation37_spill] sm:$0xff] %v6780_v15  ;;  %v6785_v21 = vadd.f32 %v2910_v57, %v6670_v13  ;;  %v2912_v58 = vpop.f32.mrb[95].mxu1  ;;  %v2687_v48 = vpop.f32.mrb[95].mxu0 }
 0x25b   : > { %v5021_v58 = vcombine.low %v630_v3, %v634_v29  ;;  %v4895_v48 = vcombine.low %v503_v14, %v507_v8  ;;  %v5778_v3 = vld [vmem:[#allocation9 + $0x28] sm:$0xff]   ;;  %v519_v8 = vld [vmem:[%s6245_s5 + $0x358] sm:$0xff] }
 0x25c   : > { %7388 = vst [vmem:[#allocation38_spill] sm:$0xff] %v6785_v21  ;;  %3283 = vmatmul.mubr.bf16.gmra.mrb[200].mxu0 %v5013_v40  ;;  %3444 = vmatmul.mubr.bf16.gmra.mrb[200].mxu1 %v4887_v24  ;;  %v5777_v40 = vld [vmem:[#allocation9 + $0x20] sm:$0xff]   ;;  %v4904_v21 = vcombine.high %v511_v11, %v515_v50  ;;  %v646_v29 = vld [vmem:[%s6245_s5 + $0x750] sm:$0xff] }
 0x25d   : > { %3290 = vmatprep.mubr.bf16.mxu0 %v5022_v12  ;;  %3451 = vmatprep.mubr.bf16.mxu1 %v4896_v45  ;;  %v5030_v45 = vcombine.high %v638_v33, %v642_v19  ;;  %v650_v14 = vld [vmem:[%s6245_s5 + $0x770] sm:$0xff] }
 0x25e   : > { %5505 = vmatprep.subr.bf16.mxu0 %v5777_v40 }
 0x25f   : > { %v2915_v43 = vpop.f32.mrb[96].mxu1  ;;  %v3076_v1 = vpop.f32.mrb[96].mxu0  ;;  %5506 = vmatpush3.bf16.msra.mxu0 %v5777_v40 }
 0x260   : > { %v6792_v23 = vadd.f32 %v2915_v43, %v6679_v32  ;;  %v6795_v63 = vadd.f32 %v3076_v1, %v6570_v10  ;;  %v2917_v13 = vpop.f32.mrb[97].mxu1  ;;  %v3078_v57 = vpop.f32.mrb[97].mxu0  ;;  %v523_v1 = vld [vmem:[%s6245_s5 + $0x378] sm:$0xff]  ;;  %5507 = vmatprep.subr.bf16.mxu0 %v5778_v3 }
 0x261   : > { %v2918_v24 = vpop.f32.mrb[98].mxu1  ;;  %v3079_v12 = vpop.f32.mrb[98].mxu0 }
 0x262   : > { %v6798_v15 = vadd.f32 %v2918_v24, %v6684_v34  ;;  %v6801_v32 = vadd.f32 %v3079_v12, %v6575_v25  ;;  %v2920_v10 = vpop.f32.mrb[99].mxu1  ;;  %v3081_v43 = vpop.f32.mrb[99].mxu0  ;;  %v4903_v24 = vcombine.low %v511_v11, %v515_v50  ;;  %v5779_v12 = vld [vmem:[#allocation9 + $0x30] sm:$0xff]  }
 0x263   : > { %5508 = vmatpush3.bf16.msra.mxu0 %v5778_v3  ;;  %v5038_v10 = vcombine.high %v646_v29, %v650_v14  ;;  %v4912_v43 = vcombine.high %v519_v8, %v523_v1  ;;  %v658_v11 = vld [vmem:[%s6245_s5 + $0x7b0] sm:$0xff]  ;;  %v527_v50 = vld [vmem:[%s6245_s5 + $0x398] sm:$0xff] }
 0x264   : > { %3291 = vmatmul.mubr.bf16.gmra.mrb[204].mxu0 %v5021_v58  ;;  %3452 = vmatmul.mubr.bf16.gmra.mrb[204].mxu1 %v4895_v48  ;;  %v5029_v48 = vcombine.low %v638_v33, %v642_v19  ;;  %v5780_v33 = vld [vmem:[#allocation9 + $0x38] sm:$0xff]   ;;  %v654_v19 = vld [vmem:[%s6245_s5 + $0x790] sm:$0xff] }
 0x265   : > { %3298 = vmatprep.mubr.bf16.mxu0 %v5030_v45  ;;  %3459 = vmatprep.mubr.bf16.mxu1 %v4904_v21 }
 0x266   : > { %5509 = vmatprep.subr.bf16.mxu0 %v5779_v12 }
 0x267   : > { %v2923_v13 = vpop.f32.mrb[100].mxu1  ;;  %v3084_v34 = vpop.f32.mrb[100].mxu0  ;;  %5510 = vmatpush3.bf16.msra.mxu0 %v5779_v12 }
 0x268   : > { %v6808_v25 = vadd.f32 %v2923_v13, %v6693_v2  ;;  %v6811_v57 = vadd.f32 %v3084_v34, %v6584_v37  ;;  %v2925_v40 = vpop.f32.mrb[101].mxu1  ;;  %v3086_v58 = vpop.f32.mrb[101].mxu0  ;;  %v531_v34 = vld [vmem:[%s6245_s5 + $0x3b8] sm:$0xff]  ;;  %5511 = vmatprep.subr.bf16.mxu0 %v5780_v33 }
 0x269   : > { %v2926_v21 = vpop.f32.mrb[102].mxu1  ;;  %v3087_v45 = vpop.f32.mrb[102].mxu0 }
 0x26a   : > { %v6814_v3 = vadd.f32 %v2926_v21, %v6698_v42  ;;  %v6817_v2 = vadd.f32 %v3087_v45, %v6589_v59  ;;  %v2928_v37 = vpop.f32.mrb[103].mxu1  ;;  %v3089_v13 = vpop.f32.mrb[103].mxu0  ;;  %v4911_v21 = vcombine.low %v519_v8, %v523_v1  ;;  %v535_v8 = vld [vmem:[%s6245_s5 + $0x3d8] sm:$0xff] }
 0x26b   : > { %5512 = vmatpush3.bf16.msra.mxu0 %v5780_v33  ;;  %v4920_v37 = vcombine.high %v527_v50, %v531_v34  ;;  %v539_v1 = vld [vmem:[%s6245_s5 + $0x3f8] sm:$0xff] }
 0x26c   : > { %3299 = vmatmul.mubr.bf16.gmra.mrb[208].mxu0 %v5029_v48  ;;  %3460 = vmatmul.mubr.bf16.gmra.mrb[208].mxu1 %v4903_v24  ;;  %v5037_v24 = vcombine.low %v646_v29, %v650_v14  ;;  %v662_v29 = vld [vmem:[%s6245_s5 + $0x7d0] sm:$0xff] }
 0x26d   : > { %3306 = vmatprep.mubr.bf16.mxu0 %v5038_v10  ;;  %3467 = vmatprep.mubr.bf16.mxu1 %v4912_v43  ;;  %v5046_v43 = vcombine.high %v654_v19, %v658_v11  ;;  %v666_v14 = vld [vmem:[%s6245_s5 + $0x7f0] sm:$0xff] }
 0x26f   : > { %v2931_v40 = vpop.f32.mrb[104].mxu1  ;;  %v3092_v42 = vpop.f32.mrb[104].mxu0 }
 0x270   : > { %v6824_v59 = vadd.f32 %v2931_v40, %v6707_v26  ;;  %v6827_v58 = vadd.f32 %v3092_v42, %v6598_v16  ;;  %v2933_v12 = vpop.f32.mrb[105].mxu1  ;;  %v3094_v48 = vpop.f32.mrb[105].mxu0 }
 0x271   : > { %v2934_v45 = vpop.f32.mrb[106].mxu1  ;;  %v3095_v10 = vpop.f32.mrb[106].mxu0 }
 0x272   : > { %v6830_v13 = vadd.f32 %v2934_v45, %v6712_v30  ;;  %v6833_v26 = vadd.f32 %v3095_v10, %v6603_v47  ;;  %v2936_v16 = vpop.f32.mrb[107].mxu1  ;;  %v3097_v33 = vpop.f32.mrb[107].mxu0 }
 0x274   : > { %3307 = vmatmul.mubr.bf16.gmra.mrb[212].mxu0 %v5037_v24  ;;  %3468 = vmatmul.mubr.bf16.gmra.mrb[212].mxu1 %v4911_v21  ;;  %v5045_v24 = vcombine.low %v654_v19, %v658_v11  ;;  %v4919_v21 = vcombine.low %v527_v50, %v531_v34 }
 0x275   : > { %3314 = vmatprep.mubr.bf16.mxu0 %v5046_v43  ;;  %3475 = vmatprep.mubr.bf16.mxu1 %v4920_v37  ;;  %v5054_v43 = vcombine.high %v662_v29, %v666_v14  ;;  %v4928_v37 = vcombine.high %v535_v8, %v539_v1 }
 0x277   : > { %v2939_v40 = vpop.f32.mrb[108].mxu1  ;;  %v3100_v42 = vpop.f32.mrb[108].mxu0 }
 0x278   : > { %v6840_v12 = vadd.f32 %v2939_v40, %v6721_v39  ;;  %v6843_v30 = vadd.f32 %v3100_v42, %v6612_v53  ;;  %v2941_v47 = vpop.f32.mrb[109].mxu1  ;;  %v3102_v48 = vpop.f32.mrb[109].mxu0  ;;  %v543_v53 = vld [vmem:[%s6245_s5 + $0x418] sm:$0xff] }
 0x279   : > { %v2942_v45 = vpop.f32.mrb[110].mxu1  ;;  %v3103_v10 = vpop.f32.mrb[110].mxu0  ;;  %v547_v42 = vld [vmem:[%s6245_s5 + $0x438] sm:$0xff]  ;;  %v5053_v47 = vcombine.low %v662_v29, %v666_v14  ;;  %v4927_v48 = vcombine.low %v535_v8, %v539_v1 }
 0x27a   : > { %v6846_v16 = vadd.f32 %v2942_v45, %v6726_v18  ;;  %v6849_v33 = vadd.f32 %v3103_v10, %v6617_v20  ;;  %v2944_v39 = vpop.f32.mrb[111].mxu1  ;;  %v3105_v40 = vpop.f32.mrb[111].mxu0  ;;  %v4936_v45 = vcombine.high %v543_v53, %v547_v42  ;;  %v4935_v1 = vcombine.low %v543_v53, %v547_v42 }
 0x27b   : > { %v555_v39 = vld [vmem:[%s6245_s5 + $0x478] sm:$0xff] }
 0x27c   : > { %3315 = vmatmul.mubr.bf16.gmra.mrb[216].mxu0 %v5045_v24  ;;  %3476 = vmatmul.mubr.bf16.gmra.mrb[216].mxu1 %v4919_v21 }
 0x27d   : > { %3322 = vmatprep.mubr.bf16.mxu0 %v5054_v43  ;;  %3483 = vmatprep.mubr.bf16.mxu1 %v4928_v37 }
 0x27f   : > { %v2947_v19 = vpop.f32.mrb[112].mxu1  ;;  %v3108_v11 = vpop.f32.mrb[112].mxu0 }
 0x280   : > { %v6854_v50 = vadd.f32 %v2947_v19, %v6735_v7  ;;  %v6857_v18 = vadd.f32 %v3108_v11, %v6626_v35  ;;  %v2949_v20 = vpop.f32.mrb[113].mxu1  ;;  %v3110_v34 = vpop.f32.mrb[113].mxu0  ;;  %v551_v35 = vld [vmem:[%s6245_s5 + $0x458] sm:$0xff] }
 0x281   : > { %v2950_v24 = vpop.f32.mrb[114].mxu1  ;;  %v3111_v21 = vpop.f32.mrb[114].mxu0  ;;  %v4944_v20 = vcombine.high %v551_v35, %v555_v39 }
 0x282   : > { %v6860_v10 = vadd.f32 %v2950_v24, %v6740_v4  ;;  %v6863_v43 = vadd.f32 %v3111_v21, %v6631_v55  ;;  %v2952_v7 = vpop.f32.mrb[115].mxu1  ;;  %v3113_v37 = vpop.f32.mrb[115].mxu0  ;;  %v563_v21 = vld [vmem:[%s6245_s5 + $0x4b8] sm:$0xff] }
 0x284   : > { %3323 = vmatmul.mubr.bf16.gmra.mrb[220].mxu0 %v5053_v47  ;;  %3484 = vmatmul.mubr.bf16.gmra.mrb[220].mxu1 %v4927_v48 }
 0x285   : > { %3491 = vmatprep.mubr.bf16.mxu1 %v4936_v45 }
 0x287   : > { %v2955_v40 = vpop.f32.mrb[116].mxu1  ;;  %v3116_v29 = vpop.f32.mrb[116].mxu0 }
 0x288   : > { %v6868_v14 = vadd.f32 %v2955_v40, %v6749_v0  ;;  %v6871_v4 = vadd.f32 %v3116_v29, %v6640_v27  ;;  %v2957_v8 = vpop.f32.mrb[117].mxu1  ;;  %v3118_v55 = vpop.f32.mrb[117].mxu0  ;;  %v559_v0 = vld [vmem:[%s6245_s5 + $0x498] sm:$0xff] }
 0x289   : > { %v2958_v19 = vpop.f32.mrb[118].mxu1  ;;  %v3119_v11 = vpop.f32.mrb[118].mxu0  ;;  %v4952_v29 = vcombine.high %v559_v0, %v563_v21 }
 0x28a   : > { %v6874_v34 = vadd.f32 %v2958_v19, %v6754_v22  ;;  %v6877_v47 = vadd.f32 %v3119_v11, %v6645_v5  ;;  %v2960_v48 = vpop.f32.mrb[119].mxu1  ;;  %v3121_v24 = vpop.f32.mrb[119].mxu0  ;;  %v4943_v5 = vcombine.low %v551_v35, %v555_v39  ;;  %v571_v11 = vld [vmem:[%s6245_s5 + $0x4f8] sm:$0xff] }
 0x28c   : > { %3492 = vmatmul.mubr.bf16.gmra.mrb[224].mxu1 %v4935_v1 }
 0x28d   : > { %3499 = vmatprep.mubr.bf16.mxu1 %v4944_v20 }
 0x28f   : > { %v2963_v27 = vpop.f32.mrb[120].mxu1  ;;  %v3124_v45 = vpop.f32.mrb[120].mxu0 }
 0x290   : > { %v6882_v53 = vadd.f32 %v2963_v27, %v6763_v28  ;;  %v6885_v42 = vadd.f32 %v3124_v45, %v6654_v31  ;;  %v2965_v22 = vpop.f32.mrb[121].mxu1  ;;  %v3126_v7 = vpop.f32.mrb[121].mxu0  ;;  %v567_v28 = vld [vmem:[%s6245_s5 + $0x4d8] sm:$0xff] }
 0x291   : > { %v2966_v37 = vpop.f32.mrb[122].mxu1  ;;  %v3127_v40 = vpop.f32.mrb[122].mxu0  ;;  %v4960_v45 = vcombine.high %v567_v28, %v571_v11 }
 0x292   : > { %v6888_v8 = vadd.f32 %v2966_v37, %v6768_v17  ;;  %v6891_v55 = vadd.f32 %v3127_v40, %v6659_v52  ;;  %v2968_v1 = vpop.f32.mrb[123].mxu1  ;;  %v3129_v19 = vpop.f32.mrb[123].mxu0  ;;  %v4951_v52 = vcombine.low %v559_v0, %v563_v21  ;;  %v579_v40 = vld [vmem:[%s6245_s5 + $0x538] sm:$0xff] }
 0x294   : > { %3500 = vmatmul.mubr.bf16.gmra.mrb[228].mxu1 %v4943_v5 }
 0x295   : > { %3507 = vmatprep.mubr.bf16.mxu1 %v4952_v29 }
 0x297   : > { %v2971_v31 = vpop.f32.mrb[124].mxu1  ;;  %v3132_v20 = vpop.f32.mrb[124].mxu0 }
 0x298   : > { %v6896_v35 = vadd.f32 %v2971_v31, %v6777_v41  ;;  %v6899_v39 = vadd.f32 %v3132_v20, %v6668_v9  ;;  %v2973_v17 = vpop.f32.mrb[125].mxu1  ;;  %v3134_v48 = vpop.f32.mrb[125].mxu0  ;;  %v575_v41 = vld [vmem:[%s6245_s5 + $0x518] sm:$0xff] }
 0x299   : > { %v2974_v24 = vpop.f32.mrb[126].mxu1  ;;  %v3135_v27 = vpop.f32.mrb[126].mxu0  ;;  %v4968_v20 = vcombine.high %v575_v41, %v579_v40 }
 0x29a   : > { %v6902_v22 = vadd.f32 %v2974_v24, %v6782_v36  ;;  %v6905_v7 = vadd.f32 %v3135_v27, %v6673_v62  ;;  %v2976_v5 = vpop.f32.mrb[127].mxu1  ;;  %v3137_v37 = vpop.f32.mrb[127].mxu0  ;;  %v4959_v62 = vcombine.low %v567_v28, %v571_v11  ;;  %v587_v27 = vld [vmem:[%s6245_s5 + $0x578] sm:$0xff] }
 0x29c   : > { %3508 = vmatmul.mubr.bf16.gmra.mrb[232].mxu1 %v4951_v52 }
 0x29d   : > { %3515 = vmatprep.mubr.bf16.mxu1 %v4960_v45 }
 0x29f   : > { %v2979_v9 = vpop.f32.mrb[128].mxu1  ;;  %v3140_v29 = vpop.f32.mrb[128].mxu0 }
 0x2a0   : > { %v6910_v0 = vadd.f32 %v2979_v9, %v6471_v38  ;;  %v6913_v21 = vadd.f32 %v3140_v29, %v6682_v46  ;;  %v2981_v36 = vpop.f32.mrb[129].mxu1  ;;  %v3142_v1 = vpop.f32.mrb[129].mxu0  ;;  %v583_v38 = vld [vmem:[%s6245_s5 + $0x558] sm:$0xff] }
 0x2a1   : > { %v2982_v19 = vpop.f32.mrb[130].mxu1  ;;  %v3143_v31 = vpop.f32.mrb[130].mxu0  ;;  %v4976_v29 = vcombine.high %v583_v38, %v587_v27 }
 0x2a2   : > { %v6916_v17 = vadd.f32 %v2982_v19, %v6475_v44  ;;  %v6919_v48 = vadd.f32 %v3143_v31, %v6687_v56  ;;  %v2984_v52 = vpop.f32.mrb[131].mxu1  ;;  %v3145_v24 = vpop.f32.mrb[131].mxu0  ;;  %v4967_v56 = vcombine.low %v575_v41, %v579_v40  ;;  %v595_v31 = vld [vmem:[%s6245_s5 + $0x5b8] sm:$0xff] }
 0x2a4   : > { %3516 = vmatmul.mubr.bf16.gmra.mrb[236].mxu1 %v4959_v62 }
 0x2a5   : > { %3523 = vmatprep.mubr.bf16.mxu1 %v4968_v20 }
 0x2a7   : > { %v2987_v46 = vpop.f32.mrb[132].mxu1  ;;  %v3148_v45 = vpop.f32.mrb[132].mxu0 }
 0x2a8   : > { %v6924_v28 = vadd.f32 %v2987_v46, %v6483_v54  ;;  %v6927_v11 = vadd.f32 %v3148_v45, %v6696_v49  ;;  %v2989_v44 = vpop.f32.mrb[133].mxu1  ;;  %v3150_v5 = vpop.f32.mrb[133].mxu0  ;;  %v591_v54 = vld [vmem:[%s6245_s5 + $0x598] sm:$0xff] }
 0x2a9   : > { %v2990_v37 = vpop.f32.mrb[134].mxu1  ;;  %v3151_v9 = vpop.f32.mrb[134].mxu0  ;;  %v4984_v45 = vcombine.high %v591_v54, %v595_v31  ;;  %v7389_v44 = vld [vmem:[#allocation17_spill] sm:$0xff] }
 0x2aa   : > { %v6930_v36 = vadd.f32 %v2990_v37, %v6487_v60  ;;  %v6933_v1 = vadd.f32 %v3151_v9, %v6701_v51  ;;  %v2992_v62 = vpop.f32.mrb[135].mxu1  ;;  %v3153_v19 = vpop.f32.mrb[135].mxu0  ;;  %v4975_v51 = vcombine.low %v583_v38, %v587_v27  ;;  %v7395_v27 = vld [vmem:[#allocation29_spill] sm:$0xff] }
 0x2ab   : > { %v603_v62 = vld [vmem:[%s6245_s5 + $0x5f8] sm:$0xff] }
 0x2ac   : > { %3524 = vmatmul.mubr.bf16.gmra.mrb[240].mxu1 %v4967_v56  ;;  %v7391_v56 = vld [vmem:[#allocation28_spill] sm:$0xff] }
 0x2ad   : > { %3531 = vmatprep.mubr.bf16.mxu1 %v4976_v29 }
 0x2af   : > { %v2995_v49 = vpop.f32.mrb[136].mxu1  ;;  %v3156_v20 = vpop.f32.mrb[136].mxu0 }
 0x2b0   : > { %v6938_v41 = vadd.f32 %v2995_v49, %v6495_v6  ;;  %v6941_v40 = vadd.f32 %v3156_v20, %v6710_v61  ;;  %v2997_v60 = vpop.f32.mrb[137].mxu1  ;;  %v3158_v52 = vpop.f32.mrb[137].mxu0  ;;  %v599_v6 = vld [vmem:[%s6245_s5 + $0x5d8] sm:$0xff]  ;;  %v7393_v49 = vld [vmem:[#allocation18_spill] sm:$0xff] }
 0x2b1   : > { %v2998_v24 = vpop.f32.mrb[138].mxu1  ;;  %v3159_v46 = vpop.f32.mrb[138].mxu0 }
 0x2b2   : > { %v6944_v5 = vadd.f32 %v2998_v24, %v7389_v44  ;;  %v6947_v37 = vadd.f32 %v3159_v46, %v7391_v56  ;;  %v3000_v9 = vpop.f32.mrb[139].mxu1  ;;  %v3161_v29 = vpop.f32.mrb[139].mxu0  ;;  %v4983_v24 = vcombine.low %v591_v54, %v595_v31  ;;  %v4992_v56 = vcombine.high %v599_v6, %v603_v62  ;;  %v7403_v31 = vld [vmem:[#allocation31_spill] sm:$0xff] }
 0x2b3   : > { %v7399_v9 = vld [vmem:[#allocation30_spill] sm:$0xff] }
 0x2b4   : > { %7390 = vst [vmem:[#allocation17_spill] sm:$0xff] %v6944_v5  ;;  %7392 = vst [vmem:[#allocation28_spill] sm:$0xff] %v6947_v37  ;;  %3532 = vmatmul.mubr.bf16.gmra.mrb[244].mxu1 %v4975_v51  ;;  %v7397_v51 = vld [vmem:[#allocation19_spill] sm:$0xff] }
 0x2b5   : > { %3539 = vmatprep.mubr.bf16.mxu1 %v4984_v45 }
 0x2b7   : > { %v3003_v61 = vpop.f32.mrb[140].mxu1  ;;  %v3164_v19 = vpop.f32.mrb[140].mxu0 }
 0x2b8   : > { %v6952_v38 = vadd.f32 %v3003_v61, %v7393_v49  ;;  %v6955_v20 = vadd.f32 %v3164_v19, %v7395_v27  ;;  %v3005_v60 = vpop.f32.mrb[141].mxu1  ;;  %v3166_v52 = vpop.f32.mrb[141].mxu0  ;;  %v607_v61 = vld [vmem:[%s6245_s5 + $0x618] sm:$0xff] }
 0x2b9   : > { %v3006_v46 = vpop.f32.mrb[142].mxu1  ;;  %v3167_v44 = vpop.f32.mrb[142].mxu0  ;;  %v611_v49 = vld [vmem:[%s6245_s5 + $0x638] sm:$0xff] }
 0x2ba   : > { %7394 = vst [vmem:[#allocation18_spill] sm:$0xff] %v6952_v38  ;;  %7396 = vst [vmem:[#allocation29_spill] sm:$0xff] %v6955_v20  ;;  %v6958_v45 = vadd.f32 %v3006_v46, %v7397_v51  ;;  %v6961_v29 = vadd.f32 %v3167_v44, %v7399_v9  ;;  %v3008_v37 = vpop.f32.mrb[143].mxu1  ;;  %v3169_v5 = vpop.f32.mrb[143].mxu0  ;;  %v7401_v60 = vld [vmem:[#allocation20_spill] sm:$0xff]  ;;  %v4991_v44 = vcombine.low %v599_v6, %v603_v62  ;;  %v7411_v62 = vld [vmem:[#allocation33_spill] sm:$0xff] }
 0x2bb   : > { %v5000_v5 = vcombine.high %v607_v61, %v611_v49 }
 0x2bc   : > { %7398 = vst [vmem:[#allocation19_spill] sm:$0xff] %v6958_v45  ;;  %7400 = vst [vmem:[#allocation30_spill] sm:$0xff] %v6961_v29  ;;  %3540 = vmatmul.mubr.bf16.gmra.mrb[248].mxu1 %v4983_v24  ;;  %v7405_v24 = vld [vmem:[#allocation21_spill] sm:$0xff]  ;;  %v7407_v29 = vld [vmem:[#allocation32_spill] sm:$0xff] }
 0x2bd   : > { %3547 = vmatprep.mubr.bf16.mxu1 %v4992_v56 }
 0x2bf   : > { %v3011_v19 = vpop.f32.mrb[144].mxu1  ;;  %v3172_v27 = vpop.f32.mrb[144].mxu0 }
 0x2c0   : > { %v6966_v54 = vadd.f32 %v3011_v19, %v7401_v60  ;;  %v6969_v52 = vadd.f32 %v3172_v27, %v7403_v31  ;;  %v3013_v46 = vpop.f32.mrb[145].mxu1  ;;  %v3174_v51 = vpop.f32.mrb[145].mxu0  ;;  %v615_v19 = vld [vmem:[%s6245_s5 + $0x658] sm:$0xff] }
 0x2c1   : > { %v3014_v9 = vpop.f32.mrb[146].mxu1  ;;  %v3175_v37 = vpop.f32.mrb[146].mxu0  ;;  %v619_v60 = vld [vmem:[%s6245_s5 + $0x678] sm:$0xff]  ;;  %v7409_v46 = vld [vmem:[#allocation22_spill] sm:$0xff] }
 0x2c2   : > { %7402 = vst [vmem:[#allocation20_spill] sm:$0xff] %v6966_v54  ;;  %7404 = vst [vmem:[#allocation31_spill] sm:$0xff] %v6969_v52  ;;  %v6972_v56 = vadd.f32 %v3014_v9, %v7405_v24  ;;  %v6975_v45 = vadd.f32 %v3175_v37, %v7407_v29  ;;  %v3016_v20 = vpop.f32.mrb[147].mxu1  ;;  %v3177_v38 = vpop.f32.mrb[147].mxu0  ;;  %v4999_v29 = vcombine.low %v607_v61, %v611_v49  ;;  %v7419_v49 = vld [vmem:[#allocation35_spill] sm:$0xff] }
 0x2c3   : > { %v5008_v38 = vcombine.high %v615_v19, %v619_v60 }
 0x2c4   : > { %7406 = vst [vmem:[#allocation21_spill] sm:$0xff] %v6972_v56  ;;  %7408 = vst [vmem:[#allocation32_spill] sm:$0xff] %v6975_v45  ;;  %3548 = vmatmul.mubr.bf16.gmra.mrb[252].mxu1 %v4991_v44  ;;  %v7413_v44 = vld [vmem:[#allocation23_spill] sm:$0xff]  ;;  %v7415_v45 = vld [vmem:[#allocation34_spill] sm:$0xff] }
 0x2c5   : > { %3555 = vmatprep.mubr.bf16.mxu1 %v5000_v5 }
 0x2c7   : > { %v3019_v27 = vpop.f32.mrb[148].mxu1  ;;  %v3180_v31 = vpop.f32.mrb[148].mxu0 }
 0x2c8   : > { %v6980_v6 = vadd.f32 %v3019_v27, %v7409_v46  ;;  %v6983_v51 = vadd.f32 %v3180_v31, %v7411_v62  ;;  %v3021_v9 = vpop.f32.mrb[149].mxu1  ;;  %v3182_v24 = vpop.f32.mrb[149].mxu0  ;;  %v623_v27 = vld [vmem:[%s6245_s5 + $0x698] sm:$0xff] }
 0x2c9   : > { %v3022_v37 = vpop.f32.mrb[150].mxu1  ;;  %v3183_v20 = vpop.f32.mrb[150].mxu0  ;;  %v627_v46 = vld [vmem:[%s6245_s5 + $0x6b8] sm:$0xff] }
 0x2ca   : > { %7410 = vst [vmem:[#allocation22_spill] sm:$0xff] %v6980_v6  ;;  %7412 = vst [vmem:[#allocation33_spill] sm:$0xff] %v6983_v51  ;;  %v6986_v5 = vadd.f32 %v3022_v37, %v7413_v44  ;;  %v6989_v56 = vadd.f32 %v3183_v20, %v7415_v45  ;;  %v3024_v52 = vpop.f32.mrb[151].mxu1  ;;  %v3185_v54 = vpop.f32.mrb[151].mxu0  ;;  %v7417_v9 = vld [vmem:[#allocation24_spill] sm:$0xff]  ;;  %v5007_v45 = vcombine.low %v615_v19, %v619_v60  ;;  %v7426_v60 = vld [vmem:[#allocation37_spill] sm:$0xff] }
 0x2cb   : > { %v5016_v54 = vcombine.high %v623_v27, %v627_v46 }
 0x2cc   : > { %7414 = vst [vmem:[#allocation23_spill] sm:$0xff] %v6986_v5  ;;  %7416 = vst [vmem:[#allocation34_spill] sm:$0xff] %v6989_v56  ;;  %3556 = vmatmul.mubr.bf16.gmra.mrb[0].mxu1 %v4999_v29  ;;  %v7421_v29 = vld [vmem:[#allocation25_spill] sm:$0xff]  ;;  %v7423_v56 = vld [vmem:[#allocation36_spill] sm:$0xff] }
 0x2cd   : > { %3563 = vmatprep.mubr.bf16.mxu1 %v5008_v38 }
 0x2cf   : > { %v3027_v31 = vpop.f32.mrb[152].mxu1  ;;  %v3188_v62 = vpop.f32.mrb[152].mxu0 }
 0x2d0   : > { %v6994_v61 = vadd.f32 %v3027_v31, %v7417_v9  ;;  %v6997_v24 = vadd.f32 %v3188_v62, %v7419_v49  ;;  %v3029_v37 = vpop.f32.mrb[153].mxu1  ;;  %v3190_v44 = vpop.f32.mrb[153].mxu0  ;;  %v631_v31 = vld [vmem:[%s6245_s5 + $0x6d8] sm:$0xff] }
 0x2d1   : > { %v3030_v20 = vpop.f32.mrb[154].mxu1  ;;  %v3191_v52 = vpop.f32.mrb[154].mxu0  ;;  %v635_v9 = vld [vmem:[%s6245_s5 + $0x6f8] sm:$0xff]  ;;  %v7425_v37 = vld [vmem:[#allocation26_spill] sm:$0xff] }
 0x2d2   : > { %7418 = vst [vmem:[#allocation24_spill] sm:$0xff] %v6994_v61  ;;  %7420 = vst [vmem:[#allocation35_spill] sm:$0xff] %v6997_v24  ;;  %v7000_v38 = vadd.f32 %v3030_v20, %v7421_v29  ;;  %v7003_v5 = vadd.f32 %v3191_v52, %v7423_v56  ;;  %v3032_v51 = vpop.f32.mrb[155].mxu1  ;;  %v3193_v6 = vpop.f32.mrb[155].mxu0  ;;  %v5015_v56 = vcombine.low %v623_v27, %v627_v46 }
 0x2d3   : > { %v5024_v6 = vcombine.high %v631_v31, %v635_v9 }
 0x2d4   : > { %7422 = vst [vmem:[#allocation25_spill] sm:$0xff] %v7000_v38  ;;  %7424 = vst [vmem:[#allocation36_spill] sm:$0xff] %v7003_v5  ;;  %3564 = vmatmul.mubr.bf16.gmra.mrb[4].mxu1 %v5007_v45  ;;  %v7427_v45 = vld [vmem:[#allocation27_spill] sm:$0xff]  ;;  %v7428_v5 = vld [vmem:[#allocation38_spill] sm:$0xff] }
 0x2d5   : > { %3571 = vmatprep.mubr.bf16.mxu1 %v5016_v54 }
 0x2d7   : > { %v3035_v62 = vpop.f32.mrb[156].mxu1  ;;  %v3196_v49 = vpop.f32.mrb[156].mxu0 }
 0x2d8   : > { %v7008_v19 = vadd.f32 %v3035_v62, %v7425_v37  ;;  %v7011_v44 = vadd.f32 %v3196_v49, %v7426_v60  ;;  %v3037_v20 = vpop.f32.mrb[157].mxu1  ;;  %v3198_v29 = vpop.f32.mrb[157].mxu0  ;;  %v639_v62 = vld [vmem:[%s6245_s5 + $0x718] sm:$0xff] }
 0x2d9   : > { %v3038_v52 = vpop.f32.mrb[158].mxu1  ;;  %v3199_v51 = vpop.f32.mrb[158].mxu0  ;;  %v643_v37 = vld [vmem:[%s6245_s5 + $0x738] sm:$0xff]  ;;  %v7021_v20 = vld [vmem:[#allocation8] ss:$0 sm:$0xff] }
 0x2da   : > { %v7014_v54 = vadd.f32 %v3038_v52, %v7427_v45  ;;  %v7017_v38 = vadd.f32 %v3199_v51, %v7428_v5  ;;  %v3040_v24 = vpop.f32.mrb[159].mxu1  ;;  %v3201_v61 = vpop.f32.mrb[159].mxu0  ;;  %v5023_v5 = vcombine.low %v631_v31, %v635_v9  ;;  %v651_v31 = vld [vmem:[%s6245_s5 + $0x778] sm:$0xff] }
 0x2dc   : > { %7429 = vst [vmem:[#allocation26_spill] sm:$0xff] %v7017_v38  ;;  %3572 = vmatmul.mubr.bf16.gmra.mrb[8].mxu1 %v5015_v56  ;;  %v5032_v56 = vcombine.high %v639_v62, %v643_v37 }
 0x2dd   : > { %3579 = vmatprep.mubr.bf16.mxu1 %v5024_v6 }
 0x2df   : > { %v3204_v49 = vpop.f32.mrb[160].mxu0  ;;  %v3365_v60 = vpop.f32.mrb[160].mxu1 }
 0x2e0   : > { %v7024_v27 = vadd.f32 %v3204_v49, %v6792_v23  ;;  %v3366_v46 = vadd.f32 %v3365_v60, %v6795_v63  ;;  %v3206_v29 = vpop.f32.mrb[161].mxu0  ;;  %v3367_v52 = vpop.f32.mrb[161].mxu1 }
 0x2e1   : > { %v3207_v24 = vpop.f32.mrb[162].mxu0  ;;  %v3368_v61 = vpop.f32.mrb[162].mxu1  ;;  %v647_v29 = vld [vmem:[%s6245_s5 + $0x758] sm:$0xff] }
 0x2e2   : > { %7430 = vst [vmem:[#allocation37_spill] sm:$0xff] %v7024_v27  ;;  %v3822_v51 = vadd.f32 %v7021_v20, %v3366_v46  ;;  %v7029_v6 = vadd.f32 %v3207_v24, %v6798_v15  ;;  %v3369_v45 = vadd.f32 %v3368_v61, %v6801_v32  ;;  %v3370_v38 = vpop.f32.mrb[163].mxu1  ;;  %v3209_v23 = vpop.f32.mrb[163].mxu0 }
 0x2e3   : > { %v5031_v38 = vcombine.low %v639_v62, %v643_v37  ;;  %v655_v37 = vld [vmem:[%s6245_s5 + $0x798] sm:$0xff] }
 0x2e4   : > { %v3823_v49 = vadd.f32 %v7021_v20, %v3369_v45  ;;  %3580 = vmatmul.mubr.bf16.gmra.mrb[12].mxu1 %v5023_v5  ;;  %v3886_v63 = vmax.f32 %v3822_v51, 0.0 }
 0x2e5   : > { %3587 = vmatprep.mubr.bf16.mxu1 %v5032_v56  ;;  %v5040_v56 = vcombine.high %v647_v29, %v651_v31 }
 0x2e6   : > { %v3887_v60 = vmax.f32 %v3823_v49, 0.0 }
 0x2e7   : > { %v3212_v9 = vpop.f32.mrb[164].mxu0  ;;  %v3373_v52 = vpop.f32.mrb[164].mxu1 }
 0x2e8   : > { %v7036_v27 = vadd.f32 %v3212_v9, %v6808_v25  ;;  %v3374_v15 = vadd.f32 %v3373_v52, %v6811_v57  ;;  %v3214_v46 = vpop.f32.mrb[165].mxu0  ;;  %v3375_v24 = vpop.f32.mrb[165].mxu1  ;;  %v3950_v32 = vpack.c.bf16 %v3887_v60, %v3886_v63  ;;  %v659_v60 = vld [vmem:[%s6245_s5 + $0x7b8] sm:$0xff] }
 0x2e9   : > { %v3215_v61 = vpop.f32.mrb[166].mxu0  ;;  %v3376_v5 = vpop.f32.mrb[166].mxu1 }
 0x2ea   : > { %v3824_v51 = vadd.f32 %v7021_v20, %v3374_v15  ;;  %v7041_v45 = vadd.f32 %v3215_v61, %v6814_v3  ;;  %v3377_v23 = vadd.f32 %v3376_v5, %v6817_v2  ;;  %v3378_v25 = vpop.f32.mrb[167].mxu1  ;;  %5513 = vmatprep.mubr.bf16.mxu0 %v3950_v32  ;;  %v3217_v49 = vpop.f32.mrb[167].mxu0  ;;  %v5039_v32 = vcombine.low %v647_v29, %v651_v31  ;;  %v663_v31 = vld [vmem:[%s6245_s5 + $0x7d8] sm:$0xff] }
 0x2eb   : > { %v5048_v5 = vcombine.high %v655_v37, %v659_v60 }
 0x2ec   : > { %v3825_v57 = vadd.f32 %v7021_v20, %v3377_v23  ;;  %3588 = vmatmul.mubr.bf16.gmra.mrb[16].mxu1 %v5031_v38  ;;  %v3888_v63 = vmax.f32 %v3824_v51, 0.0 }
 0x2ed   : > { %3595 = vmatprep.mubr.bf16.mxu1 %v5040_v56 }
 0x2ee   : > { %v3889_v62 = vmax.f32 %v3825_v57, 0.0  ;;  %v667_v57 = vld [vmem:[%s6245_s5 + $0x7f8] sm:$0xff] }
 0x2ef   : > { %v3220_v9 = vpop.f32.mrb[168].mxu0  ;;  %v3381_v52 = vpop.f32.mrb[168].mxu1 }
 0x2f0   : > { %v3951_v46 = vpack.c.bf16 %v3889_v62, %v3888_v63  ;;  %v7048_v15 = vadd.f32 %v3220_v9, %v6824_v59  ;;  %v3382_v3 = vadd.f32 %v3381_v52, %v6827_v58  ;;  %v3222_v2 = vpop.f32.mrb[169].mxu0  ;;  %v3383_v24 = vpop.f32.mrb[169].mxu1 }
 0x2f1   : > { %v3223_v61 = vpop.f32.mrb[170].mxu0  ;;  %v3384_v38 = vpop.f32.mrb[170].mxu1 }
 0x2f2   : > { %v3826_v56 = vadd.f32 %v7021_v20, %v3382_v3  ;;  %v7053_v51 = vadd.f32 %v3223_v61, %v6830_v13  ;;  %v3385_v23 = vadd.f32 %v3384_v38, %v6833_v26  ;;  %v3386_v25 = vpop.f32.mrb[171].mxu1  ;;  %5514 = vmatmul.mubr.bf16.vlgmr.msra.gmra.mrb[224].mxu0 %v3951_v46  ;;  %v3225_v59 = vpop.f32.mrb[171].mxu0  ;;  %v5047_v46 = vcombine.low %v655_v37, %v659_v60 }
 0x2f3   : > { %v5056_v61 = vcombine.high %v663_v31, %v667_v57 }
 0x2f4   : > { %v3827_v58 = vadd.f32 %v7021_v20, %v3385_v23  ;;  %3596 = vmatmul.mubr.bf16.gmra.mrb[20].mxu1 %v5039_v32  ;;  %v3890_v49 = vmax.f32 %v3826_v56, 0.0 }
 0x2f5   : > { %3603 = vmatprep.mubr.bf16.mxu1 %v5048_v5 }
 0x2f6   : > { %v3891_v29 = vmax.f32 %v3827_v58, 0.0 }
 0x2f7   : > { %v3228_v63 = vpop.f32.mrb[172].mxu0  ;;  %v3389_v62 = vpop.f32.mrb[172].mxu1 }
 0x2f8   : > { %v7060_v9 = vadd.f32 %v3228_v63, %v6840_v12  ;;  %v3390_v13 = vadd.f32 %v3389_v62, %v6843_v30  ;;  %v3230_v52 = vpop.f32.mrb[173].mxu0  ;;  %v3391_v26 = vpop.f32.mrb[173].mxu1  ;;  %v3952_v3 = vpack.c.bf16 %v3891_v29, %v3890_v49 }
 0x2f9   : > { %v3231_v2 = vpop.f32.mrb[174].mxu0  ;;  %v3392_v24 = vpop.f32.mrb[174].mxu1 }
 0x2fa   : > { %v3828_v32 = vadd.f32 %v7021_v20, %v3390_v13  ;;  %v7065_v38 = vadd.f32 %v3231_v2, %v6846_v16  ;;  %v3393_v5 = vadd.f32 %v3392_v24, %v6849_v33  ;;  %v3394_v56 = vpop.f32.mrb[175].mxu1  ;;  %5517 = vmatprep.mubr.bf16.mxu0 %v3952_v3  ;;  %v3233_v12 = vpop.f32.mrb[175].mxu0  ;;  %v5055_v33 = vcombine.low %v663_v31, %v667_v57 }
 0x2fc   : > { %v3829_v23 = vadd.f32 %v7021_v20, %v3393_v5  ;;  %3604 = vmatmul.mubr.bf16.gmra.mrb[24].mxu1 %v5047_v46  ;;  %v3892_v30 = vmax.f32 %v3828_v32, 0.0 }
 0x2fd   : > { %3611 = vmatprep.mubr.bf16.mxu1 %v5056_v61 }
 0x2fe   : > { %v3893_v25 = vmax.f32 %v3829_v23, 0.0 }
 0x2ff   : > { %v3236_v37 = vpop.f32.mrb[176].mxu0  ;;  %v3397_v60 = vpop.f32.mrb[176].mxu1 }
 0x300   : > { %v7070_v59 = vadd.f32 %v3236_v37, %v6854_v50  ;;  %v3398_v58 = vadd.f32 %v3397_v60, %v6857_v18  ;;  %v3238_v16 = vpop.f32.mrb[177].mxu0  ;;  %v3399_v49 = vpop.f32.mrb[177].mxu1  ;;  %v3953_v29 = vpack.c.bf16 %v3893_v25, %v3892_v30 }
 0x301   : > { %v3239_v63 = vpop.f32.mrb[178].mxu0  ;;  %v3400_v62 = vpop.f32.mrb[178].mxu1 }
 0x302   : > { %v3830_v13 = vadd.f32 %v7021_v20, %v3398_v58  ;;  %v7075_v52 = vadd.f32 %v3239_v63, %v6860_v10  ;;  %v3401_v26 = vadd.f32 %v3400_v62, %v6863_v43  ;;  %v3402_v3 = vpop.f32.mrb[179].mxu1  ;;  %5518 = vmatmul.mubr.bf16.gmra.mrb[228].mxu0 %v3953_v29  ;;  %v3241_v46 = vpop.f32.mrb[179].mxu0 }
 0x304   : > { %v3831_v50 = vadd.f32 %v7021_v20, %v3401_v26  ;;  %3612 = vmatmul.mubr.bf16.gmra.mrb[28].mxu1 %v5055_v33  ;;  %v3894_v18 = vmax.f32 %v3830_v13, 0.0 }
 0x306   : > { %v3895_v2 = vmax.f32 %v3831_v50, 0.0 }
 0x307   : > { %v3244_v24 = vpop.f32.mrb[180].mxu0  ;;  %v3405_v61 = vpop.f32.mrb[180].mxu1 }
 0x308   : > { %v7080_v31 = vadd.f32 %v3244_v24, %v6868_v14  ;;  %v3406_v57 = vadd.f32 %v3405_v61, %v6871_v4  ;;  %v3246_v32 = vpop.f32.mrb[181].mxu0  ;;  %v3407_v10 = vpop.f32.mrb[181].mxu1  ;;  %v3954_v5 = vpack.c.bf16 %v3895_v2, %v3894_v18 }
 0x309   : > { %v3247_v56 = vpop.f32.mrb[182].mxu0  ;;  %v3408_v43 = vpop.f32.mrb[182].mxu1 }
 0x30a   : > { %v3832_v12 = vadd.f32 %v7021_v20, %v3406_v57  ;;  %v7085_v23 = vadd.f32 %v3247_v56, %v6874_v34  ;;  %v3409_v30 = vadd.f32 %v3408_v43, %v6877_v47  ;;  %v3410_v25 = vpop.f32.mrb[183].mxu1  ;;  %5521 = vmatprep.mubr.bf16.mxu0 %v3954_v5  ;;  %v3249_v37 = vpop.f32.mrb[183].mxu0 }
 0x30c   : > { %v3833_v14 = vadd.f32 %v7021_v20, %v3409_v30  ;;  %v3896_v60 = vmax.f32 %v3832_v12, 0.0 }
 0x30e   : > { %v3897_v58 = vmax.f32 %v3833_v14, 0.0 }
 0x30f   : > { %v3252_v4 = vpop.f32.mrb[184].mxu0  ;;  %v3413_v16 = vpop.f32.mrb[184].mxu1 }
 0x310   : > { %v7090_v49 = vadd.f32 %v3252_v4, %v6882_v53  ;;  %v3414_v29 = vadd.f32 %v3413_v16, %v6885_v42  ;;  %v3254_v33 = vpop.f32.mrb[185].mxu0  ;;  %v3415_v63 = vpop.f32.mrb[185].mxu1  ;;  %v3955_v34 = vpack.c.bf16 %v3897_v58, %v3896_v60 }
 0x311   : > { %v3255_v62 = vpop.f32.mrb[186].mxu0  ;;  %v3416_v13 = vpop.f32.mrb[186].mxu1 }
 0x312   : > { %v3834_v47 = vadd.f32 %v7021_v20, %v3414_v29  ;;  %v7095_v26 = vadd.f32 %v3255_v62, %v6888_v8  ;;  %v3417_v3 = vadd.f32 %v3416_v13, %v6891_v55  ;;  %v3418_v46 = vpop.f32.mrb[187].mxu1  ;;  %5522 = vmatmul.mubr.bf16.gmra.mrb[232].mxu0 %v3955_v34  ;;  %v3257_v50 = vpop.f32.mrb[187].mxu0 }
 0x314   : > { %v3835_v53 = vadd.f32 %v7021_v20, %v3417_v3  ;;  %v3898_v18 = vmax.f32 %v3834_v47, 0.0 }
 0x316   : > { %v3899_v2 = vmax.f32 %v3835_v53, 0.0 }
 0x317   : > { %v3260_v42 = vpop.f32.mrb[188].mxu0  ;;  %v3421_v24 = vpop.f32.mrb[188].mxu1 }
 0x318   : > { %v7100_v61 = vadd.f32 %v3260_v42, %v6896_v35  ;;  %v3422_v57 = vadd.f32 %v3421_v24, %v6899_v39  ;;  %v3262_v32 = vpop.f32.mrb[189].mxu0  ;;  %v3423_v10 = vpop.f32.mrb[189].mxu1  ;;  %v3956_v8 = vpack.c.bf16 %v3899_v2, %v3898_v18 }
 0x319   : > { %v3263_v5 = vpop.f32.mrb[190].mxu0  ;;  %v3424_v56 = vpop.f32.mrb[190].mxu1 }
 0x31a   : > { %v3836_v55 = vadd.f32 %v7021_v20, %v3422_v57  ;;  %v7105_v43 = vadd.f32 %v3263_v5, %v6902_v22  ;;  %v3425_v12 = vadd.f32 %v3424_v56, %v6905_v7  ;;  %v3426_v30 = vpop.f32.mrb[191].mxu1  ;;  %5525 = vmatprep.mubr.bf16.mxu0 %v3956_v8  ;;  %v3265_v25 = vpop.f32.mrb[191].mxu0 }
 0x31c   : > { %v3837_v35 = vadd.f32 %v7021_v20, %v3425_v12  ;;  %v3900_v37 = vmax.f32 %v3836_v55, 0.0 }
 0x31e   : > { %v3901_v14 = vmax.f32 %v3837_v35, 0.0 }
 0x31f   : > { %v3268_v39 = vpop.f32.mrb[192].mxu0  ;;  %v3429_v60 = vpop.f32.mrb[192].mxu1 }
 0x320   : > { %v7110_v58 = vadd.f32 %v3268_v39, %v6910_v0  ;;  %v3430_v4 = vadd.f32 %v3429_v60, %v6913_v21  ;;  %v3270_v16 = vpop.f32.mrb[193].mxu0  ;;  %v3431_v29 = vpop.f32.mrb[193].mxu1  ;;  %v3957_v22 = vpack.c.bf16 %v3901_v14, %v3900_v37  ;;  %v7431_v60 = vld [vmem:[#allocation17_spill] sm:$0xff] }
 0x321   : > { %v3271_v33 = vpop.f32.mrb[194].mxu0  ;;  %v3432_v63 = vpop.f32.mrb[194].mxu1  ;;  %v7432_v16 = vld [vmem:[#allocation28_spill] sm:$0xff] }
 0x322   : > { %v3838_v7 = vadd.f32 %v7021_v20, %v3430_v4  ;;  %v7115_v34 = vadd.f32 %v3271_v33, %v6916_v17  ;;  %v3433_v62 = vadd.f32 %v3432_v63, %v6919_v48  ;;  %v3434_v13 = vpop.f32.mrb[195].mxu1  ;;  %5526 = vmatmul.mubr.bf16.gmra.mrb[236].mxu0 %v3957_v22  ;;  %v3273_v47 = vpop.f32.mrb[195].mxu0 }
 0x323   : > { %v7433_v13 = vld [vmem:[#allocation18_spill] sm:$0xff] }
 0x324   : > { %v3839_v0 = vadd.f32 %v7021_v20, %v3433_v62  ;;  %v3902_v3 = vmax.f32 %v3838_v7, 0.0 }
 0x326   : > { %v3903_v46 = vmax.f32 %v3839_v0, 0.0  ;;  %v7434_v0 = vld [vmem:[#allocation29_spill] sm:$0xff] }
 0x327   : > { %v3276_v21 = vpop.f32.mrb[196].mxu0  ;;  %v3437_v50 = vpop.f32.mrb[196].mxu1 }
 0x328   : > { %v7120_v53 = vadd.f32 %v3276_v21, %v6924_v28  ;;  %v3438_v18 = vadd.f32 %v3437_v50, %v6927_v11  ;;  %v3278_v2 = vpop.f32.mrb[197].mxu0  ;;  %v3439_v42 = vpop.f32.mrb[197].mxu1  ;;  %v3958_v17 = vpack.c.bf16 %v3903_v46, %v3902_v3 }
 0x329   : > { %v3279_v24 = vpop.f32.mrb[198].mxu0  ;;  %v3440_v57 = vpop.f32.mrb[198].mxu1 }
 0x32a   : > { %v3840_v48 = vadd.f32 %v7021_v20, %v3438_v18  ;;  %v7125_v32 = vadd.f32 %v3279_v24, %v6930_v36  ;;  %v3441_v10 = vadd.f32 %v3440_v57, %v6933_v1  ;;  %v3442_v8 = vpop.f32.mrb[199].mxu1  ;;  %5529 = vmatprep.mubr.bf16.mxu0 %v3958_v17  ;;  %v3281_v5 = vpop.f32.mrb[199].mxu0  ;;  %v7435_v17 = vld [vmem:[#allocation19_spill] sm:$0xff]  ;;  %v7436_v57 = vld [vmem:[#allocation30_spill] sm:$0xff] }
 0x32c   : > { %v3841_v28 = vadd.f32 %v7021_v20, %v3441_v10  ;;  %v3904_v56 = vmax.f32 %v3840_v48, 0.0 }
 0x32e   : > { %v3905_v55 = vmax.f32 %v3841_v28, 0.0 }
 0x32f   : > { %v3284_v11 = vpop.f32.mrb[200].mxu0  ;;  %v3445_v12 = vpop.f32.mrb[200].mxu1 }
 0x330   : > { %v7130_v30 = vadd.f32 %v3284_v11, %v6938_v41  ;;  %v3446_v25 = vadd.f32 %v3445_v12, %v6941_v40  ;;  %v3286_v35 = vpop.f32.mrb[201].mxu0  ;;  %v3447_v37 = vpop.f32.mrb[201].mxu1  ;;  %v3959_v36 = vpack.c.bf16 %v3905_v55, %v3904_v56  ;;  %v7437_v12 = vld [vmem:[#allocation20_spill] sm:$0xff] }
 0x331   : > { %v3287_v14 = vpop.f32.mrb[202].mxu0  ;;  %v3448_v39 = vpop.f32.mrb[202].mxu1  ;;  %v7438_v35 = vld [vmem:[#allocation31_spill] sm:$0xff] }
 0x332   : > { %v3842_v1 = vadd.f32 %v7021_v20, %v3446_v25  ;;  %v7135_v4 = vadd.f32 %v3287_v14, %v7431_v60  ;;  %v3449_v29 = vadd.f32 %v3448_v39, %v7432_v16  ;;  %v3450_v22 = vpop.f32.mrb[203].mxu1  ;;  %5530 = vmatmul.mubr.bf16.gmra.mrb[240].mxu0 %v3959_v36  ;;  %v3289_v33 = vpop.f32.mrb[203].mxu0 }
 0x333   : > { %v7440_v33 = vld [vmem:[#allocation32_spill] sm:$0xff] }
 0x334   : > { %v3843_v41 = vadd.f32 %v7021_v20, %v3449_v29  ;;  %v3906_v63 = vmax.f32 %v3842_v1, 0.0  ;;  %v7439_v29 = vld [vmem:[#allocation21_spill] sm:$0xff] }
 0x336   : > { %v3907_v7 = vmax.f32 %v3843_v41, 0.0 }
 0x337   : > { %v3292_v40 = vpop.f32.mrb[204].mxu0  ;;  %v3453_v62 = vpop.f32.mrb[204].mxu1 }
 0x338   : > { %v7140_v47 = vadd.f32 %v3292_v40, %v7433_v13  ;;  %v3454_v3 = vadd.f32 %v3453_v62, %v7434_v0  ;;  %v3294_v46 = vpop.f32.mrb[205].mxu0  ;;  %v3455_v21 = vpop.f32.mrb[205].mxu1  ;;  %v3960_v50 = vpack.c.bf16 %v3907_v7, %v3906_v63 }
 0x339   : > { %v3295_v18 = vpop.f32.mrb[206].mxu0  ;;  %v3456_v2 = vpop.f32.mrb[206].mxu1  ;;  %v7441_v46 = vld [vmem:[#allocation22_spill] sm:$0xff] }
 0x33a   : > { %v3844_v42 = vadd.f32 %v7021_v20, %v3454_v3  ;;  %v7145_v24 = vadd.f32 %v3295_v18, %v7435_v17  ;;  %v3457_v48 = vadd.f32 %v3456_v2, %v7436_v57  ;;  %v3458_v10 = vpop.f32.mrb[207].mxu1  ;;  %5533 = vmatprep.mubr.bf16.mxu0 %v3960_v50  ;;  %v3297_v8 = vpop.f32.mrb[207].mxu0  ;;  %v7442_v50 = vld [vmem:[#allocation33_spill] sm:$0xff] }
 0x33b   : > { %v7443_v8 = vld [vmem:[#allocation23_spill] sm:$0xff] }
 0x33c   : > { %v3845_v5 = vadd.f32 %v7021_v20, %v3457_v48  ;;  %v3908_v28 = vmax.f32 %v3844_v42, 0.0 }
 0x33e   : > { %v3909_v56 = vmax.f32 %v3845_v5, 0.0 }
 0x33f   : > { %v3300_v55 = vpop.f32.mrb[208].mxu0  ;;  %v3461_v11 = vpop.f32.mrb[208].mxu1 }
 0x340   : > { %v7150_v25 = vadd.f32 %v3300_v55, %v7437_v12  ;;  %v3462_v37 = vadd.f32 %v3461_v11, %v7438_v35  ;;  %v3302_v36 = vpop.f32.mrb[209].mxu0  ;;  %v3463_v14 = vpop.f32.mrb[209].mxu1  ;;  %v3961_v39 = vpack.c.bf16 %v3909_v56, %v3908_v28  ;;  %v7444_v28 = vld [vmem:[#allocation34_spill] sm:$0xff] }
 0x341   : > { %v3303_v1 = vpop.f32.mrb[210].mxu0  ;;  %v3464_v60 = vpop.f32.mrb[210].mxu1 }
 0x342   : > { %v3846_v16 = vadd.f32 %v7021_v20, %v3462_v37  ;;  %v7155_v22 = vadd.f32 %v3303_v1, %v7439_v29  ;;  %v3465_v41 = vadd.f32 %v3464_v60, %v7440_v33  ;;  %v3466_v63 = vpop.f32.mrb[211].mxu1  ;;  %5534 = vmatmul.mubr.bf16.gmra.mrb[244].mxu0 %v3961_v39  ;;  %v3305_v7 = vpop.f32.mrb[211].mxu0  ;;  %v7445_v39 = vld [vmem:[#allocation24_spill] sm:$0xff]  ;;  %v7446_v60 = vld [vmem:[#allocation35_spill] sm:$0xff] }
 0x344   : > { %v3847_v40 = vadd.f32 %v7021_v20, %v3465_v41  ;;  %v3910_v62 = vmax.f32 %v3846_v16, 0.0 }
 0x346   : > { %v3911_v13 = vmax.f32 %v3847_v40, 0.0 }
 0x347   : > { %v3308_v0 = vpop.f32.mrb[212].mxu0  ;;  %v3469_v3 = vpop.f32.mrb[212].mxu1 }
 0x348   : > { %v7160_v21 = vadd.f32 %v3308_v0, %v7441_v46  ;;  %v3470_v18 = vadd.f32 %v3469_v3, %v7442_v50  ;;  %v3310_v2 = vpop.f32.mrb[213].mxu0  ;;  %v3471_v42 = vpop.f32.mrb[213].mxu1  ;;  %v3962_v17 = vpack.c.bf16 %v3911_v13, %v3910_v62  ;;  %v7447_v62 = vld [vmem:[#allocation25_spill] sm:$0xff]  ;;  %v7448_v0 = vld [vmem:[#allocation36_spill] sm:$0xff] }
 0x349   : > { %v3311_v57 = vpop.f32.mrb[214].mxu0  ;;  %v3472_v48 = vpop.f32.mrb[214].mxu1 }
 0x34a   : > { %v3848_v10 = vadd.f32 %v7021_v20, %v3470_v18  ;;  %v7165_v5 = vadd.f32 %v3311_v57, %v7443_v8  ;;  %v3473_v56 = vadd.f32 %v3472_v48, %v7444_v28  ;;  %v3474_v55 = vpop.f32.mrb[215].mxu1  ;;  %5537 = vmatprep.mubr.bf16.mxu0 %v3962_v17  ;;  %v3313_v11 = vpop.f32.mrb[215].mxu0 }
 0x34c   : > { %v3849_v12 = vadd.f32 %v7021_v20, %v3473_v56  ;;  %v3912_v35 = vmax.f32 %v3848_v10, 0.0 }
 0x34e   : > { %v3913_v37 = vmax.f32 %v3849_v12, 0.0 }
 0x34f   : > { %v3316_v36 = vpop.f32.mrb[216].mxu0  ;;  %v3477_v14 = vpop.f32.mrb[216].mxu1 }
 0x350   : > { %v7170_v1 = vadd.f32 %v3316_v36, %v7445_v39  ;;  %v3478_v16 = vadd.f32 %v3477_v14, %v7446_v60  ;;  %v3318_v29 = vpop.f32.mrb[217].mxu0  ;;  %v3479_v33 = vpop.f32.mrb[217].mxu1  ;;  %v3963_v41 = vpack.c.bf16 %v3913_v37, %v3912_v35  ;;  %v7449_v37 = vld [vmem:[#allocation26_spill] sm:$0xff] }
 0x351   : > { %v3319_v63 = vpop.f32.mrb[218].mxu0  ;;  %v3480_v7 = vpop.f32.mrb[218].mxu1  ;;  %v7450_v29 = vld [vmem:[#allocation37_spill] sm:$0xff] }
 0x352   : > { %v3850_v40 = vadd.f32 %v7021_v20, %v3478_v16  ;;  %v7175_v13 = vadd.f32 %v3319_v63, %v7447_v62  ;;  %v3481_v3 = vadd.f32 %v3480_v7, %v7448_v0  ;;  %v3482_v46 = vpop.f32.mrb[219].mxu1  ;;  %5538 = vmatmul.mubr.bf16.gmra.mrb[248].mxu0 %v3963_v41  ;;  %v3321_v50 = vpop.f32.mrb[219].mxu0 }
 0x354   : > { %v3851_v18 = vadd.f32 %v7021_v20, %v3481_v3  ;;  %v3914_v2 = vmax.f32 %v3850_v40, 0.0 }
 0x356   : > { %v3915_v42 = vmax.f32 %v3851_v18, 0.0 }
 0x357   : > { %v3324_v17 = vpop.f32.mrb[220].mxu0  ;;  %v3485_v57 = vpop.f32.mrb[220].mxu1 }
 0x358   : > { %v7180_v48 = vadd.f32 %v3324_v17, %v7008_v19  ;;  %v3486_v10 = vadd.f32 %v3485_v57, %v7011_v44  ;;  %v3326_v8 = vpop.f32.mrb[221].mxu0  ;;  %v3487_v28 = vpop.f32.mrb[221].mxu1  ;;  %v3964_v56 = vpack.c.bf16 %v3915_v42, %v3914_v2 }
 0x359   : > { %v3327_v55 = vpop.f32.mrb[222].mxu0  ;;  %v3488_v11 = vpop.f32.mrb[222].mxu1 }
 0x35a   : > { %v3852_v12 = vadd.f32 %v7021_v20, %v3486_v10  ;;  %v7185_v35 = vadd.f32 %v3327_v55, %v7014_v54  ;;  %v3489_v36 = vadd.f32 %v3488_v11, %v7449_v37  ;;  %v3490_v14 = vpop.f32.mrb[223].mxu1  ;;  %5541 = vmatprep.mubr.bf16.mxu0 %v3964_v56  ;;  %v3329_v39 = vpop.f32.mrb[223].mxu0 }
 0x35c   : > { %v3853_v19 = vadd.f32 %v7021_v20, %v3489_v36  ;;  %v3916_v60 = vmax.f32 %v3852_v12, 0.0 }
 0x35e   : > { %v3917_v16 = vmax.f32 %v3853_v19, 0.0 }
 0x35f   : > { %v3493_v44 = vpop.f32.mrb[224].mxu1 }
 0x360   : > { %v3494_v33 = vadd.f32 %v3493_v44, %v7450_v29  ;;  %v3495_v41 = vpop.f32.mrb[225].mxu1  ;;  %v3965_v63 = vpack.c.bf16 %v3917_v16, %v3916_v60 }
 0x361   : > { %v3496_v7 = vpop.f32.mrb[226].mxu1 }
 0x362   : > { %v3854_v40 = vadd.f32 %v7021_v20, %v3494_v33  ;;  %v3497_v54 = vadd.f32 %v3496_v7, %v7029_v6  ;;  %v3498_v62 = vpop.f32.mrb[227].mxu1  ;;  %5542 = vmatmul.mubr.bf16.gmra.mrb[252].mxu0 %v3965_v63 }
 0x364   : > { %v3855_v0 = vadd.f32 %v7021_v20, %v3497_v54  ;;  %v3918_v3 = vmax.f32 %v3854_v40, 0.0 }
 0x366   : > { %v3919_v46 = vmax.f32 %v3855_v0, 0.0 }
 0x367   : > { %v3501_v50 = vpop.f32.mrb[228].mxu1 }
 0x368   : > { %v3502_v18 = vadd.f32 %v3501_v50, %v7036_v27  ;;  %v3503_v2 = vpop.f32.mrb[229].mxu1  ;;  %v3966_v42 = vpack.c.bf16 %v3919_v46, %v3918_v3 }
 0x369   : > { %v3504_v17 = vpop.f32.mrb[230].mxu1 }
 0x36a   : > { %v3856_v57 = vadd.f32 %v7021_v20, %v3502_v18  ;;  %v3505_v10 = vadd.f32 %v3504_v17, %v7041_v45  ;;  %v3506_v8 = vpop.f32.mrb[231].mxu1  ;;  %5545 = vmatprep.mubr.bf16.mxu0 %v3966_v42 }
 0x36c   : > { %v3857_v6 = vadd.f32 %v7021_v20, %v3505_v10  ;;  %v3920_v28 = vmax.f32 %v3856_v57, 0.0 }
 0x36e   : > { %v3921_v56 = vmax.f32 %v3857_v6, 0.0 }
 0x36f   : > { %v3509_v55 = vpop.f32.mrb[232].mxu1 }
 0x370   : > { %v3967_v11 = vpack.c.bf16 %v3921_v56, %v3920_v28  ;;  %v3510_v12 = vadd.f32 %v3509_v55, %v7048_v15  ;;  %v3511_v37 = vpop.f32.mrb[233].mxu1 }
 0x371   : > { %v3512_v36 = vpop.f32.mrb[234].mxu1 }
 0x372   : > { %v3858_v27 = vadd.f32 %v7021_v20, %v3510_v12  ;;  %v3513_v14 = vadd.f32 %v3512_v36, %v7053_v51  ;;  %v3514_v39 = vpop.f32.mrb[235].mxu1  ;;  %5546 = vmatmul.mubr.bf16.gmra.mrb[0].mxu0 %v3967_v11 }
 0x374   : > { %v3859_v45 = vadd.f32 %v7021_v20, %v3513_v14  ;;  %v3922_v19 = vmax.f32 %v3858_v27, 0.0 }
 0x376   : > { %v3923_v60 = vmax.f32 %v3859_v45, 0.0 }
 0x377   : > { %v3517_v16 = vpop.f32.mrb[236].mxu1 }
 0x378   : > { %v3518_v44 = vadd.f32 %v3517_v16, %v7060_v9  ;;  %v3519_v29 = vpop.f32.mrb[237].mxu1  ;;  %v3968_v33 = vpack.c.bf16 %v3923_v60, %v3922_v19 }
 0x379   : > { %v3520_v41 = vpop.f32.mrb[238].mxu1 }
 0x37a   : > { %v3860_v15 = vadd.f32 %v7021_v20, %v3518_v44  ;;  %v3521_v63 = vadd.f32 %v3520_v41, %v7065_v38  ;;  %v3522_v7 = vpop.f32.mrb[239].mxu1  ;;  %5549 = vmatprep.mubr.bf16.mxu0 %v3968_v33 }
 0x37c   : > { %v3861_v51 = vadd.f32 %v7021_v20, %v3521_v63  ;;  %v3924_v40 = vmax.f32 %v3860_v15, 0.0 }
 0x37e   : > { %v3925_v54 = vmax.f32 %v3861_v51, 0.0 }
 0x37f   : > { %v3525_v62 = vpop.f32.mrb[240].mxu1 }
 0x380   : > { %v3969_v0 = vpack.c.bf16 %v3925_v54, %v3924_v40  ;;  %v3526_v3 = vadd.f32 %v3525_v62, %v7070_v59  ;;  %v3527_v46 = vpop.f32.mrb[241].mxu1 }
 0x381   : > { %v3528_v50 = vpop.f32.mrb[242].mxu1 }
 0x382   : > { %v3862_v9 = vadd.f32 %v7021_v20, %v3526_v3  ;;  %v3529_v18 = vadd.f32 %v3528_v50, %v7075_v52  ;;  %v3530_v2 = vpop.f32.mrb[243].mxu1  ;;  %5550 = vmatmul.mubr.bf16.gmra.mrb[4].mxu0 %v3969_v0 }
 0x384   : > { %v3863_v38 = vadd.f32 %v7021_v20, %v3529_v18  ;;  %v3926_v42 = vmax.f32 %v3862_v9, 0.0 }
 0x386   : > { %v3927_v17 = vmax.f32 %v3863_v38, 0.0 }
 0x387   : > { %v3533_v57 = vpop.f32.mrb[244].mxu1 }
 0x388   : > { %v3534_v10 = vadd.f32 %v3533_v57, %v7080_v31  ;;  %v3535_v8 = vpop.f32.mrb[245].mxu1  ;;  %v3970_v6 = vpack.c.bf16 %v3927_v17, %v3926_v42 }
 0x389   : > { %v3536_v28 = vpop.f32.mrb[246].mxu1 }
 0x38a   : > { %v3864_v59 = vadd.f32 %v7021_v20, %v3534_v10  ;;  %v3537_v56 = vadd.f32 %v3536_v28, %v7085_v23  ;;  %v3538_v55 = vpop.f32.mrb[247].mxu1  ;;  %5553 = vmatprep.mubr.bf16.mxu0 %v3970_v6 }
 0x38c   : > { %v3865_v52 = vadd.f32 %v7021_v20, %v3537_v56  ;;  %v3928_v11 = vmax.f32 %v3864_v59, 0.0 }
 0x38e   : > { %v3929_v12 = vmax.f32 %v3865_v52, 0.0 }
 0x38f   : > { %v3541_v37 = vpop.f32.mrb[248].mxu1 }
 0x390   : > { %v3971_v36 = vpack.c.bf16 %v3929_v12, %v3928_v11  ;;  %v3542_v27 = vadd.f32 %v3541_v37, %v7090_v49  ;;  %v3543_v14 = vpop.f32.mrb[249].mxu1 }
 0x391   : > { %v3544_v39 = vpop.f32.mrb[250].mxu1 }
 0x392   : > { %v3866_v31 = vadd.f32 %v7021_v20, %v3542_v27  ;;  %v3545_v45 = vadd.f32 %v3544_v39, %v7095_v26  ;;  %v3546_v19 = vpop.f32.mrb[251].mxu1  ;;  %5554 = vmatmul.mubr.bf16.gmra.mrb[8].mxu0 %v3971_v36 }
 0x394   : > { %v3867_v23 = vadd.f32 %v7021_v20, %v3545_v45  ;;  %v3930_v60 = vmax.f32 %v3866_v31, 0.0 }
 0x396   : > { %v3931_v16 = vmax.f32 %v3867_v23, 0.0 }
 0x397   : > { %v3549_v44 = vpop.f32.mrb[252].mxu1 }
 0x398   : > { %v3550_v29 = vadd.f32 %v3549_v44, %v7100_v61  ;;  %v3551_v33 = vpop.f32.mrb[253].mxu1  ;;  %v3972_v41 = vpack.c.bf16 %v3931_v16, %v3930_v60 }
 0x399   : > { %v3552_v15 = vpop.f32.mrb[254].mxu1 }
 0x39a   : > { %v3868_v49 = vadd.f32 %v7021_v20, %v3550_v29  ;;  %v3553_v63 = vadd.f32 %v3552_v15, %v7105_v43  ;;  %v3554_v7 = vpop.f32.mrb[255].mxu1  ;;  %5557 = vmatprep.mubr.bf16.mxu0 %v3972_v41 }
 0x39c   : > { %v3869_v26 = vadd.f32 %v7021_v20, %v3553_v63  ;;  %v3932_v51 = vmax.f32 %v3868_v49, 0.0 }
 0x39e   : > { %v3933_v40 = vmax.f32 %v3869_v26, 0.0 }
 0x39f   : > { %v3557_v54 = vpop.f32.mrb[0].mxu1 }
 0x3a0   : > { %v3973_v62 = vpack.c.bf16 %v3933_v40, %v3932_v51  ;;  %v3558_v0 = vadd.f32 %v3557_v54, %v7110_v58  ;;  %v3559_v3 = vpop.f32.mrb[1].mxu1 }
 0x3a1   : > { %v3560_v46 = vpop.f32.mrb[2].mxu1 }
 0x3a2   : > { %v3870_v61 = vadd.f32 %v7021_v20, %v3558_v0  ;;  %v3561_v50 = vadd.f32 %v3560_v46, %v7115_v34  ;;  %v3562_v9 = vpop.f32.mrb[3].mxu1  ;;  %5558 = vmatmul.mubr.bf16.gmra.mrb[12].mxu0 %v3973_v62 }
 0x3a4   : > { %v3871_v43 = vadd.f32 %v7021_v20, %v3561_v50  ;;  %v3934_v18 = vmax.f32 %v3870_v61, 0.0 }
 0x3a6   : > { %v3935_v2 = vmax.f32 %v3871_v43, 0.0 }
 0x3a7   : > { %v3565_v38 = vpop.f32.mrb[4].mxu1 }
 0x3a8   : > { %v3566_v42 = vadd.f32 %v3565_v38, %v7120_v53  ;;  %v3567_v17 = vpop.f32.mrb[5].mxu1  ;;  %v3974_v57 = vpack.c.bf16 %v3935_v2, %v3934_v18 }
 0x3a9   : > { %v3568_v10 = vpop.f32.mrb[6].mxu1 }
 0x3aa   : > { %v3872_v58 = vadd.f32 %v7021_v20, %v3566_v42  ;;  %v3569_v8 = vadd.f32 %v3568_v10, %v7125_v32  ;;  %v3570_v6 = vpop.f32.mrb[7].mxu1  ;;  %5561 = vmatprep.mubr.bf16.mxu0 %v3974_v57 }
 0x3ac   : > { %v3873_v34 = vadd.f32 %v7021_v20, %v3569_v8  ;;  %v3936_v28 = vmax.f32 %v3872_v58, 0.0 }
 0x3ae   : > { %v3937_v59 = vmax.f32 %v3873_v34, 0.0 }
 0x3af   : > { %v3573_v56 = vpop.f32.mrb[8].mxu1 }
 0x3b0   : > { %v3975_v55 = vpack.c.bf16 %v3937_v59, %v3936_v28  ;;  %v3574_v52 = vadd.f32 %v3573_v56, %v7130_v30  ;;  %v3575_v11 = vpop.f32.mrb[9].mxu1 }
 0x3b1   : > { %v3576_v12 = vpop.f32.mrb[10].mxu1 }
 0x3b2   : > { %v3874_v53 = vadd.f32 %v7021_v20, %v3574_v52  ;;  %v3577_v37 = vadd.f32 %v3576_v12, %v7135_v4  ;;  %v3578_v36 = vpop.f32.mrb[11].mxu1  ;;  %5562 = vmatmul.mubr.bf16.gmra.mrb[16].mxu0 %v3975_v55 }
 0x3b4   : > { %v3875_v32 = vadd.f32 %v7021_v20, %v3577_v37  ;;  %v3938_v27 = vmax.f32 %v3874_v53, 0.0 }
 0x3b6   : > { %v3939_v14 = vmax.f32 %v3875_v32, 0.0 }
 0x3b7   : > { %v3581_v39 = vpop.f32.mrb[12].mxu1 }
 0x3b8   : > { %v3582_v31 = vadd.f32 %v3581_v39, %v7140_v47  ;;  %v3583_v45 = vpop.f32.mrb[13].mxu1  ;;  %v3976_v19 = vpack.c.bf16 %v3939_v14, %v3938_v27 }
 0x3b9   : > { %v3584_v23 = vpop.f32.mrb[14].mxu1 }
 0x3ba   : > { %v3876_v30 = vadd.f32 %v7021_v20, %v3582_v31  ;;  %v3585_v60 = vadd.f32 %v3584_v23, %v7145_v24  ;;  %v3586_v16 = vpop.f32.mrb[15].mxu1  ;;  %5565 = vmatprep.mubr.bf16.mxu0 %v3976_v19  ;;  %v5781_v19 = vld [vmem:[#allocation8] ss:$0 sm:$0xff] }
 0x3bc   : > { %v3877_v4 = vadd.f32 %v7021_v20, %v3585_v60  ;;  %v3940_v44 = vmax.f32 %v3876_v30, 0.0 }
 0x3be   : > { %v3941_v29 = vmax.f32 %v3877_v4, 0.0 }
 0x3bf   : > { %v3589_v33 = vpop.f32.mrb[16].mxu1 }
 0x3c0   : > { %v3977_v41 = vpack.c.bf16 %v3941_v29, %v3940_v44  ;;  %v3590_v15 = vadd.f32 %v3589_v33, %v7150_v25  ;;  %v3591_v49 = vpop.f32.mrb[17].mxu1 }
 0x3c1   : > { %v3592_v47 = vpop.f32.mrb[18].mxu1 }
 0x3c2   : > { %v3878_v63 = vadd.f32 %v7021_v20, %v3590_v15  ;;  %v3593_v7 = vadd.f32 %v3592_v47, %v7155_v22  ;;  %v3594_v26 = vpop.f32.mrb[19].mxu1  ;;  %5566 = vmatmul.mubr.bf16.gmra.mrb[20].mxu0 %v3977_v41 }
 0x3c4   : > { %v3879_v24 = vadd.f32 %v7021_v20, %v3593_v7  ;;  %v3942_v40 = vmax.f32 %v3878_v63, 0.0 }
 0x3c5   : > { %v5515_v51 = vpop.f32.mrb[224].mxu0 }
 0x3c6   : > { %v3943_v54 = vmax.f32 %v3879_v24, 0.0  ;;  %v4080_v62 = vpop.f32.mrb[225].mxu0 }
 0x3c7   : > { %v3597_v0 = vpop.f32.mrb[20].mxu1  ;;  %v5516_v3 = vpop.f32.mrb[226].mxu0 }
 0x3c8   : > { %v3598_v46 = vadd.f32 %v3597_v0, %v7160_v21  ;;  %v5274_v25 = vpack.c.bf16 %v5516_v3, %v5515_v51  ;;  %v3599_v61 = vpop.f32.mrb[21].mxu1  ;;  %v4083_v50 = vpop.f32.mrb[227].mxu0  ;;  %v3978_v9 = vpack.c.bf16 %v3943_v54, %v3942_v40 }
 0x3c9   : > { %v5269_v43 = vpack.c.bf16 %v4083_v50, %v4080_v62  ;;  %v3600_v18 = vpop.f32.mrb[22].mxu1 }
 0x3ca   : > { %v3880_v22 = vadd.f32 %v7021_v20, %v3598_v46  ;;  %5426 = vst [vmem:[%s7244_s25 + $0x8] sm:$0xff] %v5274_v25   ;;  %v3601_v2 = vadd.f32 %v3600_v18, %v7165_v5  ;;  %v3602_v38 = vpop.f32.mrb[23].mxu1  ;;  %5569 = vmatprep.mubr.bf16.mxu0 %v3978_v9 }
 0x3cb   : > { %5270 = vst [vmem:[%s7244_s25] sm:$0xff] %v5269_v43  }
 0x3cc   : > { %v3881_v21 = vadd.f32 %v7021_v20, %v3601_v2  ;;  %v3944_v42 = vmax.f32 %v3880_v22, 0.0 }
 0x3ce   : > { %v3945_v17 = vmax.f32 %v3881_v21, 0.0 }
 0x3cf   : > { %v3605_v57 = vpop.f32.mrb[24].mxu1 }
 0x3d0   : > { %v3979_v10 = vpack.c.bf16 %v3945_v17, %v3944_v42  ;;  %v3606_v58 = vadd.f32 %v3605_v57, %v7170_v1  ;;  %v3607_v8 = vpop.f32.mrb[25].mxu1 }
 0x3d1   : > { %v3608_v6 = vpop.f32.mrb[26].mxu1 }
 0x3d2   : > { %v3882_v34 = vadd.f32 %v7021_v20, %v3606_v58  ;;  %v3609_v28 = vadd.f32 %v3608_v6, %v7175_v13  ;;  %v3610_v59 = vpop.f32.mrb[27].mxu1  ;;  %5570 = vmatmul.mubr.bf16.gmra.mrb[24].mxu0 %v3979_v10 }
 0x3d4   : > { %v3883_v5 = vadd.f32 %v7021_v20, %v3609_v28  ;;  %v3946_v55 = vmax.f32 %v3882_v34, 0.0 }
 0x3d5   : > { %v5519_v56 = vpop.f32.mrb[228].mxu0 }
 0x3d6   : > { %v3947_v52 = vmax.f32 %v3883_v5, 0.0  ;;  %v4096_v11 = vpop.f32.mrb[229].mxu0 }
 0x3d7   : > { %v3613_v12 = vpop.f32.mrb[28].mxu1  ;;  %v5520_v53 = vpop.f32.mrb[230].mxu0 }
 0x3d8   : > { %v3614_v1 = vadd.f32 %v3613_v12, %v7180_v48  ;;  %v5284_v37 = vpack.c.bf16 %v5520_v53, %v5519_v56  ;;  %v3615_v36 = vpop.f32.mrb[29].mxu1  ;;  %v4099_v32 = vpop.f32.mrb[231].mxu0  ;;  %v3980_v27 = vpack.c.bf16 %v3947_v52, %v3946_v55 }
 0x3d9   : > { %v5279_v14 = vpack.c.bf16 %v4099_v32, %v4096_v11  ;;  %v3616_v13 = vpop.f32.mrb[30].mxu1 }
 0x3da   : > { %v3884_v39 = vadd.f32 %v7021_v20, %v3614_v1  ;;  %5428 = vst [vmem:[%s7244_s25 + $0x18] sm:$0xff] %v5284_v37   ;;  %v3617_v31 = vadd.f32 %v3616_v13, %v7185_v35  ;;  %v3618_v45 = vpop.f32.mrb[31].mxu1  ;;  %5573 = vmatprep.mubr.bf16.mxu0 %v3980_v27 }
 0x3db   : > { %5427 = vst [vmem:[%s7244_s25 + $0x10] sm:$0xff] %v5279_v14  }
 0x3dc   : > { %v3885_v23 = vadd.f32 %v5781_v19, %v3617_v31  ;;  %v3948_v30 = vmax.f32 %v3884_v39, 0.0 }
 0x3de   : > { %v3949_v48 = vmax.f32 %v3885_v23, 0.0 }
 0x3e0   : > { %v3981_v60 = vpack.c.bf16 %v3949_v48, %v3948_v30 }
 0x3e2   : > { %5574 = vmatmul.mubr.bf16.gmra.mrb[28].mxu0 %v3981_v60 }
 0x3e5   : > { %v5523_v16 = vpop.f32.mrb[232].mxu0 }
 0x3e6   : > { %v4112_v4 = vpop.f32.mrb[233].mxu0 }
 0x3e7   : > { %v5524_v44 = vpop.f32.mrb[234].mxu0 }
 0x3e8   : > { %v5294_v20 = vpack.c.bf16 %v5524_v44, %v5523_v16  ;;  %v4115_v29 = vpop.f32.mrb[235].mxu0 }
 0x3e9   : > { %v5289_v33 = vpack.c.bf16 %v4115_v29, %v4112_v4 }
 0x3ea   : > { %5430 = vst [vmem:[%s7244_s25 + $0x28] sm:$0xff] %v5294_v20  }
 0x3eb   : > { %5429 = vst [vmem:[%s7244_s25 + $0x20] sm:$0xff] %v5289_v33  }
 0x3f5   : > { %v5527_v35 = vpop.f32.mrb[236].mxu0 }
 0x3f6   : > { %v4128_v41 = vpop.f32.mrb[237].mxu0 }
 0x3f7   : > { %v5528_v15 = vpop.f32.mrb[238].mxu0 }
 0x3f8   : > { %v5304_v49 = vpack.c.bf16 %v5528_v15, %v5527_v35  ;;  %v4131_v47 = vpop.f32.mrb[239].mxu0 }
 0x3f9   : > { %v5299_v63 = vpack.c.bf16 %v4131_v47, %v4128_v41 }
 0x3fa   : > { %5432 = vst [vmem:[%s7244_s25 + $0x38] sm:$0xff] %v5304_v49  }
 0x3fb   : > { %5431 = vst [vmem:[%s7244_s25 + $0x30] sm:$0xff] %v5299_v63  }
 0x405   : > { %v5531_v7 = vpop.f32.mrb[240].mxu0 }
 0x406   : > { %v4144_v26 = vpop.f32.mrb[241].mxu0 }
 0x407   : > { %v5532_v24 = vpop.f32.mrb[242].mxu0 }
 0x408   : > { %v5314_v51 = vpack.c.bf16 %v5532_v24, %v5531_v7  ;;  %v4147_v40 = vpop.f32.mrb[243].mxu0 }
 0x409   : > { %v5309_v54 = vpack.c.bf16 %v4147_v40, %v4144_v26 }
 0x40a   : > { %5434 = vst [vmem:[%s7244_s25 + $0x48] sm:$0xff] %v5314_v51  }
 0x40b   : > { %5433 = vst [vmem:[%s7244_s25 + $0x40] sm:$0xff] %v5309_v54  }
 0x415   : > { %v5535_v62 = vpop.f32.mrb[244].mxu0 }
 0x416   : > { %v4160_v0 = vpop.f32.mrb[245].mxu0 }
 0x417   : > { %v5536_v3 = vpop.f32.mrb[246].mxu0 }
 0x418   : > { %v5324_v46 = vpack.c.bf16 %v5536_v3, %v5535_v62  ;;  %v4163_v25 = vpop.f32.mrb[247].mxu0 }
 0x419   : > { %v5319_v61 = vpack.c.bf16 %v4163_v25, %v4160_v0 }
 0x41a   : > { %5436 = vst [vmem:[%s7244_s25 + $0x58] sm:$0xff] %v5324_v46  }
 0x41b   : > { %5435 = vst [vmem:[%s7244_s25 + $0x50] sm:$0xff] %v5319_v61  }
 0x425   : > { %v5539_v50 = vpop.f32.mrb[248].mxu0 }
 0x426   : > { %v4176_v9 = vpop.f32.mrb[249].mxu0 }
 0x427   : > { %v5540_v43 = vpop.f32.mrb[250].mxu0 }
 0x428   : > { %v5334_v18 = vpack.c.bf16 %v5540_v43, %v5539_v50  ;;  %v4179_v22 = vpop.f32.mrb[251].mxu0 }
 0x429   : > { %v5329_v2 = vpack.c.bf16 %v4179_v22, %v4176_v9 }
 0x42a   : > { %5438 = vst [vmem:[%s7244_s25 + $0x68] sm:$0xff] %v5334_v18  }
 0x42b   : > { %5437 = vst [vmem:[%s7244_s25 + $0x60] sm:$0xff] %v5329_v2  }
 0x435   : > { %v5543_v38 = vpop.f32.mrb[252].mxu0 }
 0x436   : > { %v4192_v21 = vpop.f32.mrb[253].mxu0 }
 0x437   : > { %v5544_v42 = vpop.f32.mrb[254].mxu0 }
 0x438   : > { %v5344_v17 = vpack.c.bf16 %v5544_v42, %v5543_v38  ;;  %v4195_v57 = vpop.f32.mrb[255].mxu0 }
 0x439   : > { %v5339_v10 = vpack.c.bf16 %v4195_v57, %v4192_v21 }
 0x43a   : > { %5440 = vst [vmem:[%s7244_s25 + $0x78] sm:$0xff] %v5344_v17  }
 0x43b   : > { %5439 = vst [vmem:[%s7244_s25 + $0x70] sm:$0xff] %v5339_v10  }
 0x445   : > { %v5547_v58 = vpop.f32.mrb[0].mxu0 }
 0x446   : > { %v4208_v8 = vpop.f32.mrb[1].mxu0 }
 0x447   : > { %v5548_v6 = vpop.f32.mrb[2].mxu0 }
 0x448   : > { %v5354_v34 = vpack.c.bf16 %v5548_v6, %v5547_v58  ;;  %v4211_v28 = vpop.f32.mrb[3].mxu0 }
 0x449   : > { %v5349_v59 = vpack.c.bf16 %v4211_v28, %v4208_v8 }
 0x44a   : > { %5442 = vst [vmem:[%s7244_s25 + $0x88] sm:$0xff] %v5354_v34  }
 0x44b   : > { %5441 = vst [vmem:[%s7244_s25 + $0x80] sm:$0xff] %v5349_v59  }
 0x455   : > { %v5551_v5 = vpop.f32.mrb[4].mxu0 }
 0x456   : > { %v4224_v56 = vpop.f32.mrb[5].mxu0 }
 0x457   : > { %v5552_v55 = vpop.f32.mrb[6].mxu0 }
 0x458   : > { %v5364_v52 = vpack.c.bf16 %v5552_v55, %v5551_v5  ;;  %v4227_v11 = vpop.f32.mrb[7].mxu0 }
 0x459   : > { %v5359_v12 = vpack.c.bf16 %v4227_v11, %v4224_v56 }
 0x45a   : > { %5444 = vst [vmem:[%s7244_s25 + $0x98] sm:$0xff] %v5364_v52  }
 0x45b   : > { %5443 = vst [vmem:[%s7244_s25 + $0x90] sm:$0xff] %v5359_v12  }
 0x465   : > { %v5555_v53 = vpop.f32.mrb[8].mxu0 }
 0x466   : > { %v4240_v1 = vpop.f32.mrb[9].mxu0 }
 0x467   : > { %v5556_v37 = vpop.f32.mrb[10].mxu0 }
 0x468   : > { %v5374_v36 = vpack.c.bf16 %v5556_v37, %v5555_v53  ;;  %v4243_v32 = vpop.f32.mrb[11].mxu0 }
 0x469   : > { %v5369_v27 = vpack.c.bf16 %v4243_v32, %v4240_v1 }
 0x46a   : > { %5446 = vst [vmem:[%s7244_s25 + $0xa8] sm:$0xff] %v5374_v36  }
 0x46b   : > { %5445 = vst [vmem:[%s7244_s25 + $0xa0] sm:$0xff] %v5369_v27  }
 0x475   : > { %v5559_v14 = vpop.f32.mrb[12].mxu0 }
 0x476   : > { %v4256_v13 = vpop.f32.mrb[13].mxu0 }
 0x477   : > { %v5560_v39 = vpop.f32.mrb[14].mxu0 }
 0x478   : > { %v5384_v31 = vpack.c.bf16 %v5560_v39, %v5559_v14  ;;  %v4259_v45 = vpop.f32.mrb[15].mxu0 }
 0x479   : > { %v5379_v19 = vpack.c.bf16 %v4259_v45, %v4256_v13 }
 0x47a   : > { %5448 = vst [vmem:[%s7244_s25 + $0xb8] sm:$0xff] %v5384_v31  }
 0x47b   : > { %5447 = vst [vmem:[%s7244_s25 + $0xb0] sm:$0xff] %v5379_v19  }
 0x485   : > { %v5563_v23 = vpop.f32.mrb[16].mxu0 }
 0x486   : > { %v4272_v30 = vpop.f32.mrb[17].mxu0 }
 0x487   : > { %v5564_v48 = vpop.f32.mrb[18].mxu0 }
 0x488   : > { %v5394_v60 = vpack.c.bf16 %v5564_v48, %v5563_v23  ;;  %v4275_v16 = vpop.f32.mrb[19].mxu0 }
 0x489   : > { %v5389_v4 = vpack.c.bf16 %v4275_v16, %v4272_v30 }
 0x48a   : > { %5450 = vst [vmem:[%s7244_s25 + $0xc8] sm:$0xff] %v5394_v60  }
 0x48b   : > { %5449 = vst [vmem:[%s7244_s25 + $0xc0] sm:$0xff] %v5389_v4  }
 0x495   : > { %v5567_v44 = vpop.f32.mrb[20].mxu0 }
 0x496   : > { %v4288_v20 = vpop.f32.mrb[21].mxu0 }
 0x497   : > { %v5568_v29 = vpop.f32.mrb[22].mxu0 }
 0x498   : > { %v5404_v33 = vpack.c.bf16 %v5568_v29, %v5567_v44  ;;  %v4291_v35 = vpop.f32.mrb[23].mxu0 }
 0x499   : > { %v5399_v41 = vpack.c.bf16 %v4291_v35, %v4288_v20 }
 0x49a   : > { %5452 = vst [vmem:[%s7244_s25 + $0xd8] sm:$0xff] %v5404_v33  }
 0x49b   : > { %5451 = vst [vmem:[%s7244_s25 + $0xd0] sm:$0xff] %v5399_v41  }
 0x4a5   : > { %v5571_v15 = vpop.f32.mrb[24].mxu0 }
 0x4a6   : > { %v4304_v49 = vpop.f32.mrb[25].mxu0 }
 0x4a7   : > { %v5572_v47 = vpop.f32.mrb[26].mxu0 }
 0x4a8   : > { %v5414_v63 = vpack.c.bf16 %v5572_v47, %v5571_v15  ;;  %v4307_v7 = vpop.f32.mrb[27].mxu0 }
 0x4a9   : > { %v5409_v26 = vpack.c.bf16 %v4307_v7, %v4304_v49 }
 0x4aa   : > { %5454 = vst [vmem:[%s7244_s25 + $0xe8] sm:$0xff] %v5414_v63  }
 0x4ab   : > { %5453 = vst [vmem:[%s7244_s25 + $0xe0] sm:$0xff] %v5409_v26  }
 0x4b5   : > { %v5575_v24 = vpop.f32.mrb[28].mxu0 }
 0x4b6   : > { %v4320_v51 = vpop.f32.mrb[29].mxu0 }
 0x4b7   : > { %v5576_v40 = vpop.f32.mrb[30].mxu0 }
 0x4b8   : > { %v5424_v54 = vpack.c.bf16 %v5576_v40, %v5575_v24  ;;  %v4323_v62 = vpop.f32.mrb[31].mxu0 }
 0x4b9   : > { %v5419_v0 = vpack.c.bf16 %v4323_v62, %v4320_v51 }
 0x4ba   : > { %5456 = vst [vmem:[%s7244_s25 + $0xf8] sm:$0xff] %v5424_v54  }
 0x4bb   : > { %5455 = vst [vmem:[%s7244_s25 + $0xf0] sm:$0xff] %v5419_v0  }
 0x4bc   : > { %5909 = shalt.err (!%p5906_p0)
}
 0x4bd   : > { %s5910_s6 = scalar_lea.hbm %s7290_s9, 4096  ;;  %s5914_s8 = scalar_lea.hbm %s7347_s4, 8192 }
 0x4be   : > { %p5911_p4 = scmp.ne.s32.totalorder %s7290_s9, %s5910_s6  ;;  %p5915_p12 = scmp.lt.u32.totalorder %s7290_s9, %s7347_s4 }
 0x4bf   : > { %p5916_p1 = scmp.lt.u32.totalorder %s5914_s8, %s5910_s6  ;;  %p5918_p13 = scmp.lt.u32.totalorder %s5910_s6, %s7290_s9 }
 0x4c0   : > { %p5912_p2 = pnand %p5911_p4, %p6183_p10 }
 0x4c1   : > { %p5917_p11 = por %p5916_p1, %p5915_p12 }
 0x4c2   : > { %p5913_p8 = pneg %p5912_p2 }
 0x4c3   : > { %p5919_p6 = por %p5918_p13, %p5917_p11 }
 0x4c5   : > { %p5920_p3 = pnand %p5919_p6, %p5913_p8 }
 0x4c7   : > { %5923 = shalt.err (!%p5920_p3)
}
 0x4c8   : > { %s5998_s25 = smov 64   ;;  %s5999_s27 = smov 4  }
 0x4c9   : > { %5623 = dma.vmem_to_hbm [thread:$0]  (%p6183_p10), %s7292_s24, 4096, %s7290_s9, %s4656_s11, %s5998_s25, %s5998_s25, %s5999_s27  }
 0x4ca PF: > { %s7451_s28 = sld [smem:[#allocation16_spill]]  ;;  %s4684_s29 = sand.u32 1, %s5966_s15  }
 0x4cb   : > { %p7453_p7 = scmp.ge.s32.totalorder %s5986_s20, 2  ;;  %s4685_s18 = scalar_lea.sflag [#allocation5], %s4684_s29 }
 0x4d0   : > { %p7452_p5 = scmp.ne.s32.totalorder %s7451_s28, 0 }
 0x4d2   : > { %p5640_p9 = pnand %p7453_p7, %p7452_p5 }
 0x4d4   : > { %5961 = dma.done.wait (!%p5640_p9), %s4685_s18, 4096  }
 0x4d5   : > { %5963 = vsyncadd (!%p5640_p9), %s4685_s18, 4294963200  ;;  %s22_s20 = sadd.s32 1, %s5986_s20   ;;  %s7454_s15 = smov %s5970_s16 }
 0x4d6   : > { %p19_p0 = scmp.ge.s32.totalorder %s22_s20, 4   ;;  %s7455_s16 = smov %s5974_s17 }
 0x4d7   : > { %s7456_s17 = smov %s6195_s7  ;;  %s7457_s18 = smov %s5982_s19 }
 0x4d8   : > { %s7458_s19 = smov %s7460_s30  ;;  %21 = sbr.rel (!%p19_p0) target bundleno = 8 (0x8), region = 102 }
 0x4df   :  { %4690 = vsyncpa [#allocation4], 1 }
 0x4e0   :  { %4692 = vsyncpa [#allocation4 + $0x1], 1 }
 0x4e1   :  { %4693 = vsyncpa [#allocation7], 1 }
 0x4e2   :  { %4694 = vsyncpa [#allocation10], 1 }
 0x4e3   :  { %4695 = vsyncpa [#allocation5], 1 }
 0x4e4   :  { %4697 = vsyncpa [#allocation5 + $0x1], 1 }

</bundles_post_ra>
